<compile_context>
chip_gen: v5e
topology: v5e:2x2
jax: 0.10.0
libtpu: 0.0.40
codegen_flags: <defaults>
</compile_context>

<pallas_src>
import functools

import jax
import jax.numpy as jnp
from jax.experimental import pallas as pl
from jax.experimental.pallas import tpu as pltpu

NUM_FFN_LAYERS = 3


def _round_up(x, m):
    return ((x + m - 1) // m) * m


def _pad2(a, rows, cols):
    return jnp.pad(a, ((0, rows - a.shape[0]), (0, cols - a.shape[1])))


def _ffn_kernel(ids_ref, emb_hbm, w1_ref, b1_ref, w2_ref, b2_ref,
                w3_ref, b3_ref, wo_ref, bo_ref, out_ref,
                emb_vmem, h_vmem, sem, *, precision):
    """Grid = (batch tiles, vocab tiles). ids_ref is the scalar-prefetched SMEM
    id array; emb_hbm is the full HBM embedding table (memory_space=ANY)."""
    i = pl.program_id(0)          # batch-tile index
    j = pl.program_id(1)          # vocab (output) tile index
    tb = emb_vmem.shape[0]
    cdt = emb_vmem.dtype          # compute dtype; accumulation is always fp32

    # Embedding gather + hidden FFN run once per batch tile (first vocab step);
    # the hidden activations are cached in VMEM scratch for the remaining
    # vocab tiles of this batch tile.
    @pl.when(j == 0)
    def _():
        base = i * tb

        # DMA-gather: row ids[base + r] of the HBM table -> emb_vmem[r].
        @pl.loop(0, tb)
        def _start(r):
            row = ids_ref[base + r]
            pltpu.make_async_copy(emb_hbm.at[row], emb_vmem.at[r], sem).start()

        @pl.loop(0, tb)
        def _wait(r):
            pltpu.make_async_copy(emb_hbm.at[0], emb_vmem.at[0], sem).wait()

        x = emb_vmem[...]                                           # (TB, E) cdt
        h = jnp.dot(x, w1_ref[...], preferred_element_type=jnp.float32,
                    precision=precision)
        h = jnp.maximum(h + b1_ref[...], 0.0)
        h = jnp.dot(h.astype(cdt), w2_ref[...], preferred_element_type=jnp.float32,
                    precision=precision)
        h = jnp.maximum(h + b2_ref[...], 0.0)
        h = jnp.dot(h.astype(cdt), w3_ref[...], preferred_element_type=jnp.float32,
                    precision=precision)
        h = jnp.maximum(h + b3_ref[...], 0.0)
        h_vmem[...] = h.astype(cdt)                                 # (TB, H) cache

    # Output projection for this vocab tile: (TB, H) @ (H, TV) + bo.
    logits = jnp.dot(h_vmem[...], wo_ref[...], preferred_element_type=jnp.float32,
                     precision=precision)
    out_ref[...] = (logits + bo_ref[...]).astype(out_ref.dtype)


def word_id_classifier_ffn(word_ids, params, *,
                           compute_dtype=jnp.bfloat16,
                           out_dtype=jnp.float32,
                           block_b=256, block_v=512,
                           megacore_split=True,
                           single_buffer_resident=True):
    """Forward pass matching WordIDClassifierFFN.forward for 0-D/1-D int input.

    compute_dtype: bf16 (default; fp32 MXU accumulation, params rounded to bf16
                   — a documented model-precision change) or fp32 (HIGHEST
                   precision matmuls).
    out_dtype:     logits dtype (fp32 default; bf16 halves HBM writeback).
    Returns logits of shape (B, V) in out_dtype.
    """
    if word_ids.ndim == 0:
        word_ids = word_ids.reshape(1)
    word_ids = word_ids.astype(jnp.int32)
    B = int(word_ids.shape[0])

    emb = params["embedding"]
    V, E = emb.shape
    H = params["w1"].shape[1]
    assert params["wo"].shape[1] == V

    cdt = jnp.dtype(compute_dtype)
    odt = jnp.dtype(out_dtype)

    # Lane-dense padding of feature dims (multiples of 128). Zero padding keeps
    # the math exact (padded rows/cols contribute 0; padded logits are sliced).
    E_pad = _round_up(E, 128)
    H_pad = _round_up(H, 128)
    V_pad = _round_up(V, 128)
    tv = min(_round_up(block_v, 128), V_pad)
    V_out = _round_up(V_pad, tv)
    grid_v = V_out // tv

    # Batch tile: multiple of 8 sublanes; optionally split so grid_b >= 2 when
    # the whole batch would otherwise be a single tile (v7x megacore).
    b8 = _round_up(max(B, 1), 8)
    tb = min(_round_up(block_b, 8), b8)
    if megacore_split and b8 >= 16 and tb >= b8:
        tb = _round_up((b8 + 1) // 2, 8)
    Bp = _round_up(B, tb)
    grid_b = Bp // tb

    # Clamp ids (jnp.take semantics; also prevents OOB DMA for invalid ids),
    # pad with id 0 (padding rows are sliced off below).
    ids = jnp.clip(word_ids, 0, V - 1)
    ids_p = jnp.zeros((Bp,), jnp.int32).at[:B].set(ids)

    # Parameters: zero-padded, weights/table in compute dtype, biases fp32
    # (bias-add + ReLU happen on the fp32 accumulator -> v5e-friendly epilogue).
    emb_p = _pad2(emb, V, E_pad).astype(cdt)          # stays in HBM (DMA-gathered)
    w1 = _pad2(params["w1"], E_pad, H_pad).astype(cdt)
    w2 = _pad2(params["w2"], H_pad, H_pad).astype(cdt)
    w3 = _pad2(params["w3"], H_pad, H_pad).astype(cdt)
    wo = _pad2(params["wo"], H_pad, V_out).astype(cdt)
    b1 = _pad2(params["b1"], 1, H_pad).astype(jnp.float32)
    b2 = _pad2(params["b2"], 1, H_pad).astype(jnp.float32)
    b3 = _pad2(params["b3"], 1, H_pad).astype(jnp.float32)
    bo = _pad2(params["bo"], 1, V_out).astype(jnp.float32)

    # fp32 path: request true-fp32 matmuls (avoid silent bf16-pass decomposition).
    precision = jax.lax.Precision.HIGHEST if cdt == jnp.dtype(jnp.float32) else None

    # Explicit scoped-VMEM budget: resident weights/biases (x2 buffers, to be
    # safe) + double-buffered wo/bo vocab tiles + double-buffered output tile
    # + gather/hidden scratch, with headroom; clamped to [16 MiB, 64 MiB] so it
    # is valid on every TPU generation.
    ci = cdt.itemsize
    resident = 2 * ((w1.size + w2.size + w3.size) * ci
                    + (b1.size + b2.size + b3.size) * 4)
    per_vblock = 2 * (H_pad * tv * ci + tv * 4)
    out_bytes = 2 * tb * tv * odt.itemsize
    scratch = tb * (E_pad + H_pad) * ci
    est = resident + per_vblock + out_bytes + scratch
    vmem_limit = int(min(64 << 20, max(2 * est + (4 << 20), 16 << 20)))

    def run(single_buf, prec):
        kernel = functools.partial(_ffn_kernel, precision=prec)

        def resident_spec(shape):
            if single_buf:
                return pl.BlockSpec(shape, lambda i, j, _ids: (0, 0),
                                    pipeline_mode=pl.Buffered(1))
            return pl.BlockSpec(shape, lambda i, j, _ids: (0, 0))

        grid_spec = pltpu.PrefetchScalarGridSpec(
            num_scalar_prefetch=1,               # word ids -> SMEM
            grid=(grid_b, grid_v),
            in_specs=[
                pl.BlockSpec(memory_space=pl.ANY),                    # emb table (HBM)
                resident_spec((E_pad, H_pad)),                        # w1
                resident_spec((1, H_pad)),                            # b1
                resident_spec((H_pad, H_pad)),                        # w2
                resident_spec((1, H_pad)),                            # b2
                resident_spec((H_pad, H_pad)),                        # w3
                resident_spec((1, H_pad)),                            # b3
                pl.BlockSpec((H_pad, tv), lambda i, j, _ids: (0, j)),  # wo (V-tiled)
                pl.BlockSpec((1, tv), lambda i, j, _ids: (0, j)),      # bo (V-tiled)
            ],
            out_specs=pl.BlockSpec((tb, tv), lambda i, j, _ids: (i, j)),
            scratch_shapes=[
                pltpu.VMEM((tb, E_pad), cdt),     # gathered embedding rows
                pltpu.VMEM((tb, H_pad), cdt),     # hidden acts cached across V tiles
                pltpu.SemaphoreType.DMA,          # gather DMA completion
            ],
        )
        return pl.pallas_call(
            kernel,
            out_shape=jax.ShapeDtypeStruct((Bp, V_out), odt),
            grid_spec=grid_spec,
            compiler_params=pltpu.CompilerParams(
                dimension_semantics=("parallel", "arbitrary"),
                vmem_limit_bytes=vmem_limit),
        )(ids_p, emb_p, w1, b1, w2, b2, w3, b3, wo, bo)

    # Preferred configuration first; fall back gracefully if pl.Buffered(1) or
    # explicit matmul precision is unsupported by the installed JAX/Mosaic.
    attempts = []
    if single_buffer_resident:
        attempts.append((True, precision))
    attempts.append((False, precision))
    if precision is not None:
        attempts.append((False, None))

    out, last_err = None, None
    for single_buf, prec in attempts:
        try:
            out = run(single_buf, prec)
            break
        except Exception as e:  # noqa: BLE001 - retry with a more conservative config
            last_err = e
            out = None
    if out is None:
        raise last_err

    return out[:B, :V]


def init_params(key, num_unique_words, embedding_dim, hidden_dim):
    """Init mirroring PyTorch defaults (Embedding ~ N(0,1); Linear ~
    U(-1/sqrt(fan_in), 1/sqrt(fan_in))). Weights stored (in, out)."""
    ks = jax.random.split(key, 9)

    def linear(kw, kb, fan_in, fan_out):
        bound = 1.0 / jnp.sqrt(jnp.float32(fan_in))
        w = jax.random.uniform(kw, (fan_in, fan_out), jnp.float32, -bound, bound)
        b = jax.random.uniform(kb, (1, fan_out), jnp.float32, -bound, bound)
        return w, b

    emb = jax.random.normal(ks[0], (num_unique_words, embedding_dim), jnp.float32)
    w1, b1 = linear(ks[1], ks[2], embedding_dim, hidden_dim)
    w2, b2 = linear(ks[3], ks[4], hidden_dim, hidden_dim)
    w3, b3 = linear(ks[5], ks[6], hidden_dim, hidden_dim)
    wo, bo = linear(ks[7], ks[8], hidden_dim, num_unique_words)
    return {"embedding": emb, "w1": w1, "b1": b1, "w2": w2, "b2": b2,
            "w3": w3, "b3": b3, "wo": wo, "bo": bo}


def _reference(word_ids, params):
    emb = jnp.take(params["embedding"], word_ids, axis=0)
    h = jnp.maximum(emb @ params["w1"] + params["b1"], 0.0)
    h = jnp.maximum(h @ params["w2"] + params["b2"], 0.0)
    h = jnp.maximum(h @ params["w3"] + params["b3"], 0.0)
    return h @ params["wo"] + params["bo"]


if __name__ == "__main__":
    NUM_UNIQUE_WORDS = 256   # vocab size V
    EMBEDDING_DIM = 32       # E
    HIDDEN_DIM = 64          # H
    BATCH = 8                # B

    key = jax.random.PRNGKey(0)
    pkey, dkey, dkey2 = jax.random.split(key, 3)
    params = init_params(pkey, NUM_UNIQUE_WORDS, EMBEDDING_DIM, HIDDEN_DIM)
    word_ids = jax.random.randint(dkey, (BATCH,), 0, NUM_UNIQUE_WORDS, jnp.int32)
    ref = _reference(word_ids, params)

    # 1) fp32 compute path (HIGHEST-precision matmuls): tight match vs reference.
    logits = word_id_classifier_ffn(word_ids, params, compute_dtype=jnp.float32)
    jax.block_until_ready(logits)
    assert logits.shape == (BATCH, NUM_UNIQUE_WORDS)
    assert jnp.allclose(logits, ref, atol=1e-4, rtol=1e-4)

    # 2) multi-tile grid: batch padding (B=21, tile 8) AND vocab tiling (tv=128).
    word_ids_big = jax.random.randint(dkey2, (21,), 0, NUM_UNIQUE_WORDS, jnp.int32)
    logits_big = word_id_classifier_ffn(word_ids_big, params,
                                        compute_dtype=jnp.float32,
                                        block_b=8, block_v=128)
    jax.block_until_ready(logits_big)
    ref_big = _reference(word_ids_big, params)
    assert logits_big.shape == (21, NUM_UNIQUE_WORDS)
    assert jnp.allclose(logits_big, ref_big, atol=1e-4, rtol=1e-4)

    # 3) default path: bf16 compute (fp32 accumulation), bf16 logits writeback.
    logits_bf16 = word_id_classifier_ffn(word_ids, params,
                                         out_dtype=jnp.bfloat16)
    jax.block_until_ready(logits_bf16)
    assert jnp.allclose(logits_bf16.astype(jnp.float32), ref, atol=2e-1, rtol=5e-2)

    print("KERNEL_OK")
</pallas_src>

<mosaic_0001>
module attributes {stable_mosaic.version = 11 : i64} {
  func.func @_ffn_kernel(%arg0: i32, %arg1: i32, %arg2: memref<8xi32, #tpu.memory_space<smem>>, %arg3: memref<256x128xf32, #tpu.memory_space<any>>, %arg4: memref<128x128xf32, #tpu.memory_space<vmem>>, %arg5: memref<1x128xf32, #tpu.memory_space<vmem>>, %arg6: memref<128x128xf32, #tpu.memory_space<vmem>>, %arg7: memref<1x128xf32, #tpu.memory_space<vmem>>, %arg8: memref<128x128xf32, #tpu.memory_space<vmem>>, %arg9: memref<1x128xf32, #tpu.memory_space<vmem>>, %arg10: memref<128x256xf32, #tpu.memory_space<vmem>>, %arg11: memref<1x256xf32, #tpu.memory_space<vmem>>, %arg12: memref<8x256xf32, #tpu.memory_space<vmem>>, %arg13: memref<8x128xf32, #tpu.memory_space<vmem>>, %arg14: memref<8x128xf32, #tpu.memory_space<vmem>>, %arg15: memref<!tpu.dma_semaphore, #tpu.memory_space<semaphore_mem>>) attributes {dimension_semantics = [#tpu.dimension_semantics<parallel>, #tpu.dimension_semantics<arbitrary>], iteration_bounds = array<i64: 1, 1>, scalar_prefetch = 1 : i64, scratch_operands = 3 : i64, tpu.core_type = #tpu.core_type<tc>, window_params = [{}, {pipeline_mode = #tpu.pipeline_mode<synchronous>, transform_indices = @transform_1, window_bounds = array<i64: 128, 128>}, {pipeline_mode = #tpu.pipeline_mode<synchronous>, transform_indices = @transform_2, window_bounds = array<i64: 1, 128>}, {pipeline_mode = #tpu.pipeline_mode<synchronous>, transform_indices = @transform_3, window_bounds = array<i64: 128, 128>}, {pipeline_mode = #tpu.pipeline_mode<synchronous>, transform_indices = @transform_4, window_bounds = array<i64: 1, 128>}, {pipeline_mode = #tpu.pipeline_mode<synchronous>, transform_indices = @transform_5, window_bounds = array<i64: 128, 128>}, {pipeline_mode = #tpu.pipeline_mode<synchronous>, transform_indices = @transform_6, window_bounds = array<i64: 1, 128>}, {transform_indices = @transform_7, window_bounds = array<i64: 128, 256>}, {transform_indices = @transform_8, window_bounds = array<i64: 1, 256>}, {transform_indices = @transform_9, window_bounds = array<i64: 8, 256>}]} {
    %c0_i32 = arith.constant 0 : i32
    %0 = arith.cmpi eq, %arg1, %c0_i32 : i32
    %1 = arith.extui %0 : i1 to i32
    %c0_i32_0 = arith.constant 0 : i32
    %2 = arith.cmpi ne, %1, %c0_i32_0 : i32
    scf.if %2 {
      %c8_i32 = arith.constant 8 : i32
      %10 = arith.muli %arg0, %c8_i32 : i32
      %c0_i32_8 = arith.constant 0 : i32
      %c8_i32_9 = arith.constant 8 : i32
      %11 = arith.addi %c0_i32_8, %c8_i32_9 : i32
      %c1_i32 = arith.constant 1 : i32
      scf.for %arg16 = %c0_i32_8 to %11 step %c1_i32  : i32 {
        %c1_i32_36 = arith.constant 1 : i32
        %36 = arith.muli %arg16, %c1_i32_36 : i32
        %c0_i32_37 = arith.constant 0 : i32
        %37 = arith.addi %c0_i32_37, %36 : i32
        %38 = arith.addi %10, %37 : i32
        %39 = arith.index_cast %38 : i32 to index
        %40 = memref.load %arg2[%39] : memref<8xi32, #tpu.memory_space<smem>>
        %c0_i32_38 = arith.constant 0 : i32
        %41 = tpu.memref_slice %arg3[%40, %c0_i32_38] : memref<256x128xf32, #tpu.memory_space<any>> -> memref<1x128xf32, #tpu.memory_space<any>>
        %42 = tpu.memref_squeeze %41 : memref<1x128xf32, #tpu.memory_space<any>> -> memref<128xf32, #tpu.memory_space<any>>
        %c0_i32_39 = arith.constant 0 : i32
        %43 = tpu.memref_slice %arg13[%37, %c0_i32_39] : memref<8x128xf32, #tpu.memory_space<vmem>> -> memref<1x128xf32, #tpu.memory_space<vmem>>
        %44 = tpu.memref_squeeze %43 : memref<1x128xf32, #tpu.memory_space<vmem>> -> memref<128xf32, #tpu.memory_space<vmem>>
        tpu.enqueue_dma source(%42 : memref<128xf32, #tpu.memory_space<any>>) target(%44 : memref<128xf32, #tpu.memory_space<vmem>>) target_semaphore(%arg15 : memref<!tpu.dma_semaphore, #tpu.memory_space<semaphore_mem>>)
      }
      %c8_i32_10 = arith.constant 8 : i32
      %c0_i32_11 = arith.constant 0 : i32
      %c8_i32_12 = arith.constant 8 : i32
      %12 = arith.addi %c0_i32_11, %c8_i32_12 : i32
      %c1_i32_13 = arith.constant 1 : i32
      scf.for %arg16 = %c0_i32_11 to %12 step %c1_i32_13  : i32 {
        %c0_i32_36 = arith.constant 0 : i32
        %c0_i32_37 = arith.constant 0 : i32
        %c0_i32_38 = arith.constant 0 : i32
        %36 = tpu.memref_slice %arg3[%c0_i32_36, %c0_i32_38] : memref<256x128xf32, #tpu.memory_space<any>> -> memref<1x128xf32, #tpu.memory_space<any>>
        %37 = tpu.memref_squeeze %36 : memref<1x128xf32, #tpu.memory_space<any>> -> memref<128xf32, #tpu.memory_space<any>>
        %c0_i32_39 = arith.constant 0 : i32
        %38 = tpu.memref_slice %arg13[%c0_i32_37, %c0_i32_39] : memref<8x128xf32, #tpu.memory_space<vmem>> -> memref<1x128xf32, #tpu.memory_space<vmem>>
        %39 = tpu.memref_squeeze %38 : memref<1x128xf32, #tpu.memory_space<vmem>> -> memref<128xf32, #tpu.memory_space<vmem>>
        tpu.wait_dma2 semaphore(%arg15 : memref<!tpu.dma_semaphore, #tpu.memory_space<semaphore_mem>>) src(%37 : memref<128xf32, #tpu.memory_space<any>>) dst(%39 : memref<128xf32, #tpu.memory_space<vmem>>)
      }
      %c0_14 = arith.constant 0 : index
      %c0_15 = arith.constant 0 : index
      %13 = vector.load %arg13[%c0_14, %c0_15] : memref<8x128xf32, #tpu.memory_space<vmem>>, vector<8x128xf32>
      %c0_16 = arith.constant 0 : index
      %c0_17 = arith.constant 0 : index
      %14 = vector.load %arg4[%c0_16, %c0_17] : memref<128x128xf32, #tpu.memory_space<vmem>>, vector<128x128xf32>
      %cst_18 = arith.constant dense<0.000000e+00> : vector<8x128xf32>
      %15 = tpu.matmul %13, %14, %cst_18 {dimension_numbers = #tpu.dot_dimension_numbers<[1], [0], [0], [1], [0, 0, 1, 1], [], []>, precision = #tpu.contract_precision<fp32>} : vector<8x128xf32>, vector<128x128xf32>, vector<8x128xf32> -> vector<8x128xf32>
      %c0_19 = arith.constant 0 : index
      %c0_20 = arith.constant 0 : index
      %16 = vector.load %arg5[%c0_19, %c0_20] : memref<1x128xf32, #tpu.memory_space<vmem>>, vector<1x128xf32>
      %17 = vector.broadcast %16 : vector<1x128xf32> to vector<8x128xf32>
      %18 = arith.addf %15, %17 : vector<8x128xf32>
      %cst_21 = arith.constant 0.000000e+00 : f32
      %19 = vector.broadcast %cst_21 : f32 to vector<8x128xf32>
      %20 = arith.maximumf %18, %19 : vector<8x128xf32>
      %c0_22 = arith.constant 0 : index
      %c0_23 = arith.constant 0 : index
      %21 = vector.load %arg6[%c0_22, %c0_23] : memref<128x128xf32, #tpu.memory_space<vmem>>, vector<128x128xf32>
      %cst_24 = arith.constant dense<0.000000e+00> : vector<8x128xf32>
      %22 = tpu.matmul %20, %21, %cst_24 {dimension_numbers = #tpu.dot_dimension_numbers<[1], [0], [0], [1], [0, 0, 1, 1], [], []>, precision = #tpu.contract_precision<fp32>} : vector<8x128xf32>, vector<128x128xf32>, vector<8x128xf32> -> vector<8x128xf32>
      %c0_25 = arith.constant 0 : index
      %c0_26 = arith.constant 0 : index
      %23 = vector.load %arg7[%c0_25, %c0_26] : memref<1x128xf32, #tpu.memory_space<vmem>>, vector<1x128xf32>
      %24 = vector.broadcast %23 : vector<1x128xf32> to vector<8x128xf32>
      %25 = arith.addf %22, %24 : vector<8x128xf32>
      %cst_27 = arith.constant 0.000000e+00 : f32
      %26 = vector.broadcast %cst_27 : f32 to vector<8x128xf32>
      %27 = arith.maximumf %25, %26 : vector<8x128xf32>
      %c0_28 = arith.constant 0 : index
      %c0_29 = arith.constant 0 : index
      %28 = vector.load %arg8[%c0_28, %c0_29] : memref<128x128xf32, #tpu.memory_space<vmem>>, vector<128x128xf32>
      %cst_30 = arith.constant dense<0.000000e+00> : vector<8x128xf32>
      %29 = tpu.matmul %27, %28, %cst_30 {dimension_numbers = #tpu.dot_dimension_numbers<[1], [0], [0], [1], [0, 0, 1, 1], [], []>, precision = #tpu.contract_precision<fp32>} : vector<8x128xf32>, vector<128x128xf32>, vector<8x128xf32> -> vector<8x128xf32>
      %c0_31 = arith.constant 0 : index
      %c0_32 = arith.constant 0 : index
      %30 = vector.load %arg9[%c0_31, %c0_32] : memref<1x128xf32, #tpu.memory_space<vmem>>, vector<1x128xf32>
      %31 = vector.broadcast %30 : vector<1x128xf32> to vector<8x128xf32>
      %32 = arith.addf %29, %31 : vector<8x128xf32>
      %cst_33 = arith.constant 0.000000e+00 : f32
      %33 = vector.broadcast %cst_33 : f32 to vector<8x128xf32>
      %34 = arith.maximumf %32, %33 : vector<8x128xf32>
      %c0_34 = arith.constant 0 : index
      %c0_35 = arith.constant 0 : index
      %35 = vector.load %arg14[%c0_34, %c0_35] : memref<8x128xf32, #tpu.memory_space<vmem>>, vector<8x128xf32>
      tpu.vector_store %arg14[%c0_34, %c0_35], %34 {strides = array<i32>} : memref<8x128xf32, #tpu.memory_space<vmem>>, vector<8x128xf32>,
    } else {
    }
    %c0 = arith.constant 0 : index
    %c0_1 = arith.constant 0 : index
    %3 = vector.load %arg14[%c0, %c0_1] : memref<8x128xf32, #tpu.memory_space<vmem>>, vector<8x128xf32>
    %c0_2 = arith.constant 0 : index
    %c0_3 = arith.constant 0 : index
    %4 = vector.load %arg10[%c0_2, %c0_3] : memref<128x256xf32, #tpu.memory_space<vmem>>, vector<128x256xf32>
    %cst = arith.constant dense<0.000000e+00> : vector<8x256xf32>
    %5 = tpu.matmul %3, %4, %cst {dimension_numbers = #tpu.dot_dimension_numbers<[1], [0], [0], [1], [0, 0, 1, 1], [], []>, precision = #tpu.contract_precision<fp32>} : vector<8x128xf32>, vector<128x256xf32>, vector<8x256xf32> -> vector<8x256xf32>
    %c0_4 = arith.constant 0 : index
    %c0_5 = arith.constant 0 : index
    %6 = vector.load %arg11[%c0_4, %c0_5] : memref<1x256xf32, #tpu.memory_space<vmem>>, vector<1x256xf32>
    %7 = vector.broadcast %6 : vector<1x256xf32> to vector<8x256xf32>
    %8 = arith.addf %5, %7 : vector<8x256xf32>
    %c0_6 = arith.constant 0 : index
    %c0_7 = arith.constant 0 : index
    %9 = vector.load %arg12[%c0_6, %c0_7] : memref<8x256xf32, #tpu.memory_space<vmem>>, vector<8x256xf32>
    tpu.vector_store %arg12[%c0_6, %c0_7], %8 {strides = array<i32>} : memref<8x256xf32, #tpu.memory_space<vmem>>, vector<8x256xf32>,
    return
  }
  func.func @transform_1(%arg0: i32, %arg1: i32, %arg2: memref<8xi32, #tpu.memory_space<smem>>) -> (i32, i32) {
    %c0_i32 = arith.constant 0 : i32
    %c0_i32_0 = arith.constant 0 : i32
    %c0_i32_1 = arith.constant 0 : i32
    return %c0_i32, %c0_i32_0 : i32, i32
  }
  func.func @transform_2(%arg0: i32, %arg1: i32, %arg2: memref<8xi32, #tpu.memory_space<smem>>) -> (i32, i32) {
    %c0_i32 = arith.constant 0 : i32
    %c0_i32_0 = arith.constant 0 : i32
    %c0_i32_1 = arith.constant 0 : i32
    return %c0_i32, %c0_i32_0 : i32, i32
  }
  func.func @transform_3(%arg0: i32, %arg1: i32, %arg2: memref<8xi32, #tpu.memory_space<smem>>) -> (i32, i32) {
    %c0_i32 = arith.constant 0 : i32
    %c0_i32_0 = arith.constant 0 : i32
    %c0_i32_1 = arith.constant 0 : i32
    return %c0_i32, %c0_i32_0 : i32, i32
  }
  func.func @transform_4(%arg0: i32, %arg1: i32, %arg2: memref<8xi32, #tpu.memory_space<smem>>) -> (i32, i32) {
    %c0_i32 = arith.constant 0 : i32
    %c0_i32_0 = arith.constant 0 : i32
    %c0_i32_1 = arith.constant 0 : i32
    return %c0_i32, %c0_i32_0 : i32, i32
  }
  func.func @transform_5(%arg0: i32, %arg1: i32, %arg2: memref<8xi32, #tpu.memory_space<smem>>) -> (i32, i32) {
    %c0_i32 = arith.constant 0 : i32
    %c0_i32_0 = arith.constant 0 : i32
    %c0_i32_1 = arith.constant 0 : i32
    return %c0_i32, %c0_i32_0 : i32, i32
  }
  func.func @transform_6(%arg0: i32, %arg1: i32, %arg2: memref<8xi32, #tpu.memory_space<smem>>) -> (i32, i32) {
    %c0_i32 = arith.constant 0 : i32
    %c0_i32_0 = arith.constant 0 : i32
    %c0_i32_1 = arith.constant 0 : i32
    return %c0_i32, %c0_i32_0 : i32, i32
  }
  func.func @transform_7(%arg0: i32, %arg1: i32, %arg2: memref<8xi32, #tpu.memory_space<smem>>) -> (i32, i32) {
    %c0_i32 = arith.constant 0 : i32
    %c0_i32_0 = arith.constant 0 : i32
    return %c0_i32, %arg1 : i32, i32
  }
  func.func @transform_8(%arg0: i32, %arg1: i32, %arg2: memref<8xi32, #tpu.memory_space<smem>>) -> (i32, i32) {
    %c0_i32 = arith.constant 0 : i32
    %c0_i32_0 = arith.constant 0 : i32
    return %c0_i32, %arg1 : i32, i32
  }
  func.func @transform_9(%arg0: i32, %arg1: i32, %arg2: memref<8xi32, #tpu.memory_space<smem>>) -> (i32, i32) {
    %c0_i32 = arith.constant 0 : i32
    return %arg0, %arg1 : i32, i32
  }
}

module attributes {stable_mosaic.version = 11 : i64} {
  func.func @_ffn_kernel(%arg0: i32, %arg1: i32, %arg2: memref<8xi32, #tpu.memory_space<smem>>, %arg3: memref<256x128xf32, #tpu.memory_space<any>>, %arg4: memref<128x128xf32, #tpu.memory_space<vmem>>, %arg5: memref<1x128xf32, #tpu.memory_space<vmem>>, %arg6: memref<128x128xf32, #tpu.memory_space<vmem>>, %arg7: memref<1x128xf32, #tpu.memory_space<vmem>>, %arg8: memref<128x128xf32, #tpu.memory_space<vmem>>, %arg9: memref<1x128xf32, #tpu.memory_space<vmem>>, %arg10: memref<128x256xf32, #tpu.memory_space<vmem>>, %arg11: memref<1x256xf32, #tpu.memory_space<vmem>>, %arg12: memref<8x256xf32, #tpu.memory_space<vmem>>, %arg13: memref<8x128xf32, #tpu.memory_space<vmem>>, %arg14: memref<8x128xf32, #tpu.memory_space<vmem>>, %arg15: memref<!tpu.dma_semaphore, #tpu.memory_space<semaphore_mem>>) attributes {dimension_semantics = [#tpu.dimension_semantics<parallel>, #tpu.dimension_semantics<arbitrary>], iteration_bounds = array<i64: 1, 1>, scalar_prefetch = 1 : i64, scratch_operands = 3 : i64, tpu.core_type = #tpu.core_type<tc>, window_params = [{}, {pipeline_mode = #tpu.pipeline_mode<synchronous>, transform_indices = @transform_1, window_bounds = array<i64: 128, 128>}, {pipeline_mode = #tpu.pipeline_mode<synchronous>, transform_indices = @transform_2, window_bounds = array<i64: 1, 128>}, {pipeline_mode = #tpu.pipeline_mode<synchronous>, transform_indices = @transform_3, window_bounds = array<i64: 128, 128>}, {pipeline_mode = #tpu.pipeline_mode<synchronous>, transform_indices = @transform_4, window_bounds = array<i64: 1, 128>}, {pipeline_mode = #tpu.pipeline_mode<synchronous>, transform_indices = @transform_5, window_bounds = array<i64: 128, 128>}, {pipeline_mode = #tpu.pipeline_mode<synchronous>, transform_indices = @transform_6, window_bounds = array<i64: 1, 128>}, {transform_indices = @transform_7, window_bounds = array<i64: 128, 256>}, {transform_indices = @transform_8, window_bounds = array<i64: 1, 256>}, {transform_indices = @transform_9, window_bounds = array<i64: 8, 256>}]} {
    %c0_i32 = arith.constant 0 : i32
    %0 = arith.cmpi eq, %arg1, %c0_i32 : i32
    %1 = arith.extui %0 : i1 to i32
    %c0_i32_0 = arith.constant 0 : i32
    %2 = arith.cmpi ne, %1, %c0_i32_0 : i32
    scf.if %2 {
      %c8_i32 = arith.constant 8 : i32
      %10 = arith.muli %arg0, %c8_i32 : i32
      %c0_i32_8 = arith.constant 0 : i32
      %c8_i32_9 = arith.constant 8 : i32
      %11 = arith.addi %c0_i32_8, %c8_i32_9 : i32
      %c1_i32 = arith.constant 1 : i32
      scf.for %arg16 = %c0_i32_8 to %11 step %c1_i32  : i32 {
        %c1_i32_36 = arith.constant 1 : i32
        %36 = arith.muli %arg16, %c1_i32_36 : i32
        %c0_i32_37 = arith.constant 0 : i32
        %37 = arith.addi %c0_i32_37, %36 : i32
        %38 = arith.addi %10, %37 : i32
        %39 = arith.index_cast %38 : i32 to index
        %40 = memref.load %arg2[%39] : memref<8xi32, #tpu.memory_space<smem>>
        %c0_i32_38 = arith.constant 0 : i32
        %41 = tpu.memref_slice %arg3[%40, %c0_i32_38] : memref<256x128xf32, #tpu.memory_space<any>> -> memref<1x128xf32, #tpu.memory_space<any>>
        %42 = tpu.memref_squeeze %41 : memref<1x128xf32, #tpu.memory_space<any>> -> memref<128xf32, #tpu.memory_space<any>>
        %c0_i32_39 = arith.constant 0 : i32
        %43 = tpu.memref_slice %arg13[%37, %c0_i32_39] : memref<8x128xf32, #tpu.memory_space<vmem>> -> memref<1x128xf32, #tpu.memory_space<vmem>>
        %44 = tpu.memref_squeeze %43 : memref<1x128xf32, #tpu.memory_space<vmem>> -> memref<128xf32, #tpu.memory_space<vmem>>
        tpu.enqueue_dma source(%42 : memref<128xf32, #tpu.memory_space<any>>) target(%44 : memref<128xf32, #tpu.memory_space<vmem>>) target_semaphore(%arg15 : memref<!tpu.dma_semaphore, #tpu.memory_space<semaphore_mem>>)
      }
      %c8_i32_10 = arith.constant 8 : i32
      %c0_i32_11 = arith.constant 0 : i32
      %c8_i32_12 = arith.constant 8 : i32
      %12 = arith.addi %c0_i32_11, %c8_i32_12 : i32
      %c1_i32_13 = arith.constant 1 : i32
      scf.for %arg16 = %c0_i32_11 to %12 step %c1_i32_13  : i32 {
        %c0_i32_36 = arith.constant 0 : i32
        %c0_i32_37 = arith.constant 0 : i32
        %c0_i32_38 = arith.constant 0 : i32
        %36 = tpu.memref_slice %arg3[%c0_i32_36, %c0_i32_38] : memref<256x128xf32, #tpu.memory_space<any>> -> memref<1x128xf32, #tpu.memory_space<any>>
        %37 = tpu.memref_squeeze %36 : memref<1x128xf32, #tpu.memory_space<any>> -> memref<128xf32, #tpu.memory_space<any>>
        %c0_i32_39 = arith.constant 0 : i32
        %38 = tpu.memref_slice %arg13[%c0_i32_37, %c0_i32_39] : memref<8x128xf32, #tpu.memory_space<vmem>> -> memref<1x128xf32, #tpu.memory_space<vmem>>
        %39 = tpu.memref_squeeze %38 : memref<1x128xf32, #tpu.memory_space<vmem>> -> memref<128xf32, #tpu.memory_space<vmem>>
        tpu.wait_dma2 semaphore(%arg15 : memref<!tpu.dma_semaphore, #tpu.memory_space<semaphore_mem>>) src(%37 : memref<128xf32, #tpu.memory_space<any>>) dst(%39 : memref<128xf32, #tpu.memory_space<vmem>>)
      }
      %c0_14 = arith.constant 0 : index
      %c0_15 = arith.constant 0 : index
      %13 = vector.load %arg13[%c0_14, %c0_15] : memref<8x128xf32, #tpu.memory_space<vmem>>, vector<8x128xf32>
      %c0_16 = arith.constant 0 : index
      %c0_17 = arith.constant 0 : index
      %14 = vector.load %arg4[%c0_16, %c0_17] : memref<128x128xf32, #tpu.memory_space<vmem>>, vector<128x128xf32>
      %cst_18 = arith.constant dense<0.000000e+00> : vector<8x128xf32>
      %15 = tpu.matmul %13, %14, %cst_18 {dimension_numbers = #tpu.dot_dimension_numbers<[1], [0], [0], [1], [0, 0, 1, 1], [], []>, precision = #tpu.contract_precision<fp32>} : vector<8x128xf32>, vector<128x128xf32>, vector<8x128xf32> -> vector<8x128xf32>
      %c0_19 = arith.constant 0 : index
      %c0_20 = arith.constant 0 : index
      %16 = vector.load %arg5[%c0_19, %c0_20] : memref<1x128xf32, #tpu.memory_space<vmem>>, vector<1x128xf32>
      %17 = vector.broadcast %16 : vector<1x128xf32> to vector<8x128xf32>
      %18 = arith.addf %15, %17 : vector<8x128xf32>
      %cst_21 = arith.constant 0.000000e+00 : f32
      %19 = vector.broadcast %cst_21 : f32 to vector<8x128xf32>
      %20 = arith.maximumf %18, %19 : vector<8x128xf32>
      %c0_22 = arith.constant 0 : index
      %c0_23 = arith.constant 0 : index
      %21 = vector.load %arg6[%c0_22, %c0_23] : memref<128x128xf32, #tpu.memory_space<vmem>>, vector<128x128xf32>
      %cst_24 = arith.constant dense<0.000000e+00> : vector<8x128xf32>
      %22 = tpu.matmul %20, %21, %cst_24 {dimension_numbers = #tpu.dot_dimension_numbers<[1], [0], [0], [1], [0, 0, 1, 1], [], []>, precision = #tpu.contract_precision<fp32>} : vector<8x128xf32>, vector<128x128xf32>, vector<8x128xf32> -> vector<8x128xf32>
      %c0_25 = arith.constant 0 : index
      %c0_26 = arith.constant 0 : index
      %23 = vector.load %arg7[%c0_25, %c0_26] : memref<1x128xf32, #tpu.memory_space<vmem>>, vector<1x128xf32>
      %24 = vector.broadcast %23 : vector<1x128xf32> to vector<8x128xf32>
      %25 = arith.addf %22, %24 : vector<8x128xf32>
      %cst_27 = arith.constant 0.000000e+00 : f32
      %26 = vector.broadcast %cst_27 : f32 to vector<8x128xf32>
      %27 = arith.maximumf %25, %26 : vector<8x128xf32>
      %c0_28 = arith.constant 0 : index
      %c0_29 = arith.constant 0 : index
      %28 = vector.load %arg8[%c0_28, %c0_29] : memref<128x128xf32, #tpu.memory_space<vmem>>, vector<128x128xf32>
      %cst_30 = arith.constant dense<0.000000e+00> : vector<8x128xf32>
      %29 = tpu.matmul %27, %28, %cst_30 {dimension_numbers = #tpu.dot_dimension_numbers<[1], [0], [0], [1], [0, 0, 1, 1], [], []>, precision = #tpu.contract_precision<fp32>} : vector<8x128xf32>, vector<128x128xf32>, vector<8x128xf32> -> vector<8x128xf32>
      %c0_31 = arith.constant 0 : index
      %c0_32 = arith.constant 0 : index
      %30 = vector.load %arg9[%c0_31, %c0_32] : memref<1x128xf32, #tpu.memory_space<vmem>>, vector<1x128xf32>
      %31 = vector.broadcast %30 : vector<1x128xf32> to vector<8x128xf32>
      %32 = arith.addf %29, %31 : vector<8x128xf32>
      %cst_33 = arith.constant 0.000000e+00 : f32
      %33 = vector.broadcast %cst_33 : f32 to vector<8x128xf32>
      %34 = arith.maximumf %32, %33 : vector<8x128xf32>
      %c0_34 = arith.constant 0 : index
      %c0_35 = arith.constant 0 : index
      %35 = vector.load %arg14[%c0_34, %c0_35] : memref<8x128xf32, #tpu.memory_space<vmem>>, vector<8x128xf32>
      tpu.vector_store %arg14[%c0_34, %c0_35], %34 {strides = array<i32>} : memref<8x128xf32, #tpu.memory_space<vmem>>, vector<8x128xf32>,
    } else {
    }
    %c0 = arith.constant 0 : index
    %c0_1 = arith.constant 0 : index
    %3 = vector.load %arg14[%c0, %c0_1] : memref<8x128xf32, #tpu.memory_space<vmem>>, vector<8x128xf32>
    %c0_2 = arith.constant 0 : index
    %c0_3 = arith.constant 0 : index
    %4 = vector.load %arg10[%c0_2, %c0_3] : memref<128x256xf32, #tpu.memory_space<vmem>>, vector<128x256xf32>
    %cst = arith.constant dense<0.000000e+00> : vector<8x256xf32>
    %5 = tpu.matmul %3, %4, %cst {dimension_numbers = #tpu.dot_dimension_numbers<[1], [0], [0], [1], [0, 0, 1, 1], [], []>, precision = #tpu.contract_precision<fp32>} : vector<8x128xf32>, vector<128x256xf32>, vector<8x256xf32> -> vector<8x256xf32>
    %c0_4 = arith.constant 0 : index
    %c0_5 = arith.constant 0 : index
    %6 = vector.load %arg11[%c0_4, %c0_5] : memref<1x256xf32, #tpu.memory_space<vmem>>, vector<1x256xf32>
    %7 = vector.broadcast %6 : vector<1x256xf32> to vector<8x256xf32>
    %8 = arith.addf %5, %7 : vector<8x256xf32>
    %c0_6 = arith.constant 0 : index
    %c0_7 = arith.constant 0 : index
    %9 = vector.load %arg12[%c0_6, %c0_7] : memref<8x256xf32, #tpu.memory_space<vmem>>, vector<8x256xf32>
    tpu.vector_store %arg12[%c0_6, %c0_7], %8 {strides = array<i32>} : memref<8x256xf32, #tpu.memory_space<vmem>>, vector<8x256xf32>,
    return
  }
  func.func @transform_1(%arg0: i32, %arg1: i32, %arg2: memref<8xi32, #tpu.memory_space<smem>>) -> (i32, i32) {
    %c0_i32 = arith.constant 0 : i32
    %c0_i32_0 = arith.constant 0 : i32
    %c0_i32_1 = arith.constant 0 : i32
    return %c0_i32, %c0_i32_0 : i32, i32
  }
  func.func @transform_2(%arg0: i32, %arg1: i32, %arg2: memref<8xi32, #tpu.memory_space<smem>>) -> (i32, i32) {
    %c0_i32 = arith.constant 0 : i32
    %c0_i32_0 = arith.constant 0 : i32
    %c0_i32_1 = arith.constant 0 : i32
    return %c0_i32, %c0_i32_0 : i32, i32
  }
  func.func @transform_3(%arg0: i32, %arg1: i32, %arg2: memref<8xi32, #tpu.memory_space<smem>>) -> (i32, i32) {
    %c0_i32 = arith.constant 0 : i32
    %c0_i32_0 = arith.constant 0 : i32
    %c0_i32_1 = arith.constant 0 : i32
    return %c0_i32, %c0_i32_0 : i32, i32
  }
  func.func @transform_4(%arg0: i32, %arg1: i32, %arg2: memref<8xi32, #tpu.memory_space<smem>>) -> (i32, i32) {
    %c0_i32 = arith.constant 0 : i32
    %c0_i32_0 = arith.constant 0 : i32
    %c0_i32_1 = arith.constant 0 : i32
    return %c0_i32, %c0_i32_0 : i32, i32
  }
  func.func @transform_5(%arg0: i32, %arg1: i32, %arg2: memref<8xi32, #tpu.memory_space<smem>>) -> (i32, i32) {
    %c0_i32 = arith.constant 0 : i32
    %c0_i32_0 = arith.constant 0 : i32
    %c0_i32_1 = arith.constant 0 : i32
    return %c0_i32, %c0_i32_0 : i32, i32
  }
  func.func @transform_6(%arg0: i32, %arg1: i32, %arg2: memref<8xi32, #tpu.memory_space<smem>>) -> (i32, i32) {
    %c0_i32 = arith.constant 0 : i32
    %c0_i32_0 = arith.constant 0 : i32
    %c0_i32_1 = arith.constant 0 : i32
    return %c0_i32, %c0_i32_0 : i32, i32
  }
  func.func @transform_7(%arg0: i32, %arg1: i32, %arg2: memref<8xi32, #tpu.memory_space<smem>>) -> (i32, i32) {
    %c0_i32 = arith.constant 0 : i32
    %c0_i32_0 = arith.constant 0 : i32
    return %c0_i32, %arg1 : i32, i32
  }
  func.func @transform_8(%arg0: i32, %arg1: i32, %arg2: memref<8xi32, #tpu.memory_space<smem>>) -> (i32, i32) {
    %c0_i32 = arith.constant 0 : i32
    %c0_i32_0 = arith.constant 0 : i32
    return %c0_i32, %arg1 : i32, i32
  }
  func.func @transform_9(%arg0: i32, %arg1: i32, %arg2: memref<8xi32, #tpu.memory_space<smem>>) -> (i32, i32) {
    %c0_i32 = arith.constant 0 : i32
    return %arg0, %arg1 : i32, i32
  }
}

module attributes {stable_mosaic.version = 11 : i64} {
  func.func @_ffn_kernel(%arg0: i32, %arg1: i32, %arg2: memref<8xi32, #tpu.memory_space<smem>>, %arg3: memref<256x128xf32, #tpu.memory_space<any>>, %arg4: memref<128x128xf32, #tpu.memory_space<vmem>>, %arg5: memref<1x128xf32, #tpu.memory_space<vmem>>, %arg6: memref<128x128xf32, #tpu.memory_space<vmem>>, %arg7: memref<1x128xf32, #tpu.memory_space<vmem>>, %arg8: memref<128x128xf32, #tpu.memory_space<vmem>>, %arg9: memref<1x128xf32, #tpu.memory_space<vmem>>, %arg10: memref<128x256xf32, #tpu.memory_space<vmem>>, %arg11: memref<1x256xf32, #tpu.memory_space<vmem>>, %arg12: memref<8x256xf32, #tpu.memory_space<vmem>>, %arg13: memref<8x128xf32, #tpu.memory_space<vmem>>, %arg14: memref<8x128xf32, #tpu.memory_space<vmem>>, %arg15: memref<!tpu.dma_semaphore, #tpu.memory_space<semaphore_mem>>) attributes {dimension_semantics = [#tpu.dimension_semantics<parallel>, #tpu.dimension_semantics<arbitrary>], iteration_bounds = array<i64: 1, 1>, scalar_prefetch = 1 : i64, scratch_operands = 3 : i64, tpu.core_type = #tpu.core_type<tc>, window_params = [{}, {pipeline_mode = #tpu.pipeline_mode<synchronous>, transform_indices = @transform_1, window_bounds = array<i64: 128, 128>}, {pipeline_mode = #tpu.pipeline_mode<synchronous>, transform_indices = @transform_2, window_bounds = array<i64: 1, 128>}, {pipeline_mode = #tpu.pipeline_mode<synchronous>, transform_indices = @transform_3, window_bounds = array<i64: 128, 128>}, {pipeline_mode = #tpu.pipeline_mode<synchronous>, transform_indices = @transform_4, window_bounds = array<i64: 1, 128>}, {pipeline_mode = #tpu.pipeline_mode<synchronous>, transform_indices = @transform_5, window_bounds = array<i64: 128, 128>}, {pipeline_mode = #tpu.pipeline_mode<synchronous>, transform_indices = @transform_6, window_bounds = array<i64: 1, 128>}, {transform_indices = @transform_7, window_bounds = array<i64: 128, 256>}, {transform_indices = @transform_8, window_bounds = array<i64: 1, 256>}, {transform_indices = @transform_9, window_bounds = array<i64: 8, 256>}]} {
    %c0_i32 = arith.constant 0 : i32
    %0 = arith.cmpi eq, %arg1, %c0_i32 : i32
    %1 = arith.extui %0 : i1 to i32
    %c0_i32_0 = arith.constant 0 : i32
    %2 = arith.cmpi ne, %1, %c0_i32_0 : i32
    scf.if %2 {
      %c8_i32 = arith.constant 8 : i32
      %10 = arith.muli %arg0, %c8_i32 : i32
      %c0_i32_8 = arith.constant 0 : i32
      %c8_i32_9 = arith.constant 8 : i32
      %11 = arith.addi %c0_i32_8, %c8_i32_9 : i32
      %c1_i32 = arith.constant 1 : i32
      scf.for %arg16 = %c0_i32_8 to %11 step %c1_i32  : i32 {
        %c1_i32_36 = arith.constant 1 : i32
        %36 = arith.muli %arg16, %c1_i32_36 : i32
        %c0_i32_37 = arith.constant 0 : i32
        %37 = arith.addi %c0_i32_37, %36 : i32
        %38 = arith.addi %10, %37 : i32
        %39 = arith.index_cast %38 : i32 to index
        %40 = memref.load %arg2[%39] : memref<8xi32, #tpu.memory_space<smem>>
        %c0_i32_38 = arith.constant 0 : i32
        %41 = tpu.memref_slice %arg3[%40, %c0_i32_38] : memref<256x128xf32, #tpu.memory_space<any>> -> memref<1x128xf32, #tpu.memory_space<any>>
        %42 = tpu.memref_squeeze %41 : memref<1x128xf32, #tpu.memory_space<any>> -> memref<128xf32, #tpu.memory_space<any>>
        %c0_i32_39 = arith.constant 0 : i32
        %43 = tpu.memref_slice %arg13[%37, %c0_i32_39] : memref<8x128xf32, #tpu.memory_space<vmem>> -> memref<1x128xf32, #tpu.memory_space<vmem>>
        %44 = tpu.memref_squeeze %43 : memref<1x128xf32, #tpu.memory_space<vmem>> -> memref<128xf32, #tpu.memory_space<vmem>>
        tpu.enqueue_dma source(%42 : memref<128xf32, #tpu.memory_space<any>>) target(%44 : memref<128xf32, #tpu.memory_space<vmem>>) target_semaphore(%arg15 : memref<!tpu.dma_semaphore, #tpu.memory_space<semaphore_mem>>)
      }
      %c8_i32_10 = arith.constant 8 : i32
      %c0_i32_11 = arith.constant 0 : i32
      %c8_i32_12 = arith.constant 8 : i32
      %12 = arith.addi %c0_i32_11, %c8_i32_12 : i32
      %c1_i32_13 = arith.constant 1 : i32
      scf.for %arg16 = %c0_i32_11 to %12 step %c1_i32_13  : i32 {
        %c0_i32_36 = arith.constant 0 : i32
        %c0_i32_37 = arith.constant 0 : i32
        %c0_i32_38 = arith.constant 0 : i32
        %36 = tpu.memref_slice %arg3[%c0_i32_36, %c0_i32_38] : memref<256x128xf32, #tpu.memory_space<any>> -> memref<1x128xf32, #tpu.memory_space<any>>
        %37 = tpu.memref_squeeze %36 : memref<1x128xf32, #tpu.memory_space<any>> -> memref<128xf32, #tpu.memory_space<any>>
        %c0_i32_39 = arith.constant 0 : i32
        %38 = tpu.memref_slice %arg13[%c0_i32_37, %c0_i32_39] : memref<8x128xf32, #tpu.memory_space<vmem>> -> memref<1x128xf32, #tpu.memory_space<vmem>>
        %39 = tpu.memref_squeeze %38 : memref<1x128xf32, #tpu.memory_space<vmem>> -> memref<128xf32, #tpu.memory_space<vmem>>
        tpu.wait_dma2 semaphore(%arg15 : memref<!tpu.dma_semaphore, #tpu.memory_space<semaphore_mem>>) src(%37 : memref<128xf32, #tpu.memory_space<any>>) dst(%39 : memref<128xf32, #tpu.memory_space<vmem>>)
      }
      %c0_14 = arith.constant 0 : index
      %c0_15 = arith.constant 0 : index
      %13 = vector.load %arg13[%c0_14, %c0_15] : memref<8x128xf32, #tpu.memory_space<vmem>>, vector<8x128xf32>
      %c0_16 = arith.constant 0 : index
      %c0_17 = arith.constant 0 : index
      %14 = vector.load %arg4[%c0_16, %c0_17] : memref<128x128xf32, #tpu.memory_space<vmem>>, vector<128x128xf32>
      %cst_18 = arith.constant dense<0.000000e+00> : vector<8x128xf32>
      %15 = tpu.matmul %13, %14, %cst_18 {dimension_numbers = #tpu.dot_dimension_numbers<[1], [0], [0], [1], [0, 0, 1, 1], [], []>} : vector<8x128xf32>, vector<128x128xf32>, vector<8x128xf32> -> vector<8x128xf32>
      %c0_19 = arith.constant 0 : index
      %c0_20 = arith.constant 0 : index
      %16 = vector.load %arg5[%c0_19, %c0_20] : memref<1x128xf32, #tpu.memory_space<vmem>>, vector<1x128xf32>
      %17 = vector.broadcast %16 : vector<1x128xf32> to vector<8x128xf32>
      %18 = arith.addf %15, %17 : vector<8x128xf32>
      %cst_21 = arith.constant 0.000000e+00 : f32
      %19 = vector.broadcast %cst_21 : f32 to vector<8x128xf32>
      %20 = arith.maximumf %18, %19 : vector<8x128xf32>
      %c0_22 = arith.constant 0 : index
      %c0_23 = arith.constant 0 : index
      %21 = vector.load %arg6[%c0_22, %c0_23] : memref<128x128xf32, #tpu.memory_space<vmem>>, vector<128x128xf32>
      %cst_24 = arith.constant dense<0.000000e+00> : vector<8x128xf32>
      %22 = tpu.matmul %20, %21, %cst_24 {dimension_numbers = #tpu.dot_dimension_numbers<[1], [0], [0], [1], [0, 0, 1, 1], [], []>} : vector<8x128xf32>, vector<128x128xf32>, vector<8x128xf32> -> vector<8x128xf32>
      %c0_25 = arith.constant 0 : index
      %c0_26 = arith.constant 0 : index
      %23 = vector.load %arg7[%c0_25, %c0_26] : memref<1x128xf32, #tpu.memory_space<vmem>>, vector<1x128xf32>
      %24 = vector.broadcast %23 : vector<1x128xf32> to vector<8x128xf32>
      %25 = arith.addf %22, %24 : vector<8x128xf32>
      %cst_27 = arith.constant 0.000000e+00 : f32
      %26 = vector.broadcast %cst_27 : f32 to vector<8x128xf32>
      %27 = arith.maximumf %25, %26 : vector<8x128xf32>
      %c0_28 = arith.constant 0 : index
      %c0_29 = arith.constant 0 : index
      %28 = vector.load %arg8[%c0_28, %c0_29] : memref<128x128xf32, #tpu.memory_space<vmem>>, vector<128x128xf32>
      %cst_30 = arith.constant dense<0.000000e+00> : vector<8x128xf32>
      %29 = tpu.matmul %27, %28, %cst_30 {dimension_numbers = #tpu.dot_dimension_numbers<[1], [0], [0], [1], [0, 0, 1, 1], [], []>} : vector<8x128xf32>, vector<128x128xf32>, vector<8x128xf32> -> vector<8x128xf32>
      %c0_31 = arith.constant 0 : index
      %c0_32 = arith.constant 0 : index
      %30 = vector.load %arg9[%c0_31, %c0_32] : memref<1x128xf32, #tpu.memory_space<vmem>>, vector<1x128xf32>
      %31 = vector.broadcast %30 : vector<1x128xf32> to vector<8x128xf32>
      %32 = arith.addf %29, %31 : vector<8x128xf32>
      %cst_33 = arith.constant 0.000000e+00 : f32
      %33 = vector.broadcast %cst_33 : f32 to vector<8x128xf32>
      %34 = arith.maximumf %32, %33 : vector<8x128xf32>
      %c0_34 = arith.constant 0 : index
      %c0_35 = arith.constant 0 : index
      %35 = vector.load %arg14[%c0_34, %c0_35] : memref<8x128xf32, #tpu.memory_space<vmem>>, vector<8x128xf32>
      tpu.vector_store %arg14[%c0_34, %c0_35], %34 {strides = array<i32>} : memref<8x128xf32, #tpu.memory_space<vmem>>, vector<8x128xf32>,
    } else {
    }
    %c0 = arith.constant 0 : index
    %c0_1 = arith.constant 0 : index
    %3 = vector.load %arg14[%c0, %c0_1] : memref<8x128xf32, #tpu.memory_space<vmem>>, vector<8x128xf32>
    %c0_2 = arith.constant 0 : index
    %c0_3 = arith.constant 0 : index
    %4 = vector.load %arg10[%c0_2, %c0_3] : memref<128x256xf32, #tpu.memory_space<vmem>>, vector<128x256xf32>
    %cst = arith.constant dense<0.000000e+00> : vector<8x256xf32>
    %5 = tpu.matmul %3, %4, %cst {dimension_numbers = #tpu.dot_dimension_numbers<[1], [0], [0], [1], [0, 0, 1, 1], [], []>} : vector<8x128xf32>, vector<128x256xf32>, vector<8x256xf32> -> vector<8x256xf32>
    %c0_4 = arith.constant 0 : index
    %c0_5 = arith.constant 0 : index
    %6 = vector.load %arg11[%c0_4, %c0_5] : memref<1x256xf32, #tpu.memory_space<vmem>>, vector<1x256xf32>
    %7 = vector.broadcast %6 : vector<1x256xf32> to vector<8x256xf32>
    %8 = arith.addf %5, %7 : vector<8x256xf32>
    %c0_6 = arith.constant 0 : index
    %c0_7 = arith.constant 0 : index
    %9 = vector.load %arg12[%c0_6, %c0_7] : memref<8x256xf32, #tpu.memory_space<vmem>>, vector<8x256xf32>
    tpu.vector_store %arg12[%c0_6, %c0_7], %8 {strides = array<i32>} : memref<8x256xf32, #tpu.memory_space<vmem>>, vector<8x256xf32>,
    return
  }
  func.func @transform_1(%arg0: i32, %arg1: i32, %arg2: memref<8xi32, #tpu.memory_space<smem>>) -> (i32, i32) {
    %c0_i32 = arith.constant 0 : i32
    %c0_i32_0 = arith.constant 0 : i32
    %c0_i32_1 = arith.constant 0 : i32
    return %c0_i32, %c0_i32_0 : i32, i32
  }
  func.func @transform_2(%arg0: i32, %arg1: i32, %arg2: memref<8xi32, #tpu.memory_space<smem>>) -> (i32, i32) {
    %c0_i32 = arith.constant 0 : i32
    %c0_i32_0 = arith.constant 0 : i32
    %c0_i32_1 = arith.constant 0 : i32
    return %c0_i32, %c0_i32_0 : i32, i32
  }
  func.func @transform_3(%arg0: i32, %arg1: i32, %arg2: memref<8xi32, #tpu.memory_space<smem>>) -> (i32, i32) {
    %c0_i32 = arith.constant 0 : i32
    %c0_i32_0 = arith.constant 0 : i32
    %c0_i32_1 = arith.constant 0 : i32
    return %c0_i32, %c0_i32_0 : i32, i32
  }
  func.func @transform_4(%arg0: i32, %arg1: i32, %arg2: memref<8xi32, #tpu.memory_space<smem>>) -> (i32, i32) {
    %c0_i32 = arith.constant 0 : i32
    %c0_i32_0 = arith.constant 0 : i32
    %c0_i32_1 = arith.constant 0 : i32
    return %c0_i32, %c0_i32_0 : i32, i32
  }
  func.func @transform_5(%arg0: i32, %arg1: i32, %arg2: memref<8xi32, #tpu.memory_space<smem>>) -> (i32, i32) {
    %c0_i32 = arith.constant 0 : i32
    %c0_i32_0 = arith.constant 0 : i32
    %c0_i32_1 = arith.constant 0 : i32
    return %c0_i32, %c0_i32_0 : i32, i32
  }
  func.func @transform_6(%arg0: i32, %arg1: i32, %arg2: memref<8xi32, #tpu.memory_space<smem>>) -> (i32, i32) {
    %c0_i32 = arith.constant 0 : i32
    %c0_i32_0 = arith.constant 0 : i32
    %c0_i32_1 = arith.constant 0 : i32
    return %c0_i32, %c0_i32_0 : i32, i32
  }
  func.func @transform_7(%arg0: i32, %arg1: i32, %arg2: memref<8xi32, #tpu.memory_space<smem>>) -> (i32, i32) {
    %c0_i32 = arith.constant 0 : i32
    %c0_i32_0 = arith.constant 0 : i32
    return %c0_i32, %arg1 : i32, i32
  }
  func.func @transform_8(%arg0: i32, %arg1: i32, %arg2: memref<8xi32, #tpu.memory_space<smem>>) -> (i32, i32) {
    %c0_i32 = arith.constant 0 : i32
    %c0_i32_0 = arith.constant 0 : i32
    return %c0_i32, %arg1 : i32, i32
  }
  func.func @transform_9(%arg0: i32, %arg1: i32, %arg2: memref<8xi32, #tpu.memory_space<smem>>) -> (i32, i32) {
    %c0_i32 = arith.constant 0 : i32
    return %arg0, %arg1 : i32, i32
  }
}

</mosaic_0001>

<bundles_post_ra>
// kernel: tpu_custom_call.1
= control target key start
LH: loop header
LB: loop body
LE: loop exit
PB: predicated region body
PF: predicated region fallthrough
CT: control target
= control target key end

     0   :  { %s2201_s16 = smov [#allocation6]   ;;  %s3503_s0 = inlined_call_operand.hbm [shape: s32[8], index: 0, kind: input, shape index: {}]   ;;  %s3504_s1 = inlined_call_operand.hbm [shape: f32[256,128], index: 1, kind: input, shape index: {}]   ;;  %s3505_s2 = inlined_call_operand.hbm [shape: f32[128,128], index: 2, kind: input, shape index: {}]   ;;  %s3506_s3 = inlined_call_operand.vmem [shape: f32[1,128], index: 3, kind: input, shape index: {}]   ;;  %s3507_s4 = inlined_call_operand.hbm [shape: f32[128,128], index: 4, kind: input, shape index: {}]   ;;  %s3508_s5 = inlined_call_operand.vmem [shape: f32[1,128], index: 5, kind: input, shape index: {}]   ;;  %s3509_s6 = inlined_call_operand.hbm [shape: f32[128,128], index: 6, kind: input, shape index: {}]   ;;  %s3510_s7 = inlined_call_operand.vmem [shape: f32[1,128], index: 7, kind: input, shape index: {}]   ;;  %s3511_s8 = inlined_call_operand.hbm [shape: f32[128,256], index: 8, kind: input, shape index: {}]   ;;  %s3512_s9 = inlined_call_operand.vmem [shape: f32[1,256], index: 9, kind: input, shape index: {}]   ;;  %s3513_s10 = inlined_call_operand.hbm [shape: f32[8,256], index: 10, kind: output, shape index: {}]  }
   0x1   :  { %s16_s15 = sshll.u32 %s3503_s0, 4  ;;  %s17_s15 = int_to_ptr.hbm [resolvable:$true] %s16_s15 }
   0x2   :  { %19 = dma.hbm_to_smem %s17_s15, 16, %s2201_s16, [#allocation5] }
   0x3   :  { %2181 = dma.done.wait [#allocation5], 16 }
   0x4   :  { %2182 = vsyncadd [#allocation5], 4294967280 }
   0x5   :  { %22 = sfence }
   0x6   :  { %23 = vsyncpa [#allocation8], 0 }
   0x7   :  { %24 = vsyncpa [#allocation11], 0 }
   0x8   :  { %25 = vsyncpa [#allocation14], 0 }
   0x9   :  { %26 = vsyncpa [#allocation9], 0  ;;  %s46_s19 = sshll.u32 %s3507_s4, 4  ;;  %s2202_s20 = smov [#allocation10]   ;;  %s47_s19 = int_to_ptr.hbm [resolvable:$true] %s46_s19 }
   0xa   :  { %s48_s21 = sshll.u32 %s2202_s20, 4  ;;  %s31_s23 = sshll.u32 %s3505_s2, 4  ;;  %s49_s21 = int_to_ptr.vmem [resolvable:$true] %s48_s21  ;;  %s32_s23 = int_to_ptr.hbm [resolvable:$true] %s31_s23 }
   0xb   :  { %s2203_s24 = smov 128   ;;  %s2204_s25 = smov 8  }
   0xc   :  { %54 = dma.hbm_to_vmem [thread:$0]  %s47_s19, 2048, %s49_s21, [#allocation11], %s2203_s24, %s2203_s24, %s2204_s25  }
   0xd   :  { %s2205_s26 = smov [#allocation7]   ;;  %s61_s30 = sshll.u32 %s3509_s6, 4  ;;  %s62_s30 = int_to_ptr.hbm [resolvable:$true] %s61_s30 }
   0xe   :  { %s33_s27 = sshll.u32 %s2205_s26, 4  ;;  %s76_s12 = sshll.u32 %s3511_s8, 4  ;;  %s34_s27 = int_to_ptr.vmem [resolvable:$true] %s33_s27  ;;  %s77_s12 = int_to_ptr.hbm [resolvable:$true] %s76_s12 }
   0xf   :  { %39 = dma.hbm_to_vmem [thread:$0]  %s32_s23, 2048, %s34_s27, [#allocation8], %s2203_s24, %s2203_s24, %s2204_s25  }
  0x10   :  { %s2206_s13 = smov [#allocation12]   ;;  %s2207_s2 = smov [#allocation13]  }
  0x11   :  { %s63_s14 = sshll.u32 %s2206_s13, 4  ;;  %s78_s15 = sshll.u32 %s2207_s2, 4  ;;  %s64_s14 = int_to_ptr.vmem [resolvable:$true] %s63_s14  ;;  %s79_s15 = int_to_ptr.vmem [resolvable:$true] %s78_s15 }
  0x12   :  { %69 = dma.hbm_to_vmem [thread:$0]  %s62_s30, 2048, %s64_s14, [#allocation11], %s2203_s24, %s2203_s24, %s2204_s25  }
  0x13   :  { %s2208_s16 = smov 256   ;;  %s2209_s17 = smov 16  }
  0x14   :  { %84 = dma.hbm_to_vmem [thread:$0]  %s77_s12, 4096, %s79_s15, [#allocation14], %s2208_s16, %s2208_s16, %s2209_s17  }
  0x15   :  { %2183 = dma.done.wait [#allocation8], 2048  }
  0x16   :  { %2184 = vsyncadd [#allocation8], 4294965248 }
  0x17   :  { %2185 = dma.done.wait [#allocation11], 4096  }
  0x18   :  { %2186 = vsyncadd [#allocation11], 4294963200 }
  0x19   :  { %2187 = dma.done.wait [#allocation14], 4096  }
  0x1a   :  { %2188 = vsyncadd [#allocation14], 4294963200  ;;  %s2282_s6 = smov 0  }
  0x1b LB: > { %s115_s8 = sld [smem:[#allocation6 + %s2195_s6]]  ;;  %s117_s18 = scalar_lea.vmem [#allocation2], %s2195_s6  ;;  %s2195_s6 = sphi %s2282_s6, %s113_s6  }
  0x1c   : > { %s127_s19 = sshll.u32 %s117_s18, 4  ;;  %s2129_s27 = scalar_lea.hbm %s3504_s1, 256  ;;  %s128_s19 = int_to_ptr.vmem [resolvable:$true] %s127_s19 }
  0x21   : > { %s116_s22 = scalar_lea.hbm %s3504_s1, %s115_s8 }
  0x22   : > { %s125_s0 = sshll.u32 %s116_s22, 4  ;;  %s126_s0 = int_to_ptr.hbm [resolvable:$true] %s125_s0 }
  0x23   : > { %s2125_s23 = sshra.s32 %s126_s0, 4  ;;  %s2126_s23 = int_to_ptr.hbm [resolvable:$true] %s2125_s23 }
  0x24   : > { %s2127_s24 = scalar_lea.hbm %s2126_s23, 1  ;;  %p2130_p1 = scmp.lt.s32.totalorder %s2126_s23, %s3504_s1 }
  0x25   : > { %p2128_p0 = scmp.ne.s32.totalorder %s2126_s23, %s2127_s24  ;;  %p2131_p2 = scmp.lt.s32.totalorder %s2129_s27, %s2127_s24 }
  0x27   : > { %p2132_p3 = por %p2131_p2, %p2130_p1 }
  0x29   : > { %p2133_p4 = pnand %p2132_p3, %p2128_p0 }
  0x2b   : > { %2136 = shalt.err (!%p2133_p4)  }
  0x2c   : > { %s2137_s30 = sshra.s32 %s128_s19, 4  ;;  %s2210_s11 = smov [#allocation2]   ;;  %s2138_s30 = int_to_ptr.vmem [resolvable:$true] %s2137_s30 }
  0x2d   : > { %s2139_s4 = scalar_lea.vmem %s2138_s30, 1  ;;  %s2141_s12 = scalar_lea.vmem %s2210_s11, 8 }
  0x2e   : > { %p2140_p5 = scmp.ne.s32.totalorder %s2138_s30, %s2139_s4  ;;  %p2142_p6 = scmp.lt.s32.totalorder %s2138_s30, [#allocation2] }
  0x2f   : > { %p2143_p7 = scmp.lt.s32.totalorder %s2141_s12, %s2139_s4 }
  0x31   : > { %p2144_p8 = por %p2143_p7, %p2142_p6 }
  0x33   : > { %p2145_p9 = pnand %p2144_p8, %p2140_p5 }
  0x35   : > { %2148 = shalt.err (!%p2145_p9)  }
  0x36   : > { %130 = dma.hbm_to_vmem [thread:$0]  %s126_s0, 16, %s128_s19, [#allocation4] }
  0x37   : > { %s113_s6 = sadd.s32 1, %s2195_s6  }
  0x38   : > { %p110_p10 = scmp.ge.s32.totalorder %s113_s6, 8  }
  0x39   :  { %s2197_s13 = smov (%p110_p10), 0  }
  0x3a   :  { %112 = sbr.rel (!%p110_p10) target bundleno = 27 (0x1b), region = 92 }
  0x3f LB: > { %2189 = dma.done.wait [#allocation4], 16  ;;  %s2199_s13 = sphi %s2197_s13, %s136_s13  }
  0x40   : > { %2190 = vsyncadd [#allocation4], 4294967280  ;;  %s136_s13 = sadd.s32 1, %s2199_s13  }
  0x41   : > { %p133_p11 = scmp.ge.s32.totalorder %s136_s13, 8  }
  0x42   :  { %v155_v0 = vld [vmem:[#allocation7 + $0x78] sm:$0xff] (%p133_p11)  ;;  %v154_v1 = vld [vmem:[#allocation7 + $0x70] sm:$0xff] (%p133_p11)  ;;  %v153_v2 = vld [vmem:[#allocation7 + $0x68] sm:$0xff] (%p133_p11)  ;;  %s1957_s18 = sshll.u32 (%p133_p11), %s3513_s10, 4  ;;  %s1958_s18 = int_to_ptr.hbm [resolvable:$true] %s1957_s18 }
  0x43   :  { %135 = sbr.rel (!%p133_p11) target bundleno = 63 (0x3f), region = 103  ;;  %v2301_v3 = vand.u32 (%p133_p11), 4294901760, %v155_v0  ;;  %v2303_v4 = vand.u32 (%p133_p11), 4294901760, %v154_v1  ;;  %v2305_v5 = vand.u32 (%p133_p11), 4294901760, %v153_v2  ;;  %v152_v6 = vld [vmem:[#allocation7 + $0x60] sm:$0xff] (%p133_p11)  ;;  %v151_v7 = vld [vmem:[#allocation7 + $0x58] sm:$0xff] (%p133_p11) }
  0x44   :  { %v150_v8 = vld [vmem:[#allocation7 + $0x50] sm:$0xff] (%p133_p11)  ;;  %v2307_v9 = vand.u32 (%p133_p11), 4294901760, %v152_v6  ;;  %v2309_v10 = vand.u32 (%p133_p11), 4294901760, %v151_v7  ;;  %v149_v12 = vld [vmem:[#allocation7 + $0x48] sm:$0xff] (%p133_p11)  ;;  %v148_v13 = vld [vmem:[#allocation7 + $0x40] sm:$0xff] (%p133_p11) }
  0x45   :  { %v2311_v11 = vand.u32 (%p133_p11), 4294901760, %v150_v8  ;;  %161 = vmatpush.msra.mxu0 (%p133_p11), %v2301_v3  ;;  %v2315_v14 = vsub.f32 (%p133_p11), %v155_v0, %v2301_v3  ;;  %v2318_v15 = vsub.f32 (%p133_p11), %v154_v1, %v2303_v4  ;;  %v2321_v16 = vsub.f32 (%p133_p11), %v153_v2, %v2305_v5  ;;  %357 = vmatpush.msra.mxu3 (%p133_p11), %v2301_v3  ;;  %v147_v21 = vld [vmem:[#allocation7 + $0x38] sm:$0xff] (%p133_p11)  ;;  %v146_v34 = vld [vmem:[#allocation7 + $0x30] sm:$0xff] (%p133_p11)  ;;  %v145_v35 = vld [vmem:[#allocation7 + $0x28] sm:$0xff] (%p133_p11) }
  0x46   :  { %v2323_v17 = vand.u32 (%p133_p11), 4294901760, %v149_v12  ;;  %v2327_v18 = vsub.f32 (%p133_p11), %v152_v6, %v2307_v9  ;;  %v2330_v19 = vsub.f32 (%p133_p11), %v151_v7, %v2309_v10  ;;  %v2332_v20 = vand.u32 (%p133_p11), 4294901760, %v148_v13  ;;  %v144_v42 = vld [vmem:[#allocation7 + $0x20] sm:$0xff] (%p133_p11)  ;;  %v143_v47 = vld [vmem:[#allocation7 + $0x18] sm:$0xff] (%p133_p11)  ;;  %v142_v53 = vld [vmem:[#allocation7 + $0x10] sm:$0xff] (%p133_p11) }
  0x47   :  { %163 = vmatpush.msra.mxu0 (%p133_p11), %v2303_v4  ;;  %v203_v22 = vand.u32 (%p133_p11), 4294901760, %v2315_v14  ;;  %v209_v23 = vand.u32 (%p133_p11), 4294901760, %v2318_v15  ;;  %v215_v24 = vand.u32 (%p133_p11), 4294901760, %v2321_v16  ;;  %v2339_v25 = vsub.f32 (%p133_p11), %v150_v8, %v2311_v11  ;;  %304 = vmatpush.msra.mxu2 (%p133_p11), %v2315_v14  ;;  %v141_v61 = vld [vmem:[#allocation7 + $0x8] sm:$0xff] (%p133_p11)  ;;  %v140_v2 = vld [vmem:[#allocation7] sm:$0xff] (%p133_p11) }
  0x48   :  { %v221_v26 = vand.u32 4294901760, %v2327_v18  ;;  %v227_v27 = vand.u32 4294901760, %v2330_v19  ;;  %v2345_v28 = vsub.f32 %v149_v12, %v2323_v17  ;;  %359 = vmatpush.msra.mxu3 %v2303_v4  ;;  %v2358_v32 = vand.u32 4294901760, %v147_v21 }
  0x49   :  { %v204_v29 = vsub.f32 %v2315_v14, %v203_v22  ;;  %165 = vmatpush.msra.mxu0 %v2305_v5  ;;  %v210_v30 = vsub.f32 %v2318_v15, %v209_v23  ;;  %v216_v31 = vsub.f32 %v2321_v16, %v215_v24  ;;  %307 = vmatpush.msra.mxu2 %v2318_v15  ;;  %v233_v39 = vand.u32 4294901760, %v2339_v25  ;;  %v517_v14 = vld [vmem:[#allocation10 + $0x78] sm:$0xff] }
  0x4a   :  { %v2362_v33 = vsub.f32 %v148_v13, %v2332_v20  ;;  %361 = vmatpush.msra.mxu3 %v2305_v5  ;;  %v222_v38 = vsub.f32 %v2327_v18, %v221_v26  ;;  %v228_v40 = vsub.f32 %v2330_v19, %v227_v27  ;;  %v239_v41 = vand.u32 4294901760, %v2345_v28 }
  0x4b   :  { %v205_v36 = vand.u32 4294901760, %v204_v29  ;;  %v211_v37 = vand.u32 4294901760, %v210_v30  ;;  %167 = vmatpush.msra.mxu0 %v2307_v9  ;;  %310 = vmatpush.msra.mxu2 %v2321_v16  ;;  %v217_v43 = vand.u32 4294901760, %v216_v31  ;;  %v2377_v44 = vand.u32 4294901760, %v146_v34  ;;  %v139_v29 = vld [vmem:[#allocation2] sm:$0xff] }
  0x4c   :  { %363 = vmatpush.msra.mxu3 %v2307_v9  ;;  %v2380_v45 = vsub.f32 %v147_v21, %v2358_v32  ;;  %v2382_v46 = vand.u32 4294901760, %v145_v35  ;;  %v245_v48 = vand.u32 4294901760, %v2362_v33  ;;  %v223_v49 = vand.u32 4294901760, %v222_v38 }
  0x4d   :  { %206 = vmatpush.msra.mxu1 %v205_v36  ;;  %169 = vmatpush.msra.mxu0 %v2309_v10  ;;  %v234_v50 = vsub.f32 %v2339_v25, %v233_v39  ;;  %v2392_v51 = vsub.f32 %v146_v34, %v2377_v44  ;;  %v2394_v52 = vand.u32 4294901760, %v144_v42  ;;  %v2396_v54 = vand.u32 4294901760, %v143_v47 }
  0x4e   :  { %313 = vmatpush.msra.mxu2 %v2327_v18  ;;  %365 = vmatpush.msra.mxu3 %v2309_v10  ;;  %v229_v55 = vand.u32 4294901760, %v228_v40  ;;  %v240_v56 = vsub.f32 %v2345_v28, %v239_v41  ;;  %v251_v57 = vand.u32 4294901760, %v2380_v45  ;;  %v2406_v58 = vsub.f32 %v145_v35, %v2382_v46 }
  0x4f   :  { %212 = vmatpush.msra.mxu1 %v211_v37  ;;  %171 = vmatpush.msra.mxu0 %v2311_v11  ;;  %v246_v59 = vsub.f32 %v2362_v33, %v245_v48  ;;  %v2411_v60 = vand.u32 4294901760, %v142_v53  ;;  %v235_v62 = vand.u32 4294901760, %v234_v50  ;;  %v257_v63 = vand.u32 4294901760, %v2392_v51 }
  0x50   :  { %316 = vmatpush.msra.mxu2 %v2330_v19  ;;  %367 = vmatpush.msra.mxu3 %v2311_v11  ;;  %v2418_v0 = vsub.f32 %v144_v42, %v2394_v52  ;;  %v2421_v1 = vsub.f32 %v143_v47, %v2396_v54  ;;  %v241_v6 = vand.u32 4294901760, %v240_v56  ;;  %v252_v7 = vsub.f32 %v2380_v45, %v251_v57  ;;  %v510_v19 = vld [vmem:[#allocation10 + $0x40] sm:$0xff] }
  0x51   :  { %218 = vmatpush.msra.mxu1 %v217_v43  ;;  %173 = vmatpush.msra.mxu0 %v2323_v17  ;;  %v263_v8 = vand.u32 4294901760, %v2406_v58  ;;  %v2430_v12 = vand.u32 4294901760, %v141_v61  ;;  %v247_v13 = vand.u32 4294901760, %v246_v59  ;;  %v2433_v21 = vsub.f32 %v142_v53, %v2411_v60 }
  0x52   :  { %319 = vmatpush.msra.mxu2 %v2339_v25  ;;  %369 = vmatpush.msra.mxu3 %v2323_v17  ;;  %v258_v30 = vsub.f32 %v2392_v51, %v257_v63  ;;  %v269_v31 = vand.u32 4294901760, %v2418_v0  ;;  %v2442_v34 = vand.u32 4294901760, %v140_v2  ;;  %v2444_v35 = vand.u32 4294901760, %v139_v29 }
  0x53   :  { %224 = vmatpush.msra.mxu1 %v223_v49  ;;  %175 = vmatpush.msra.mxu0 %v2332_v20  ;;  %v275_v36 = vand.u32 4294901760, %v2421_v1  ;;  %v253_v37 = vand.u32 4294901760, %v252_v7  ;;  %v264_v38 = vsub.f32 %v2406_v58, %v263_v8  ;;  %v2454_v40 = vsub.f32 %v141_v61, %v2430_v12 }
  0x54   :  { %322 = vmatpush.msra.mxu2 %v2345_v28  ;;  %371 = vmatpush.msra.mxu3 %v2332_v20  ;;  %v193_v42 = vsub.f32 %v139_v29, %v2444_v35  ;;  %v259_v43 = vand.u32 4294901760, %v258_v30  ;;  %v270_v47 = vsub.f32 %v2418_v0, %v269_v31  ;;  %v281_v49 = vand.u32 4294901760, %v2433_v21 }
  0x55   :  { %230 = vmatpush.msra.mxu1 %v229_v55  ;;  %177 = vmatpush.msra.mxu0 %v2358_v32  ;;  %v2465_v50 = vsub.f32 %v140_v2, %v2442_v34  ;;  %v265_v53 = vand.u32 4294901760, %v264_v38  ;;  %v276_v55 = vsub.f32 %v2421_v1, %v275_v36  ;;  %v287_v56 = vand.u32 4294901760, %v2454_v40 }
  0x56   :  { %325 = vmatpush.msra.mxu2 %v2362_v33  ;;  %373 = vmatpush.msra.mxu3 %v2358_v32  ;;  %v194_v59 = vand.u32 4294901760, %v193_v42  ;;  %v271_v61 = vand.u32 4294901760, %v270_v47  ;;  %v515_v47 = vld [vmem:[#allocation10 + $0x68] sm:$0xff]  ;;  %v2507_v15 = vand.u32 4294901760, %v517_v14  ;;  %v509_v33 = vld [vmem:[#allocation10 + $0x38] sm:$0xff] }
  0x57   :  { %236 = vmatpush.msra.mxu1 %v235_v62  ;;  %179 = vmatpush.msra.mxu0 %v2377_v44  ;;  %v282_v62 = vsub.f32 %v2433_v21, %v281_v49  ;;  %v293_v2 = vand.u32 4294901760, %v2465_v50  ;;  %v288_v7 = vsub.f32 %v2454_v40, %v287_v56  ;;  %v2511_v16 = vand.u32 4294901760, %v515_v47 }
  0x58   :  { %328 = vmatpush.msra.mxu2 %v2380_v45  ;;  %375 = vmatpush.msra.mxu3 %v2377_v44  ;;  %v2586_v45 = vand.u32 4294901760, %v509_v33 }
  0x59   :  { %242 = vmatpush.msra.mxu1 %v241_v6  ;;  %181 = vmatpush.msra.mxu0 %v2382_v46  ;;  %v277_v6 = vand.u32 4294901760, %v276_v55  ;;  %v283_v29 = vand.u32 4294901760, %v282_v62  ;;  %v294_v30 = vsub.f32 %v2465_v50, %v293_v2 }
  0x5a   :  { %331 = vmatpush.msra.mxu2 %v2392_v51  ;;  %377 = vmatpush.msra.mxu3 %v2382_v46  ;;  %v2601_v51 = vsub.f32 %v509_v33, %v2586_v45 }
  0x5b   :  { %248 = vmatpush.msra.mxu1 %v247_v13  ;;  %183 = vmatpush.msra.mxu0 %v2394_v52  ;;  %v195_v13 = vsub.f32 %v193_v42, %v194_v59 }
  0x5c   :  { %334 = vmatpush.msra.mxu2 %v2406_v58  ;;  %379 = vmatpush.msra.mxu3 %v2394_v52 }
  0x5d   :  { %254 = vmatpush.msra.mxu1 %v253_v37  ;;  %185 = vmatpush.msra.mxu0 %v2396_v54  ;;  %v289_v37 = vand.u32 4294901760, %v288_v7  ;;  %v196_v38 = vand.u32 4294901760, %v195_v13  ;;  %v2547_v13 = vand.u32 4294901760, %v510_v19 }
  0x5e   :  { %337 = vmatpush.msra.mxu2 %v2418_v0  ;;  %381 = vmatpush.msra.mxu3 %v2396_v54  ;;  %v503_v0 = vld [vmem:[#allocation10 + $0x8] sm:$0xff] }
  0x5f   :  { %260 = vmatpush.msra.mxu1 %v259_v43  ;;  %187 = vmatpush.msra.mxu0 %v2411_v60  ;;  %v295_v43 = vand.u32 4294901760, %v294_v30 }
  0x60   :  { %340 = vmatpush.msra.mxu2 %v2421_v1  ;;  %383 = vmatpush.msra.mxu3 %v2411_v60  ;;  %v502_v1 = vld [vmem:[#allocation10] sm:$0xff] }
  0x61   :  { %266 = vmatpush.msra.mxu1 %v265_v53  ;;  %189 = vmatpush.msra.mxu0 %v2430_v12  ;;  %v512_v53 = vld [vmem:[#allocation10 + $0x50] sm:$0xff] }
  0x62   :  { %343 = vmatpush.msra.mxu2 %v2433_v21  ;;  %385 = vmatpush.msra.mxu3 %v2430_v12  ;;  %v2518_v55 = vand.u32 4294901760, %v512_v53 }
  0x63   :  { %272 = vmatpush.msra.mxu1 %v271_v61  ;;  %191 = vmatpush.msra.mxu0 %v2442_v34  ;;  %v2530_v61 = vsub.f32 %v515_v47, %v2511_v16 }
  0x64   :  { %346 = vmatpush.msra.mxu2 %v2454_v40  ;;  %387 = vmatpush.msra.mxu3 %v2442_v34  ;;  %v2552_v30 = vsub.f32 %v512_v53, %v2518_v55 }
  0x65   :  { %398 = vmatpush.msrb.mxu0 %v203_v22  ;;  %278 = vmatpush.msra.mxu1 %v277_v6  ;;  %v516_v22 = vld [vmem:[#allocation10 + $0x70] sm:$0xff]  ;;  %v577_v7 = vand.u32 4294901760, %v2530_v61 }
  0x66   :  { %349 = vmatpush.msra.mxu2 %v2465_v50  ;;  %391 = vmatmul.f32.vlgmr.msra.gmra.mxu3 %v194_v59 }
  0x67   :  { %402 = vmatpush.msrb.mxu0 %v209_v23  ;;  %284 = vmatpush.msra.mxu1 %v283_v29  ;;  %v2509_v23 = vand.u32 4294901760, %v516_v22 }
  0x68   :  { %352 = vmatmul.f32.vlgmr.msra.gmra.mxu2 %v193_v42  ;;  %197 = vmatmul.f32.vlgmr.msra.gmra.mxu0 %v196_v38  ;;  %v513_v42 = vld [vmem:[#allocation10 + $0x58] sm:$0xff] }
  0x69   :  { %406 = vmatpush.msrb.mxu0 %v215_v24  ;;  %290 = vmatpush.msra.mxu1 %v289_v37  ;;  %v514_v24 = vld [vmem:[#allocation10 + $0x60] sm:$0xff]  ;;  %v2527_v59 = vsub.f32 %v516_v22, %v2509_v23  ;;  %v578_v37 = vsub.f32 %v2530_v61, %v577_v7 }
  0x6a   :  { %v2514_v18 = vand.u32 4294901760, %v514_v24  ;;  %523 = vmatpush.msrb.mxu2 %v2507_v15 }
  0x6b   :  { %410 = vmatpush.msrb.mxu0 %v221_v26  ;;  %296 = vmatpush.msra.mxu1 %v295_v43  ;;  %v2516_v26 = vand.u32 4294901760, %v513_v42  ;;  %v2575_v43 = vsub.f32 %v510_v19, %v2547_v13  ;;  %v579_v53 = vand.u32 4294901760, %v578_v37 }
  0x6c   :  { %298 = vmatmul.f32.vlgmr.msra.gmra.mxu1 %v2444_v35  ;;  %v2535_v6 = vsub.f32 %v514_v24, %v2514_v18  ;;  %525 = vmatpush.msrb.mxu2 %v2509_v23  ;;  %v595_v24 = vand.u32 4294901760, %v2552_v30 }
  0x6d   :  { %465 = vmatpush.msrb.mxu1 %v2301_v3  ;;  %414 = vmatpush.msrb.mxu0 %v227_v27  ;;  %v511_v3 = vld [vmem:[#allocation10 + $0x48] sm:$0xff]  ;;  %v2524_v27 = vsub.f32 %v517_v14, %v2507_v15 }
  0x6e   :  { %v2532_v62 = vand.u32 4294901760, %v511_v3  ;;  %v583_v29 = vand.u32 4294901760, %v2535_v6  ;;  %527 = vmatpush.msrb.mxu2 %v2511_v16  ;;  %v507_v14 = vld [vmem:[#allocation10 + $0x28] sm:$0xff] }
  0x6f   :  { %467 = vmatpush.msrb.mxu1 %v2303_v4  ;;  %418 = vmatpush.msrb.mxu0 %v233_v39  ;;  %v2539_v4 = vsub.f32 %v513_v42, %v2516_v26  ;;  %v565_v25 = vand.u32 4294901760, %v2524_v27  ;;  %v571_v39 = vand.u32 4294901760, %v2527_v59  ;;  %v506_v42 = vld [vmem:[#allocation10 + $0x20] sm:$0xff]  ;;  %v2594_v19 = vand.u32 4294901760, %v507_v14 }
  0x70   :  { %v584_v47 = vsub.f32 %v2535_v6, %v583_v29  ;;  %529 = vmatpush.msrb.mxu2 %v2514_v18 }
  0x71   :  { %469 = vmatpush.msrb.mxu1 %v2305_v5  ;;  %422 = vmatpush.msrb.mxu0 %v239_v41  ;;  %v566_v5 = vsub.f32 %v2524_v27, %v565_v25  ;;  %v572_v28 = vsub.f32 %v2527_v59, %v571_v39  ;;  %v2564_v41 = vsub.f32 %v511_v3, %v2532_v62 }
  0x72   :  { %531 = vmatpush.msrb.mxu2 %v2516_v26 }
  0x73   :  { %471 = vmatpush.msrb.mxu1 %v2307_v9  ;;  %426 = vmatpush.msrb.mxu0 %v245_v48  ;;  %v589_v9 = vand.u32 4294901760, %v2539_v4  ;;  %v508_v48 = vld [vmem:[#allocation10 + $0x30] sm:$0xff]  ;;  %v567_v38 = vand.u32 4294901760, %v566_v5  ;;  %v573_v22 = vand.u32 4294901760, %v572_v28  ;;  %v585_v5 = vand.u32 4294901760, %v584_v47 }
  0x74   :  { %v596_v28 = vsub.f32 %v2552_v30, %v595_v24  ;;  %533 = vmatpush.msrb.mxu2 %v2518_v55 }
  0x75   :  { %473 = vmatpush.msrb.mxu1 %v2309_v10  ;;  %430 = vmatpush.msrb.mxu0 %v251_v57  ;;  %v601_v10 = vand.u32 4294901760, %v2564_v41  ;;  %v2588_v57 = vand.u32 4294901760, %v508_v48  ;;  %v590_v3 = vsub.f32 %v2539_v4, %v589_v9 }
  0x76   :  { %568 = vmatpush.msrb.mxu3 %v567_v38  ;;  %v613_v38 = vand.u32 4294901760, %v2601_v51  ;;  %535 = vmatpush.msrb.mxu2 %v2532_v62 }
  0x77   :  { %475 = vmatpush.msrb.mxu1 %v2311_v11  ;;  %434 = vmatpush.msrb.mxu0 %v257_v63  ;;  %v607_v11 = vand.u32 4294901760, %v2575_v43  ;;  %v505_v63 = vld [vmem:[#allocation10 + $0x18] sm:$0xff]  ;;  %v2608_v37 = vsub.f32 %v508_v48, %v2588_v57  ;;  %v602_v58 = vsub.f32 %v2564_v41, %v601_v10  ;;  %v591_v33 = vand.u32 4294901760, %v590_v3 }
  0x78   :  { %574 = vmatpush.msrb.mxu3 %v573_v22  ;;  %v2621_v48 = vsub.f32 %v507_v14, %v2594_v19  ;;  %v2623_v22 = vand.u32 4294901760, %v505_v63  ;;  %537 = vmatpush.msrb.mxu2 %v2547_v13 }
  0x79   :  { %477 = vmatpush.msrb.mxu1 %v2323_v17  ;;  %438 = vmatpush.msrb.mxu0 %v263_v8  ;;  %v2610_v17 = vand.u32 4294901760, %v506_v42  ;;  %v504_v8 = vld [vmem:[#allocation10 + $0x10] sm:$0xff]  ;;  %v619_v47 = vand.u32 4294901760, %v2608_v37 }
  0x7a   :  { %580 = vmatpush.msrb.mxu3 %v579_v53  ;;  %v2636_v53 = vand.u32 4294901760, %v504_v8  ;;  %v625_v3 = vand.u32 4294901760, %v2621_v48  ;;  %539 = vmatpush.msrb.mxu2 %v2586_v45 }
  0x7b   :  { %479 = vmatpush.msrb.mxu1 %v2332_v20  ;;  %442 = vmatpush.msrb.mxu0 %v269_v31  ;;  %v608_v20 = vsub.f32 %v2575_v43, %v607_v11  ;;  %v597_v31 = vand.u32 4294901760, %v596_v28  ;;  %v2634_v14 = vsub.f32 %v506_v42, %v2610_v17  ;;  %v2647_v42 = vsub.f32 %v505_v63, %v2623_v22 }
  0x7c   :  { %586 = vmatpush.msrb.mxu3 %v585_v5  ;;  %v2649_v5 = vand.u32 4294901760, %v503_v0  ;;  %v620_v21 = vsub.f32 %v2608_v37, %v619_v47  ;;  %541 = vmatpush.msrb.mxu2 %v2588_v57  ;;  %v2660_v63 = vsub.f32 %v504_v8, %v2636_v53  ;;  %v2662_v28 = vand.u32 4294901760, %v502_v1 }
  0x7d   :  { %481 = vmatpush.msrb.mxu1 %v2358_v32  ;;  %446 = vmatpush.msrb.mxu0 %v275_v36  ;;  %v603_v32 = vand.u32 4294901760, %v602_v58  ;;  %v614_v36 = vsub.f32 %v2601_v51, %v613_v38  ;;  %v626_v40 = vsub.f32 %v2621_v48, %v625_v3 }
  0x7e   :  { %592 = vmatpush.msrb.mxu3 %v591_v33  ;;  %v2673_v58 = vsub.f32 %v503_v0, %v2649_v5  ;;  %543 = vmatpush.msrb.mxu2 %v2594_v19  ;;  %v2683_v8 = vsub.f32 %v502_v1, %v2662_v28 }
  0x7f   :  { %483 = vmatpush.msrb.mxu1 %v2377_v44  ;;  %450 = vmatpush.msrb.mxu0 %v281_v49  ;;  %v609_v44 = vand.u32 4294901760, %v608_v20  ;;  %v631_v49 = vand.u32 4294901760, %v2634_v14 }
  0x80   :  { %598 = vmatpush.msrb.mxu3 %v597_v31  ;;  %v649_v20 = vand.u32 4294901760, %v2673_v58  ;;  %545 = vmatpush.msrb.mxu2 %v2610_v17  ;;  %v655_v31 = vand.u32 4294901760, %v2683_v8 }
  0x81   :  { %485 = vmatpush.msrb.mxu1 %v2382_v46  ;;  %454 = vmatpush.msrb.mxu0 %v287_v56  ;;  %v615_v46 = vand.u32 4294901760, %v614_v36  ;;  %v637_v56 = vand.u32 4294901760, %v2647_v42  ;;  %v632_v50 = vsub.f32 %v2634_v14, %v631_v49 }
  0x82   :  { %604 = vmatpush.msrb.mxu3 %v603_v32  ;;  %547 = vmatpush.msrb.mxu2 %v2623_v22  ;;  %v650_v32 = vsub.f32 %v2673_v58, %v649_v20 }
  0x83   :  { %487 = vmatpush.msrb.mxu1 %v2394_v52  ;;  %458 = vmatpush.msrb.mxu0 %v293_v2  ;;  %v621_v52 = vand.u32 4294901760, %v620_v21  ;;  %v643_v2 = vand.u32 4294901760, %v2660_v63  ;;  %v638_v33 = vsub.f32 %v2647_v42, %v637_v56  ;;  %v633_v0 = vand.u32 4294901760, %v632_v50 }
  0x84   :  { %460 = vmatmul.f32.vlgmr.msrb.gmra.mxu0 %v2444_v35  ;;  %610 = vmatpush.msrb.mxu3 %v609_v44 }
  0x85   :  { %489 = vmatpush.msrb.mxu1 %v2396_v54  ;;  %666 = vmatpush.msra.mxu0 %v2524_v27  ;;  %v627_v54 = vand.u32 4294901760, %v626_v40  ;;  %v870_v40 = vld [vmem:[#allocation12 + $0x30] sm:$0xff] }
  0x86   :  { %616 = vmatpush.msrb.mxu3 %v615_v46  ;;  %549 = vmatpush.msrb.mxu2 %v2636_v53  ;;  %v871_v46 = vld [vmem:[#allocation12 + $0x38] sm:$0xff] }
  0x87   :  { %491 = vmatpush.msrb.mxu1 %v2411_v60  ;;  %669 = vmatpush.msra.mxu0 %v2527_v59  ;;  %v644_v60 = vsub.f32 %v2660_v63, %v643_v2 }
  0x88   :  { %622 = vmatpush.msrb.mxu3 %v621_v52  ;;  %551 = vmatpush.msrb.mxu2 %v2649_v5 }
  0x89   :  { %493 = vmatpush.msrb.mxu1 %v2430_v12  ;;  %672 = vmatpush.msra.mxu0 %v2530_v61  ;;  %v639_v12 = vand.u32 4294901760, %v638_v33  ;;  %v645_v1 = vand.u32 4294901760, %v644_v60  ;;  %v879_v61 = vld [vmem:[#allocation12 + $0x78] sm:$0xff]  ;;  %v868_v33 = vld [vmem:[#allocation12 + $0x20] sm:$0xff]  ;;  %v2857_v60 = vand.u32 4294901760, %v871_v46 }
  0x8a   :  { %628 = vmatpush.msrb.mxu3 %v627_v54  ;;  %553 = vmatpush.msrb.mxu2 %v2662_v28 }
  0x8b   :  { %495 = vmatpush.msrb.mxu1 %v2442_v34  ;;  %675 = vmatpush.msra.mxu0 %v2535_v6  ;;  %v656_v34 = vsub.f32 %v2683_v8, %v655_v31  ;;  %v877_v6 = vld [vmem:[#allocation12 + $0x68] sm:$0xff] }
  0x8c   :  { %497 = vmatmul.f32.vlgmr.msrb.gmra.mxu1 %v2444_v35  ;;  %634 = vmatpush.msrb.mxu3 %v633_v0  ;;  %v651_v35 = vand.u32 4294901760, %v650_v32 }
  0x8d   :  { %719 = vmatpush.msra.mxu1 %v2507_v15  ;;  %678 = vmatpush.msra.mxu0 %v2539_v4  ;;  %v657_v36 = vand.u32 4294901760, %v656_v34  ;;  %v2790_v4 = vand.u32 4294901760, %v879_v61 }
  0x8e   :  { %640 = vmatpush.msrb.mxu3 %v639_v12  ;;  %760 = vmatpush.msra.mxu2 %v565_v25 }
  0x8f   :  { %721 = vmatpush.msra.mxu1 %v2509_v23  ;;  %681 = vmatpush.msra.mxu0 %v2552_v30 }
  0x90   :  { %646 = vmatpush.msrb.mxu3 %v645_v1  ;;  %764 = vmatpush.msra.mxu2 %v571_v39  ;;  %v2794_v39 = vand.u32 4294901760, %v877_v6 }
  0x91   :  { %723 = vmatpush.msra.mxu1 %v2511_v16  ;;  %684 = vmatpush.msra.mxu0 %v2564_v41 }
  0x92   :  { %652 = vmatpush.msrb.mxu3 %v651_v35  ;;  %768 = vmatpush.msra.mxu2 %v577_v7  ;;  %v876_v7 = vld [vmem:[#allocation12 + $0x60] sm:$0xff]  ;;  %v867_v35 = vld [vmem:[#allocation12 + $0x18] sm:$0xff] }
  0x93   :  { %725 = vmatpush.msra.mxu1 %v2514_v18  ;;  %687 = vmatpush.msra.mxu0 %v2575_v43  ;;  %v2796_v41 = vand.u32 4294901760, %v876_v7 }
  0x94   :  { %658 = vmatpush.msrb.mxu3 %v657_v36  ;;  %772 = vmatpush.msra.mxu2 %v583_v29  ;;  %v874_v29 = vld [vmem:[#allocation12 + $0x50] sm:$0xff] }
  0x95   :  { %727 = vmatpush.msra.mxu1 %v2516_v26  ;;  %690 = vmatpush.msra.mxu0 %v2601_v51  ;;  %v2800_v43 = vand.u32 4294901760, %v874_v29 }
  0x96   :  { %827 = vmatpush.msra.mxu3 %v2507_v15  ;;  %776 = vmatpush.msra.mxu2 %v589_v9  ;;  %v2014_v15 = vld [vmem:[%s3506_s3] ss:$0 sm:$0xff] }
  0x97   :  { %729 = vmatpush.msra.mxu1 %v2518_v55  ;;  %693 = vmatpush.msra.mxu0 %v2608_v37  ;;  %v2815_v37 = vsub.f32 %v876_v7, %v2796_v41 }
  0x98   :  { %829 = vmatpush.msra.mxu3 %v2509_v23  ;;  %780 = vmatpush.msra.mxu2 %v595_v24  ;;  %v873_v24 = vld [vmem:[#allocation12 + $0x48] sm:$0xff] }
  0x99   :  { %731 = vmatpush.msra.mxu1 %v2532_v62  ;;  %696 = vmatpush.msra.mxu0 %v2621_v48  ;;  %v2812_v51 = vand.u32 4294901760, %v873_v24 }
  0x9a   :  { %831 = vmatpush.msra.mxu3 %v2511_v16  ;;  %784 = vmatpush.msra.mxu2 %v601_v10  ;;  %v872_v10 = vld [vmem:[#allocation12 + $0x40] sm:$0xff] }
  0x9b   :  { %733 = vmatpush.msra.mxu1 %v2547_v13  ;;  %699 = vmatpush.msra.mxu0 %v2634_v14  ;;  %v2823_v48 = vand.u32 4294901760, %v872_v10 }
  0x9c   :  { %833 = vmatpush.msra.mxu3 %v2514_v18  ;;  %788 = vmatpush.msra.mxu2 %v607_v11  ;;  %v2809_v11 = vsub.f32 %v877_v6, %v2794_v39 }
  0x9d   :  { %735 = vmatpush.msra.mxu1 %v2586_v45  ;;  %702 = vmatpush.msra.mxu0 %v2647_v42  ;;  %v2831_v42 = vsub.f32 %v873_v24, %v2812_v51 }
  0x9e   :  { %835 = vmatpush.msra.mxu3 %v2516_v26  ;;  %792 = vmatpush.msra.mxu2 %v613_v38  ;;  %v2821_v38 = vsub.f32 %v874_v29, %v2800_v43  ;;  %v939_v14 = vand.u32 4294901760, %v2809_v11 }
  0x9f   :  { %737 = vmatpush.msra.mxu1 %v2588_v57  ;;  %705 = vmatpush.msra.mxu0 %v2660_v63  ;;  %v963_v54 = vand.u32 4294901760, %v2831_v42 }
  0xa0   :  { %837 = vmatpush.msra.mxu3 %v2518_v55  ;;  %796 = vmatpush.msra.mxu2 %v619_v47  ;;  %v940_v21 = vsub.f32 %v2809_v11, %v939_v14  ;;  %v957_v63 = vand.u32 4294901760, %v2821_v38 }
  0xa1   :  { %739 = vmatpush.msra.mxu1 %v2594_v19  ;;  %708 = vmatpush.msra.mxu0 %v2673_v58 }
  0xa2   :  { %839 = vmatpush.msra.mxu3 %v2532_v62  ;;  %800 = vmatpush.msra.mxu2 %v625_v3  ;;  %v878_v62 = vld [vmem:[#allocation12 + $0x70] sm:$0xff]  ;;  %v945_v3 = vand.u32 4294901760, %v2815_v37  ;;  %v958_v32 = vsub.f32 %v2821_v38, %v957_v63 }
  0xa3   :  { %741 = vmatpush.msra.mxu1 %v2610_v17  ;;  %711 = vmatpush.msra.mxu0 %v2683_v8  ;;  %v2792_v25 = vand.u32 4294901760, %v878_v62 }
  0xa4   :  { %841 = vmatpush.msra.mxu3 %v2547_v13  ;;  %804 = vmatpush.msra.mxu2 %v631_v49  ;;  %v875_v13 = vld [vmem:[#allocation12 + $0x58] sm:$0xff]  ;;  %v946_v50 = vsub.f32 %v2815_v37, %v945_v3  ;;  %v959_v6 = vand.u32 4294901760, %v958_v32 }
  0xa5   :  { %743 = vmatpush.msra.mxu1 %v2623_v22  ;;  %v2798_v9 = vand.u32 4294901760, %v875_v13  ;;  %885 = vmatpush.msrb.mxu0 %v2790_v4 }
  0xa6   :  { %843 = vmatpush.msra.mxu3 %v2586_v45  ;;  %808 = vmatpush.msra.mxu2 %v637_v56  ;;  %v947_v36 = vand.u32 4294901760, %v946_v50 }
  0xa7   :  { %745 = vmatpush.msra.mxu1 %v2636_v53  ;;  %887 = vmatpush.msrb.mxu0 %v2792_v25 }
  0xa8   :  { %845 = vmatpush.msra.mxu3 %v2588_v57  ;;  %812 = vmatpush.msra.mxu2 %v643_v2  ;;  %v2803_v57 = vsub.f32 %v879_v61, %v2790_v4  ;;  %v869_v2 = vld [vmem:[#allocation12 + $0x28] sm:$0xff]  ;;  %v2884_v61 = vand.u32 4294901760, %v867_v35 }
  0xa9   :  { %747 = vmatpush.msra.mxu1 %v2649_v5  ;;  %889 = vmatpush.msrb.mxu0 %v2794_v39  ;;  %v2865_v34 = vand.u32 4294901760, %v869_v2 }
  0xaa   :  { %847 = vmatpush.msra.mxu3 %v2594_v19  ;;  %816 = vmatpush.msra.mxu2 %v649_v20  ;;  %v2806_v19 = vsub.f32 %v878_v62, %v2792_v25  ;;  %v941_v20 = vand.u32 4294901760, %v940_v21 }
  0xab   :  { %749 = vmatpush.msra.mxu1 %v2662_v28  ;;  %891 = vmatpush.msrb.mxu0 %v2796_v41 }
  0xac   :  { %849 = vmatpush.msra.mxu3 %v2610_v17  ;;  %820 = vmatpush.msra.mxu2 %v655_v31  ;;  %v2818_v17 = vsub.f32 %v875_v13, %v2798_v9  ;;  %v933_v47 = vand.u32 4294901760, %v2806_v19  ;;  %v2859_v31 = vand.u32 4294901760, %v870_v40 }
  0xad   :  { %893 = vmatpush.msrb.mxu0 %v2798_v9 }
  0xae   :  { %851 = vmatpush.msra.mxu3 %v2623_v22  ;;  %v927_v22 = vand.u32 4294901760, %v2803_v57  ;;  %v934_v44 = vsub.f32 %v2806_v19, %v933_v47  ;;  %v951_v49 = vand.u32 4294901760, %v2818_v17 }
  0xaf   :  { %895 = vmatpush.msrb.mxu0 %v2800_v43 }
  0xb0   :  { %853 = vmatpush.msra.mxu3 %v2636_v53  ;;  %v935_v52 = vand.u32 4294901760, %v934_v44  ;;  %v952_v0 = vsub.f32 %v2818_v17, %v951_v49 }
  0xb1   :  { %897 = vmatpush.msrb.mxu0 %v2812_v51 }
  0xb2   :  { %855 = vmatpush.msra.mxu3 %v2649_v5  ;;  %v928_v5 = vsub.f32 %v2803_v57, %v927_v22 }
  0xb3   :  { %899 = vmatpush.msrb.mxu0 %v2823_v48 }
  0xb4   :  { %857 = vmatpush.msra.mxu3 %v2662_v28  ;;  %v2846_v28 = vsub.f32 %v872_v10, %v2823_v48  ;;  %v929_v58 = vand.u32 4294901760, %v928_v5 }
  0xb5   :  { %901 = vmatpush.msrb.mxu0 %v2857_v60 }
  0xb6   :  { %930 = vmatpush.msrb.mxu1 %v929_v58  ;;  %v969_v1 = vand.u32 4294901760, %v2846_v28 }
  0xb7   :  { %903 = vmatpush.msrb.mxu0 %v2859_v31 }
  0xb8   :  { %936 = vmatpush.msrb.mxu1 %v935_v52  ;;  %v970_v7 = vsub.f32 %v2846_v28, %v969_v1 }
  0xb9   :  { %905 = vmatpush.msrb.mxu0 %v2865_v34 }
  0xba   :  { %942 = vmatpush.msrb.mxu1 %v941_v20  ;;  %v971_v44 = vand.u32 4294901760, %v970_v7 }
  0xbc   :  { %948 = vmatpush.msrb.mxu1 %v947_v36 }
  0xe5   :  { %v198_v23 = vpop.f32.mrf.mxu0 }
  0xe6   :  { %v199_v16 = vadd.f32 %v2014_v15, %v198_v23  ;;  %v2868_v15 = vsub.f32 %v871_v46, %v2857_v60  ;;  %v2872_v23 = vsub.f32 %v870_v40, %v2859_v31 }
  0xe8   :  { %v981_v13 = vand.u32 4294901760, %v2872_v23 }
  0xe9   :  { %v299_v18 = vpop.f32.mrf.mxu1  ;;  %v392_v59 = vpop.f32.mrf.mxu3 }
  0xea   :  { %v300_v26 = vadd.f32 %v299_v18, %v199_v16  ;;  %v2874_v16 = vand.u32 4294901760, %v868_v33  ;;  %v982_v21 = vsub.f32 %v2872_v23, %v981_v13 }
  0xeb   :  { %v353_v55 = vpop.f32.mrf.mxu2 }
  0xec   :  { %v354_v27 = vadd.f32 %v353_v55, %v300_v26  ;;  %v964_v26 = vsub.f32 %v2831_v42, %v963_v54  ;;  %v953_v55 = vand.u32 4294901760, %v952_v0  ;;  %v2892_v29 = vsub.f32 %v868_v33, %v2874_v16  ;;  %907 = vmatpush.msrb.mxu0 %v2874_v16 }
  0xed   :  { %v983_v50 = vand.u32 4294901760, %v982_v21 }
  0xee   :  { %v393_v30 = vadd.f32 %v392_v59, %v354_v27  ;;  %v975_v27 = vand.u32 4294901760, %v2868_v15  ;;  %v2882_v59 = vsub.f32 %v869_v2, %v2865_v34  ;;  %954 = vmatpush.msrb.mxu1 %v953_v55  ;;  %v965_v24 = vand.u32 4294901760, %v964_v26  ;;  %909 = vmatpush.msrb.mxu0 %v2884_v61  ;;  %v864_v26 = vld [vmem:[#allocation12] sm:$0xff] }
  0xef   :  { %v993_v46 = vand.u32 4294901760, %v2892_v29 }
  0xf0   :  { %v976_v10 = vsub.f32 %v2868_v15, %v975_v27  ;;  %960 = vmatpush.msrb.mxu1 %v959_v6  ;;  %v914_v6 = vand.u32 4294901760, %v864_v26 }
  0xf1   :  { %v994_v2 = vsub.f32 %v2892_v29, %v993_v46 }
  0xf2   :  { %966 = vmatpush.msrb.mxu1 %v965_v24  ;;  %v1016_v24 = vsub.f32 %v864_v26, %v914_v6 }
  0xf3   :  { %v995_v20 = vand.u32 4294901760, %v994_v2 }
  0xf4   :  { %972 = vmatpush.msrb.mxu1 %v971_v44  ;;  %v1017_v44 = vand.u32 4294901760, %v1016_v24 }
 0x101   :  { %v461_v45 = vpop.f32.mrf.mxu0 }
 0x102   :  { %v462_v53 = vadd.f32 %v461_v45, %v393_v30  ;;  %v987_v45 = vand.u32 4294901760, %v2882_v59 }
 0x104   :  { %v988_v58 = vsub.f32 %v2882_v59, %v987_v45 }
 0x109   :  { %v498_v56 = vpop.f32.mrf.mxu1 }
 0x10a   :  { %v499_v8 = vadd.f32 %v498_v56, %v462_v53  ;;  %v2901_v53 = vsub.f32 %v867_v35, %v2884_v61  ;;  %v977_v56 = vand.u32 4294901760, %v976_v10  ;;  %v865_v35 = vld [vmem:[#allocation12 + $0x8] sm:$0xff] }
 0x10c   :  { %v501_v12 = vmax.f32 %v499_v8, 0.0  ;;  %v999_v52 = vand.u32 4294901760, %v2901_v53  ;;  %978 = vmatpush.msrb.mxu1 %v977_v56  ;;  %v989_v8 = vand.u32 4294901760, %v988_v58 }
 0x10e   :  { %v554_v18 = vand.u32 4294901760, %v501_v12  ;;  %v1000_v33 = vsub.f32 %v2901_v53, %v999_v52  ;;  %984 = vmatpush.msrb.mxu1 %v983_v50 }
 0x110   :  { %v555_v62 = vsub.f32 %v501_v12, %v554_v18  ;;  %660 = vmatmul.f32.vlgmr.msrb.gmra.mxu3 %v554_v18  ;;  %990 = vmatpush.msrb.mxu1 %v989_v8  ;;  %v1001_v0 = vand.u32 4294901760, %v1000_v33  ;;  %v866_v12 = vld [vmem:[#allocation12 + $0x10] sm:$0xff]  ;;  %v1244_v8 = vld [vmem:[#allocation13 + $0x80] sm:$0xff] }
 0x111   :  { %1081 = vmatpush.msrb.mxu3 %v2790_v4  ;;  %v910_v32 = vand.u32 4294901760, %v866_v12  ;;  %v1242_v33 = vld [vmem:[#allocation13 + $0x70] sm:$0xff] }
 0x112   :  { %714 = vmatmul.f32.vlgmr.msra.gmra.mxu0 %v555_v62  ;;  %v556_v30 = vand.u32 4294901760, %v555_v62  ;;  %996 = vmatpush.msrb.mxu1 %v995_v20  ;;  %v1240_v20 = vld [vmem:[#allocation13 + $0x60] sm:$0xff] }
 0x113   :  { %1083 = vmatpush.msrb.mxu3 %v2792_v25  ;;  %v1004_v36 = vsub.f32 %v866_v12, %v910_v32  ;;  %911 = vmatpush.msrb.mxu0 %v910_v32 }
 0x114   :  { %753 = vmatmul.f32.vlgmr.msra.gmra.mxu1 %v556_v30  ;;  %v557_v5 = vsub.f32 %v555_v62, %v556_v30 }
 0x115   :  { %1085 = vmatpush.msrb.mxu3 %v2794_v39  ;;  %1002 = vmatpush.msrb.mxu1 %v1001_v0  ;;  %v1005_v55 = vand.u32 4294901760, %v1004_v36 }
 0x116   :  { %v558_v40 = vand.u32 4294901760, %v557_v5 }
 0x117   :  { %1087 = vmatpush.msrb.mxu3 %v2796_v41  ;;  %v1006_v7 = vsub.f32 %v1004_v36, %v1005_v55 }
 0x118   :  { %559 = vmatmul.f32.vlgmr.msrb.gmra.mxu2 %v558_v40  ;;  %859 = vmatmul.f32.vlgmr.msra.gmra.mxu3 %v554_v18  ;;  %v1018_v40 = vsub.f32 %v1016_v24, %v1017_v44 }
 0x119   :  { %1028 = vmatpush.msrb.mxu2 %v2803_v57  ;;  %1089 = vmatpush.msrb.mxu3 %v2798_v9  ;;  %v1007_v10 = vand.u32 4294901760, %v1006_v7  ;;  %v1254_v57 = vld [vmem:[#allocation13 + $0xd0] sm:$0xff]  ;;  %v3054_v7 = vand.u32 4294901760, %v1240_v20 }
 0x11a   :  { %v1019_v56 = vand.u32 4294901760, %v1018_v40 }
 0x11b   :  { %1031 = vmatpush.msrb.mxu2 %v2806_v19  ;;  %1091 = vmatpush.msrb.mxu3 %v2800_v43 }
 0x11c   :  { %1008 = vmatpush.msrb.mxu1 %v1007_v10 }
 0x11d   :  { %1034 = vmatpush.msrb.mxu2 %v2809_v11  ;;  %1093 = vmatpush.msrb.mxu3 %v2812_v51 }
 0x11f   :  { %1037 = vmatpush.msrb.mxu2 %v2815_v37  ;;  %1095 = vmatpush.msrb.mxu3 %v2823_v48  ;;  %v1252_v37 = vld [vmem:[#allocation13 + $0xc0] sm:$0xff] }
 0x120   :  { %822 = vmatmul.f32.vlgmr.msra.gmra.mxu2 %v554_v18  ;;  %v912_v18 = vand.u32 4294901760, %v865_v35 }
 0x121   :  { %1040 = vmatpush.msrb.mxu2 %v2818_v17  ;;  %1097 = vmatpush.msrb.mxu3 %v2857_v60  ;;  %v1250_v17 = vld [vmem:[#allocation13 + $0xb0] sm:$0xff] }
 0x122   :  { %v1010_v62 = vsub.f32 %v865_v35, %v912_v18  ;;  %913 = vmatpush.msrb.mxu0 %v912_v18  ;;  %v1238_v35 = vld [vmem:[#allocation13 + $0x50] sm:$0xff] }
 0x123   :  { %1043 = vmatpush.msrb.mxu2 %v2821_v38  ;;  %1099 = vmatpush.msrb.mxu3 %v2859_v31  ;;  %v1248_v38 = vld [vmem:[#allocation13 + $0xa0] sm:$0xff] }
 0x124   :  { %v1011_v30 = vand.u32 4294901760, %v1010_v62  ;;  %915 = vmatpush.msrb.mxu0 %v914_v6 }
 0x125   :  { %1046 = vmatpush.msrb.mxu2 %v2831_v42  ;;  %1101 = vmatpush.msrb.mxu3 %v2865_v34 }
 0x126   :  { %1122 = vmatpush.msra.mxu0 %v927_v22  ;;  %v1012_v5 = vsub.f32 %v1010_v62, %v1011_v30  ;;  %v2994_v22 = vand.u32 4294901760, %v1252_v37 }
 0x127   :  { %1049 = vmatpush.msrb.mxu2 %v2846_v28  ;;  %1103 = vmatpush.msrb.mxu3 %v2874_v16 }
 0x128   :  { %1126 = vmatpush.msra.mxu0 %v933_v47  ;;  %v1013_v21 = vand.u32 4294901760, %v1012_v5  ;;  %v2996_v47 = vand.u32 4294901760, %v1250_v17 }
 0x129   :  { %1052 = vmatpush.msrb.mxu2 %v2868_v15  ;;  %1105 = vmatpush.msrb.mxu3 %v2884_v61 }
 0x12a   :  { %1130 = vmatpush.msra.mxu0 %v939_v14  ;;  %1014 = vmatpush.msrb.mxu1 %v1013_v21  ;;  %v2998_v14 = vand.u32 4294901760, %v1248_v38 }
 0x12b   :  { %1055 = vmatpush.msrb.mxu2 %v2872_v23  ;;  %1107 = vmatpush.msrb.mxu3 %v910_v32 }
 0x12c   :  { %1134 = vmatpush.msra.mxu0 %v945_v3  ;;  %1020 = vmatpush.msrb.mxu1 %v1019_v56  ;;  %v1246_v3 = vld [vmem:[#allocation13 + $0x90] sm:$0xff]  ;;  %v3069_v56 = vsub.f32 %v1240_v20, %v3054_v7 }
 0x12d   :  { %1058 = vmatpush.msrb.mxu2 %v2882_v59  ;;  %1109 = vmatpush.msrb.mxu3 %v912_v18 }
 0x12e   :  { %1189 = vmatpush.msra.mxu1 %v2790_v4  ;;  %1138 = vmatpush.msra.mxu0 %v951_v49  ;;  %v2015_v4 = vld [vmem:[%s3508_s5] ss:$0 sm:$0xff] }
 0x12f   :  { %1061 = vmatpush.msrb.mxu2 %v2892_v29  ;;  %1111 = vmatpush.msrb.mxu3 %v914_v6 }
 0x130   :  { %1191 = vmatpush.msra.mxu1 %v2792_v25  ;;  %1142 = vmatpush.msra.mxu0 %v957_v63 }
 0x131   :  { %1064 = vmatpush.msrb.mxu2 %v2901_v53 }
 0x132   :  { %1193 = vmatpush.msra.mxu1 %v2794_v39  ;;  %1146 = vmatpush.msra.mxu0 %v963_v54  ;;  %v3010_v54 = vand.u32 4294901760, %v1246_v3 }
 0x133   :  { %1067 = vmatpush.msrb.mxu2 %v1004_v36 }
 0x134   :  { %1195 = vmatpush.msra.mxu1 %v2796_v41  ;;  %1150 = vmatpush.msra.mxu0 %v969_v1  ;;  %v3016_v1 = vsub.f32 %v1250_v17, %v2996_v47  ;;  %v3028_v29 = vsub.f32 %v1246_v3, %v3010_v54 }
 0x135   :  { %1070 = vmatpush.msrb.mxu2 %v1010_v62  ;;  %v3049_v62 = vand.u32 4294901760, %v1244_v8 }
 0x136   :  { %1197 = vmatpush.msra.mxu1 %v2798_v9  ;;  %1154 = vmatpush.msra.mxu0 %v975_v27  ;;  %v1258_v9 = vld [vmem:[#allocation13 + $0xf0] sm:$0xff]  ;;  %v1345_v26 = vand.u32 4294901760, %v3028_v29 }
 0x137   :  { %1073 = vmatpush.msrb.mxu2 %v1016_v24  ;;  %v2988_v19 = vand.u32 4294901760, %v1258_v9  ;;  %v3062_v21 = vsub.f32 %v1244_v8, %v3049_v62 }
 0x138   :  { %1199 = vmatpush.msra.mxu1 %v2800_v43  ;;  %1158 = vmatpush.msra.mxu0 %v981_v13  ;;  %v1256_v43 = vld [vmem:[#allocation13 + $0xe0] sm:$0xff]  ;;  %v1333_v13 = vand.u32 4294901760, %v3016_v1 }
 0x139   :  { %v2990_v11 = vand.u32 4294901760, %v1256_v43  ;;  %v3001_v49 = vsub.f32 %v1258_v9, %v2988_v19  ;;  %1267 = vmatpush.msra.mxu2 %v2988_v19  ;;  %v1346_v9 = vsub.f32 %v3028_v29, %v1345_v26 }
 0x13a   :  { %1201 = vmatpush.msra.mxu1 %v2812_v51  ;;  %1162 = vmatpush.msra.mxu0 %v987_v45  ;;  %v2992_v51 = vand.u32 4294901760, %v1254_v57 }
 0x13b   :  { %v3004_v63 = vsub.f32 %v1256_v43, %v2990_v11  ;;  %v1309_v23 = vand.u32 4294901760, %v3001_v49  ;;  %1269 = vmatpush.msra.mxu2 %v2990_v11  ;;  %v1351_v43 = vand.u32 4294901760, %v3062_v21 }
 0x13c   :  { %1203 = vmatpush.msra.mxu1 %v2823_v48  ;;  %1166 = vmatpush.msra.mxu0 %v993_v46  ;;  %v3007_v28 = vsub.f32 %v1254_v57, %v2992_v51  ;;  %v1232_v57 = vld [vmem:[#allocation13 + $0x20] sm:$0xff] }
 0x13d   :  { %v1310_v53 = vsub.f32 %v3001_v49, %v1309_v23  ;;  %1271 = vmatpush.msra.mxu2 %v2992_v51 }
 0x13e   :  { %1205 = vmatpush.msra.mxu1 %v2857_v60  ;;  %1170 = vmatpush.msra.mxu0 %v999_v52  ;;  %v1321_v27 = vand.u32 4294901760, %v3007_v28 }
 0x13f   :  { %v1311_v12 = vand.u32 4294901760, %v1310_v53  ;;  %1273 = vmatpush.msra.mxu2 %v2994_v22  ;;  %v1230_v53 = vld [vmem:[#allocation13 + $0x10] sm:$0xff] }
 0x140   :  { %1207 = vmatpush.msra.mxu1 %v2859_v31  ;;  %1174 = vmatpush.msra.mxu0 %v1005_v55  ;;  %v3013_v31 = vsub.f32 %v1252_v37, %v2994_v22  ;;  %v1322_v58 = vsub.f32 %v3007_v28, %v1321_v27 }
 0x141   :  { %1312 = vmatpush.msra.mxu3 %v1311_v12  ;;  %1275 = vmatpush.msra.mxu2 %v2996_v47  ;;  %v3112_v12 = vand.u32 4294901760, %v1230_v53 }
 0x142   :  { %1209 = vmatpush.msra.mxu1 %v2865_v34  ;;  %1178 = vmatpush.msra.mxu0 %v1011_v30  ;;  %v3019_v34 = vsub.f32 %v1248_v38, %v2998_v14  ;;  %v1323_v55 = vand.u32 4294901760, %v1322_v58  ;;  %v1236_v30 = vld [vmem:[#allocation13 + $0x40] sm:$0xff] }
 0x143   :  { %1277 = vmatpush.msra.mxu2 %v2998_v14  ;;  %v1228_v58 = vld [vmem:[#allocation13] sm:$0xff] }
 0x144   :  { %1211 = vmatpush.msra.mxu1 %v2874_v16  ;;  %1182 = vmatpush.msra.mxu0 %v1017_v44  ;;  %v1315_v16 = vand.u32 4294901760, %v3004_v63  ;;  %v1339_v2 = vand.u32 4294901760, %v3019_v34  ;;  %v3059_v44 = vand.u32 4294901760, %v1238_v35 }
 0x145   :  { %1279 = vmatpush.msra.mxu2 %v3010_v54 }
 0x146   :  { %1213 = vmatpush.msra.mxu1 %v2884_v61  ;;  %v1327_v61 = vand.u32 4294901760, %v3013_v31  ;;  %v1316_v46 = vsub.f32 %v3004_v63, %v1315_v16  ;;  %v1340_v5 = vsub.f32 %v3019_v34, %v1339_v2  ;;  %v3084_v38 = vsub.f32 %v1238_v35, %v3059_v44 }
 0x147   :  { %1281 = vmatpush.msra.mxu2 %v3049_v62 }
 0x148   :  { %1215 = vmatpush.msra.mxu1 %v910_v32  ;;  %v1328_v50 = vsub.f32 %v3013_v31, %v1327_v61  ;;  %v1317_v32 = vand.u32 4294901760, %v1316_v46  ;;  %v1341_v3 = vand.u32 4294901760, %v1340_v5  ;;  %v1347_v46 = vand.u32 4294901760, %v1346_v9  ;;  %v1259_v5 = vld [vmem:[#allocation13 + $0xf8] sm:$0xff] }
 0x149   :  { %v1369_v8 = vand.u32 4294901760, %v3084_v38 }
 0x14a   :  { %1217 = vmatpush.msra.mxu1 %v912_v18  ;;  %v1334_v18 = vsub.f32 %v3016_v1, %v1333_v13  ;;  %v1329_v10 = vand.u32 4294901760, %v1328_v50  ;;  %1318 = vmatpush.msra.mxu3 %v1317_v32 }
 0x14c   :  { %1219 = vmatpush.msra.mxu1 %v914_v6  ;;  %v3052_v6 = vand.u32 4294901760, %v1242_v33  ;;  %1324 = vmatpush.msra.mxu3 %v1323_v55 }
 0x14e   :  { %v3065_v40 = vsub.f32 %v1242_v33, %v3052_v6  ;;  %1330 = vmatpush.msra.mxu3 %v1329_v10  ;;  %1283 = vmatpush.msra.mxu2 %v3052_v6  ;;  %v3127_v10 = vsub.f32 %v1230_v53, %v3112_v12 }
 0x150   :  { %v1357_v17 = vand.u32 4294901760, %v3065_v40  ;;  %1285 = vmatpush.msra.mxu2 %v3054_v7 }
 0x152   :  { %v1358_v50 = vsub.f32 %v3065_v40, %v1357_v17  ;;  %1287 = vmatpush.msra.mxu2 %v3059_v44 }
 0x154   :  { %v1359_v55 = vand.u32 4294901760, %v1358_v50 }
 0x18f   :  { %v715_v42 = vpop.f32.mrf.mxu0 }
 0x191   :  { %v754_v15 = vpop.f32.mrf.mxu1 }
 0x193   :  { %v661_v25 = vpop.f32.mrf.mxu3 }
 0x19b   :  { %v560_v39 = vpop.f32.mrf.mxu2  ;;  %v860_v0 = vpop.f32.mrf.mxu3 }
 0x19c   :  { %v561_v41 = vadd.f32 %v2015_v4, %v560_v39  ;;  %v3071_v4 = vand.u32 4294901760, %v1236_v30 }
 0x19e   :  { %v662_v48 = vadd.f32 %v661_v25, %v561_v41  ;;  %v1234_v25 = vld [vmem:[#allocation13 + $0x30] sm:$0xff]  ;;  %v1335_v41 = vand.u32 4294901760, %v1334_v18  ;;  %v3118_v18 = vand.u32 4294901760, %v1228_v58  ;;  %1289 = vmatpush.msra.mxu2 %v3071_v4 }
 0x1a0   :  { %v716_v60 = vadd.f32 %v715_v42, %v662_v48  ;;  %v3086_v48 = vand.u32 4294901760, %v1234_v25  ;;  %v1363_v42 = vand.u32 4294901760, %v3069_v56  ;;  %1336 = vmatpush.msra.mxu3 %v1335_v41 }
 0x1a2   :  { %v755_v59 = vadd.f32 %v754_v15, %v716_v60  ;;  %v3091_v60 = vsub.f32 %v1236_v30, %v3071_v4  ;;  %v3105_v33 = vsub.f32 %v1234_v25, %v3086_v48  ;;  %1342 = vmatpush.msra.mxu3 %v1341_v3  ;;  %v1364_v20 = vsub.f32 %v3069_v56, %v1363_v42 }
 0x1a3   :  { %v823_v45 = vpop.f32.mrf.mxu2  ;;  %v1370_v30 = vsub.f32 %v3084_v38, %v1369_v8  ;;  %1291 = vmatpush.msra.mxu2 %v3086_v48 }
 0x1a4   :  { %v824_v52 = vadd.f32 %v823_v45, %v755_v59  ;;  %v1352_v59 = vsub.f32 %v3062_v21, %v1351_v43  ;;  %v3096_v45 = vand.u32 4294901760, %v1232_v57  ;;  %1348 = vmatpush.msra.mxu3 %v1347_v46  ;;  %v1365_v25 = vand.u32 4294901760, %v1364_v20 }
 0x1a6   :  { %v861_v36 = vadd.f32 %v860_v0, %v824_v52  ;;  %v1375_v0 = vand.u32 4294901760, %v3091_v60  ;;  %v1353_v35 = vand.u32 4294901760, %v1352_v59  ;;  %v3146_v59 = vand.u32 4294901760, %v1259_v5  ;;  %1293 = vmatpush.msra.mxu2 %v3096_v45 }
 0x1a8   :  { %v863_v24 = vmax.f32 %v861_v36, 0.0  ;;  %v3116_v36 = vsub.f32 %v1232_v57, %v3096_v45  ;;  %1354 = vmatpush.msra.mxu3 %v1353_v35  ;;  %v1376_v41 = vsub.f32 %v3091_v60, %v1375_v0  ;;  %v3137_v57 = vsub.f32 %v1228_v58, %v3118_v18  ;;  %1295 = vmatpush.msra.mxu2 %v3112_v12 }
 0x1a9   :  { %v3162_v20 = vsub.f32 %v1259_v5, %v3146_v59 }
 0x1aa   :  { %v3073_v39 = vand.u32 4294901760, %v863_v24  ;;  %v1387_v9 = vand.u32 4294901760, %v3116_v36  ;;  %1360 = vmatpush.msra.mxu3 %v1359_v55  ;;  %v1377_v53 = vand.u32 4294901760, %v1376_v41  ;;  %v1399_v58 = vand.u32 4294901760, %v3137_v57  ;;  %1297 = vmatpush.msra.mxu2 %v3118_v18  ;;  %v1239_v41 = vld [vmem:[#allocation13 + $0x58] sm:$0xff] }
 0x1ab   :  { %v1650_v55 = vand.u32 4294901760, %v3162_v20 }
 0x1ac   :  { %v917_v37 = vsub.f32 %v863_v24, %v3073_v39  ;;  %1022 = vmatmul.f32.vlgmr.msrb.gmra.mxu1 %v3073_v39  ;;  %v1381_v24 = vand.u32 4294901760, %v3105_v33  ;;  %1366 = vmatpush.msra.mxu3 %v1365_v25  ;;  %v1388_v46 = vsub.f32 %v3116_v36, %v1387_v9  ;;  %v1400_v35 = vsub.f32 %v3137_v57, %v1399_v58 }
 0x1ad   :  { %1463 = vmatpush.msrb.mxu1 %v2988_v19  ;;  %v1651_v5 = vsub.f32 %v3162_v20, %v1650_v55 }
 0x1ae   :  { %1076 = vmatmul.f32.vlgmr.msrb.gmra.mxu2 %v917_v37  ;;  %v918_v15 = vand.u32 4294901760, %v917_v37  ;;  %v1382_v3 = vsub.f32 %v3105_v33, %v1381_v24 }
 0x1af   :  { %1465 = vmatpush.msrb.mxu1 %v2990_v11  ;;  %1504 = vmatpush.msrb.mxu2 %v1309_v23  ;;  %v1652_v25 = vand.u32 4294901760, %v1651_v5 }
 0x1b0   :  { %1115 = vmatmul.f32.vlgmr.msrb.gmra.mxu3 %v918_v15  ;;  %v919_v52 = vsub.f32 %v917_v37, %v918_v15  ;;  %v1371_v37 = vand.u32 4294901760, %v1370_v30  ;;  %v1393_v15 = vand.u32 4294901760, %v3127_v10  ;;  %v1401_v30 = vand.u32 4294901760, %v1400_v35  ;;  %v1235_v35 = vld [vmem:[#allocation13 + $0x38] sm:$0xff] }
 0x1b1   :  { %1467 = vmatpush.msrb.mxu1 %v2992_v51  ;;  %1508 = vmatpush.msrb.mxu2 %v1315_v16  ;;  %v1249_v16 = vld [vmem:[#allocation13 + $0xa8] sm:$0xff] }
 0x1b2   :  { %v920_v32 = vand.u32 4294901760, %v919_v52  ;;  %1372 = vmatpush.msra.mxu3 %v1371_v37  ;;  %v1383_v52 = vand.u32 4294901760, %v1382_v3  ;;  %v1394_v50 = vsub.f32 %v3127_v10, %v1393_v15  ;;  %v3321_v37 = vand.u32 4294901760, %v1239_v41 }
 0x1b3   :  { %1469 = vmatpush.msrb.mxu1 %v2994_v22  ;;  %1512 = vmatpush.msrb.mxu2 %v1321_v27 }
 0x1b4   :  { %921 = vmatmul.f32.vlgmr.msrb.gmra.mxu0 %v920_v32  ;;  %1221 = vmatmul.f32.vlgmr.msra.gmra.mxu1 %v3073_v39  ;;  %v1389_v32 = vand.u32 4294901760, %v1388_v46 }
 0x1b5   :  { %1410 = vmatpush.msrb.mxu0 %v3001_v49  ;;  %1471 = vmatpush.msrb.mxu1 %v2996_v47 }
 0x1b6   :  { %1378 = vmatpush.msra.mxu3 %v1377_v53  ;;  %1516 = vmatpush.msrb.mxu2 %v1327_v61  ;;  %v1237_v53 = vld [vmem:[#allocation13 + $0x48] sm:$0xff] }
 0x1b7   :  { %1413 = vmatpush.msrb.mxu0 %v3004_v63  ;;  %1473 = vmatpush.msrb.mxu1 %v2998_v14 }
 0x1b8   :  { %1384 = vmatpush.msra.mxu3 %v1383_v52  ;;  %1520 = vmatpush.msrb.mxu2 %v1333_v13  ;;  %v3334_v52 = vand.u32 4294901760, %v1237_v53 }
 0x1b9   :  { %1416 = vmatpush.msrb.mxu0 %v3007_v28  ;;  %1475 = vmatpush.msrb.mxu1 %v3010_v54 }
 0x1ba   :  { %1390 = vmatpush.msra.mxu3 %v1389_v32  ;;  %1524 = vmatpush.msrb.mxu2 %v1339_v2 }
 0x1bb   :  { %1419 = vmatpush.msrb.mxu0 %v3013_v31  ;;  %1477 = vmatpush.msrb.mxu1 %v3049_v62 }
 0x1bc   :  { %1184 = vmatmul.f32.vlgmr.msra.gmra.mxu0 %v3073_v39  ;;  %v1395_v39 = vand.u32 4294901760, %v1394_v50  ;;  %1528 = vmatpush.msrb.mxu2 %v1345_v26  ;;  %v3337_v50 = vsub.f32 %v1239_v41, %v3321_v37 }
 0x1bd   :  { %1422 = vmatpush.msrb.mxu0 %v3016_v1  ;;  %1479 = vmatpush.msrb.mxu1 %v3052_v6 }
 0x1be   :  { %1396 = vmatpush.msra.mxu3 %v1395_v39  ;;  %1532 = vmatpush.msrb.mxu2 %v1351_v43  ;;  %v1710_v5 = vand.u32 4294901760, %v3337_v50 }
 0x1bf   :  { %1425 = vmatpush.msrb.mxu0 %v3019_v34  ;;  %1481 = vmatpush.msrb.mxu1 %v3054_v7 }
 0x1c0   :  { %1402 = vmatpush.msra.mxu3 %v1401_v30  ;;  %1536 = vmatpush.msrb.mxu2 %v1357_v17 }
 0x1c1   :  { %1428 = vmatpush.msrb.mxu0 %v3028_v29  ;;  %1483 = vmatpush.msrb.mxu1 %v3059_v44  ;;  %v3274_v29 = vand.u32 4294901760, %v1249_v16 }
 0x1c2   :  { %1571 = vmatpush.msrb.mxu3 %v2988_v19  ;;  %v1257_v19 = vld [vmem:[#allocation13 + $0xe8] sm:$0xff]  ;;  %1540 = vmatpush.msrb.mxu2 %v1363_v42 }
 0x1c3   :  { %1431 = vmatpush.msrb.mxu0 %v3062_v21  ;;  %1485 = vmatpush.msrb.mxu1 %v3071_v4  ;;  %v3287_v21 = vsub.f32 %v1249_v16, %v3274_v29 }
 0x1c4   :  { %1573 = vmatpush.msrb.mxu3 %v2990_v11  ;;  %v3216_v11 = vand.u32 4294901760, %v1257_v19  ;;  %1544 = vmatpush.msrb.mxu2 %v1369_v8 }
 0x1c5   :  { %1434 = vmatpush.msrb.mxu0 %v3065_v40  ;;  %1487 = vmatpush.msrb.mxu1 %v3086_v48  ;;  %v1680_v43 = vand.u32 4294901760, %v3287_v21 }
 0x1c6   :  { %1575 = vmatpush.msrb.mxu3 %v2992_v51  ;;  %1548 = vmatpush.msrb.mxu2 %v1375_v0  ;;  %v1255_v51 = vld [vmem:[#allocation13 + $0xd8] sm:$0xff]  ;;  %v1241_v0 = vld [vmem:[#allocation13 + $0x68] sm:$0xff] }
 0x1c7   :  { %1437 = vmatpush.msrb.mxu0 %v3069_v56  ;;  %1489 = vmatpush.msrb.mxu1 %v3096_v45  ;;  %v1245_v56 = vld [vmem:[#allocation13 + $0x88] sm:$0xff] }
 0x1c8   :  { %1577 = vmatpush.msrb.mxu3 %v2994_v22  ;;  %1552 = vmatpush.msrb.mxu2 %v1381_v24  ;;  %v3247_v22 = vand.u32 4294901760, %v1255_v51  ;;  %v3294_v17 = vand.u32 4294901760, %v1245_v56 }
 0x1c9   :  { %1440 = vmatpush.msrb.mxu0 %v3084_v38  ;;  %1491 = vmatpush.msrb.mxu1 %v3112_v12 }
 0x1ca   :  { %1579 = vmatpush.msrb.mxu3 %v2996_v47  ;;  %1556 = vmatpush.msrb.mxu2 %v1387_v9  ;;  %v3250_v47 = vsub.f32 %v1257_v19, %v3216_v11  ;;  %v3257_v28 = vsub.f32 %v1255_v51, %v3247_v22  ;;  %v3347_v19 = vsub.f32 %v1237_v53, %v3334_v52  ;;  %v1233_v51 = vld [vmem:[#allocation13 + $0x28] sm:$0xff] }
 0x1cb   :  { %1443 = vmatpush.msrb.mxu0 %v3091_v60  ;;  %1493 = vmatpush.msrb.mxu1 %v3118_v18  ;;  %v1681_v60 = vsub.f32 %v3287_v21, %v1680_v43 }
 0x1cc   :  { %1581 = vmatpush.msrb.mxu3 %v2998_v14  ;;  %1560 = vmatpush.msrb.mxu2 %v1393_v15  ;;  %v1253_v14 = vld [vmem:[#allocation13 + $0xc8] sm:$0xff]  ;;  %v1656_v49 = vand.u32 4294901760, %v3250_v47  ;;  %v1662_v1 = vand.u32 4294901760, %v3257_v28 }
 0x1cd   :  { %1653 = vmatpush.msra.mxu1 %v1652_v25  ;;  %1446 = vmatpush.msrb.mxu0 %v3105_v33  ;;  %v3254_v63 = vand.u32 4294901760, %v1253_v14  ;;  %v3307_v33 = vsub.f32 %v1245_v56, %v3294_v17  ;;  %v3344_v25 = vand.u32 4294901760, %v1235_v35 }
 0x1ce   :  { %1583 = vmatpush.msrb.mxu3 %v3010_v54  ;;  %1564 = vmatpush.msrb.mxu2 %v1399_v58  ;;  %v1251_v54 = vld [vmem:[#allocation13 + $0xb8] sm:$0xff]  ;;  %v1657_v31 = vsub.f32 %v3250_v47, %v1656_v49  ;;  %v1663_v61 = vsub.f32 %v3257_v28, %v1662_v1 }
 0x1cf   :  { %1449 = vmatpush.msrb.mxu0 %v3116_v36  ;;  %v3264_v34 = vand.u32 4294901760, %v1251_v54  ;;  %v3267_v23 = vsub.f32 %v1253_v14, %v3254_v63  ;;  %v3356_v16 = vsub.f32 %v1235_v35, %v3344_v25 }
 0x1d0   :  { %1585 = vmatpush.msrb.mxu3 %v3049_v62  ;;  %v1658_v27 = vand.u32 4294901760, %v1657_v31  ;;  %v1664_v26 = vand.u32 4294901760, %v1663_v61  ;;  %v3353_v31 = vand.u32 4294901760, %v1233_v51  ;;  %v1231_v61 = vld [vmem:[#allocation13 + $0x18] sm:$0xff] }
 0x1d1   :  { %1452 = vmatpush.msrb.mxu0 %v3127_v10  ;;  %v1668_v13 = vand.u32 4294901760, %v3267_v23  ;;  %v3277_v2 = vsub.f32 %v1251_v54, %v3264_v34  ;;  %v1692_v10 = vand.u32 4294901760, %v3307_v33  ;;  %v1711_v54 = vsub.f32 %v3337_v50, %v1710_v5 }
 0x1d2   :  { %1587 = vmatpush.msrb.mxu3 %v3052_v6  ;;  %1659 = vmatpush.msra.mxu1 %v1658_v27  ;;  %v1247_v6 = vld [vmem:[#allocation13 + $0x98] sm:$0xff]  ;;  %v1716_v27 = vand.u32 4294901760, %v3347_v19 }
 0x1d3   :  { %1455 = vmatpush.msrb.mxu0 %v3137_v57  ;;  %v1669_v62 = vsub.f32 %v3267_v23, %v1668_v13  ;;  %v1693_v15 = vsub.f32 %v3307_v33, %v1692_v10 }
 0x1d4   :  { %1589 = vmatpush.msrb.mxu3 %v3054_v7  ;;  %v1674_v7 = vand.u32 4294901760, %v3277_v2  ;;  %1665 = vmatpush.msra.mxu1 %v1664_v26  ;;  %v1712_v26 = vand.u32 4294901760, %v1711_v54  ;;  %v1717_v56 = vsub.f32 %v3347_v19, %v1716_v27 }
 0x1d5   :  { %1608 = vmatpush.msra.mxu0 %v3146_v59  ;;  %v1670_v40 = vand.u32 4294901760, %v1669_v62  ;;  %v1694_v32 = vand.u32 4294901760, %v1693_v15  ;;  %v1722_v62 = vand.u32 4294901760, %v3356_v16 }
 0x1d6   :  { %1591 = vmatpush.msrb.mxu3 %v3059_v44  ;;  %v3284_v44 = vand.u32 4294901760, %v1247_v6 }
 0x1d7   :  { %1610 = vmatpush.msra.mxu0 %v3216_v11  ;;  %1671 = vmatpush.msra.mxu1 %v1670_v40  ;;  %v3364_v40 = vsub.f32 %v1233_v51, %v3353_v31  ;;  %v2016_v51 = vld [vmem:[%s3510_s7] ss:$0 sm:$0xff] }
 0x1d8   :  { %1593 = vmatpush.msrb.mxu3 %v3071_v4  ;;  %v1675_v4 = vsub.f32 %v3277_v2, %v1674_v7  ;;  %v3297_v38 = vsub.f32 %v1247_v6, %v3284_v44  ;;  %v3361_v6 = vand.u32 4294901760, %v1231_v61 }
 0x1d9   :  { %1612 = vmatpush.msra.mxu0 %v3247_v22 }
 0x1da   :  { %1595 = vmatpush.msrb.mxu3 %v3086_v48  ;;  %v1243_v48 = vld [vmem:[#allocation13 + $0x78] sm:$0xff]  ;;  %v1676_v42 = vand.u32 4294901760, %v1675_v4  ;;  %v1229_v4 = vld [vmem:[#allocation13 + $0x8] sm:$0xff] }
 0x1db   :  { %1614 = vmatpush.msra.mxu0 %v3254_v63  ;;  %v3304_v8 = vand.u32 4294901760, %v1243_v48 }
 0x1dc   :  { %1597 = vmatpush.msrb.mxu3 %v3096_v45  ;;  %v1686_v45 = vand.u32 4294901760, %v3297_v38  ;;  %1677 = vmatpush.msra.mxu1 %v1676_v42  ;;  %v1728_v42 = vand.u32 4294901760, %v3364_v40 }
 0x1dd   :  { %1616 = vmatpush.msra.mxu0 %v3264_v34  ;;  %v3316_v24 = vsub.f32 %v1243_v48, %v3304_v8  ;;  %v1723_v48 = vsub.f32 %v3356_v16, %v1722_v62 }
 0x1de   :  { %1599 = vmatpush.msrb.mxu3 %v3112_v12  ;;  %v1682_v12 = vand.u32 4294901760, %v1681_v60  ;;  %v1687_v36 = vsub.f32 %v3297_v38, %v1686_v45  ;;  %v3374_v60 = vand.u32 4294901760, %v1229_v4  ;;  %v1729_v41 = vsub.f32 %v3364_v40, %v1728_v42 }
 0x1df   :  { %1618 = vmatpush.msra.mxu0 %v3274_v29  ;;  %v1698_v57 = vand.u32 4294901760, %v3316_v24 }
 0x1e0   :  { %1601 = vmatpush.msrb.mxu3 %v3118_v18  ;;  %v3313_v18 = vand.u32 4294901760, %v1241_v0  ;;  %1683 = vmatpush.msra.mxu1 %v1682_v12  ;;  %v1688_v9 = vand.u32 4294901760, %v1687_v36  ;;  %v1718_v12 = vand.u32 4294901760, %v1717_v56  ;;  %v1724_v36 = vand.u32 4294901760, %v1723_v48 }
 0x1e1   :  { %1620 = vmatpush.msra.mxu0 %v3284_v44  ;;  %v1699_v46 = vsub.f32 %v3316_v24, %v1698_v57  ;;  %v3385_v15 = vsub.f32 %v1229_v4, %v3374_v60  ;;  %v1730_v53 = vand.u32 4294901760, %v1729_v41 }
 0x1e2   :  { %v3324_v3 = vsub.f32 %v1241_v0, %v3313_v18  ;;  %1689 = vmatpush.msra.mxu1 %v1688_v9  ;;  %v3377_v0 = vsub.f32 %v1231_v61, %v3361_v6 }
 0x1e3   :  { %1622 = vmatpush.msra.mxu0 %v3294_v17  ;;  %v1700_v39 = vand.u32 4294901760, %v1699_v46 }
 0x1e4   :  { %v1704_v58 = vand.u32 4294901760, %v3324_v3  ;;  %1695 = vmatpush.msra.mxu1 %v1694_v32  ;;  %v1734_v9 = vand.u32 4294901760, %v3377_v0  ;;  %v3514_v32 = vand.u32 4294901760, %v3385_v15 }
 0x1e5   :  { %1624 = vmatpush.msra.mxu0 %v3304_v8 }
 0x1e6   :  { %v1705_v30 = vsub.f32 %v3324_v3, %v1704_v58  ;;  %1701 = vmatpush.msra.mxu1 %v1700_v39  ;;  %v1735_v46 = vsub.f32 %v3377_v0, %v1734_v9  ;;  %v1741_v39 = vsub.f32 %v3385_v15, %v3514_v32 }
 0x1e7   :  { %1626 = vmatpush.msra.mxu0 %v3313_v18 }
 0x1e8   :  { %v1706_v14 = vand.u32 4294901760, %v1705_v30  ;;  %v1736_v35 = vand.u32 4294901760, %v1735_v46  ;;  %v1742_v30 = vand.u32 4294901760, %v1741_v39 }
 0x1e9   :  { %1628 = vmatpush.msra.mxu0 %v3321_v37 }
 0x1ea   :  { %1707 = vmatpush.msra.mxu1 %v1706_v14 }
 0x1eb   :  { %1630 = vmatpush.msra.mxu0 %v3334_v52 }
 0x1ec   :  { %1713 = vmatpush.msra.mxu1 %v1712_v26 }
 0x1ed   :  { %1632 = vmatpush.msra.mxu0 %v3344_v25 }
 0x1ee   :  { %1719 = vmatpush.msra.mxu1 %v1718_v12 }
 0x1ef   :  { %1634 = vmatpush.msra.mxu0 %v3353_v31 }
 0x1f0   :  { %1725 = vmatpush.msra.mxu1 %v1724_v36 }
 0x1f1   :  { %1636 = vmatpush.msra.mxu0 %v3361_v6 }
 0x1f2   :  { %1731 = vmatpush.msra.mxu1 %v1730_v53 }
 0x1f3   :  { %1638 = vmatpush.msra.mxu0 %v3374_v60 }
 0x1f4   :  { %1737 = vmatpush.msra.mxu1 %v1736_v35 }
 0x1f6   :  { %1743 = vmatpush.msra.mxu1 %v1742_v30 }
 0x229   :  { %v1023_v14 = vpop.f32.mrf.mxu1 }
 0x231   :  { %v922_v54 = vpop.f32.mrf.mxu0  ;;  %v1077_v56 = vpop.f32.mrf.mxu2 }
 0x232   :  { %v923_v61 = vadd.f32 %v2016_v51, %v922_v54  ;;  %v1222_v46 = vpop.f32.mrf.mxu1 }
 0x233   :  { %v1116_v48 = vpop.f32.mrf.mxu3 }
 0x234   :  { %v1024_v26 = vadd.f32 %v1023_v14, %v923_v61 }
 0x236   :  { %v1078_v4 = vadd.f32 %v1077_v56, %v1024_v26 }
 0x238   :  { %v1117_v12 = vadd.f32 %v1116_v48, %v1078_v4 }
 0x239   :  { %v1185_v36 = vpop.f32.mrf.mxu0 }
 0x23a   :  { %v1186_v41 = vadd.f32 %v1185_v36, %v1117_v12 }
 0x23c   :  { %v1223_v32 = vadd.f32 %v1222_v46, %v1186_v41 }
 0x23e   :  { %v1225_v53 = vmax.f32 %v1223_v32, 0.0 }
 0x240   :  { %v3397_v39 = vand.u32 4294901760, %v1225_v53 }
 0x242   :  { %v3400_v35 = vsub.f32 %v1225_v53, %v3397_v39  ;;  %1404 = vmatmul.f32.vlgmr.msra.gmra.mxu3 %v3397_v39 }
 0x243   :  { %1804 = vmatpush.msra.mxu3 %v3146_v59 }
 0x244   :  { %1458 = vmatmul.f32.vlgmr.msrb.gmra.mxu0 %v3400_v35  ;;  %v3406_v30 = vand.u32 4294901760, %v3400_v35 }
 0x245   :  { %1806 = vmatpush.msra.mxu3 %v3216_v11  ;;  %1845 = vmatpush.msrb.mxu0 %v1650_v55 }
 0x246   :  { %1497 = vmatmul.f32.vlgmr.msrb.gmra.mxu1 %v3406_v30  ;;  %v1301_v32 = vsub.f32 %v3400_v35, %v3406_v30 }
 0x247   :  { %1808 = vmatpush.msra.mxu3 %v3247_v22  ;;  %1849 = vmatpush.msrb.mxu0 %v1656_v49 }
 0x248   :  { %1912 = vmatpush.msrb.mxu1 %v3146_v59  ;;  %v1302_v51 = vand.u32 4294901760, %v1301_v32  ;;  %v3515_v59 = vand.u32 4294901760, %v3385_v15 }
 0x249   :  { %1810 = vmatpush.msra.mxu3 %v3254_v63  ;;  %1853 = vmatpush.msrb.mxu0 %v1662_v1 }
 0x24a   :  { %1914 = vmatpush.msrb.mxu1 %v3216_v11  ;;  %1303 = vmatmul.f32.vlgmr.msra.gmra.mxu2 %v1302_v51 }
 0x24b   :  { %1603 = vmatmul.f32.vlgmr.msrb.gmra.mxu3 %v3397_v39  ;;  %1751 = vmatpush.msra.mxu2 %v3162_v20  ;;  %v1260_v20 = vld [vmem:[%s3512_s9] sm:$0x3]  ;;  %s2211_s9 = smov [#allocation15]  }
 0x24c   :  { %1812 = vmatpush.msra.mxu3 %v3264_v34  ;;  %1857 = vmatpush.msrb.mxu0 %v1668_v13  ;;  %v1262_v55 = vperm.slane %v1260_v20, 0  ;;  %s1955_s17 = sshll.u32 %s2211_s9, 4  ;;  %s1956_s17 = int_to_ptr.vmem [resolvable:$true] %s1955_s17 }
 0x24d   :  { %1916 = vmatpush.msrb.mxu1 %v3247_v22  ;;  %1644 = vmatmul.f32.vlgmr.msra.gmra.mxu0 %v1302_v51 }
 0x24e   :  { %1754 = vmatpush.msra.mxu2 %v3250_v47  ;;  %1814 = vmatpush.msra.mxu3 %v3274_v29 }
 0x24f   :  { %1861 = vmatpush.msrb.mxu0 %v1674_v7  ;;  %1918 = vmatpush.msrb.mxu1 %v3254_v63  ;;  %v1263_v7 = vperm.slane %v1260_v20, 1 }
 0x250   :  { %1745 = vmatmul.f32.vlgmr.msra.gmra.mxu1 %v3397_v39  ;;  %1757 = vmatpush.msra.mxu2 %v3257_v28 }
 0x251   :  { %1816 = vmatpush.msra.mxu3 %v3284_v44  ;;  %1865 = vmatpush.msrb.mxu0 %v1680_v43 }
 0x252   :  { %1920 = vmatpush.msrb.mxu1 %v3264_v34  ;;  %1760 = vmatpush.msra.mxu2 %v3267_v23 }
 0x253   :  { %1818 = vmatpush.msra.mxu3 %v3294_v17  ;;  %1869 = vmatpush.msrb.mxu0 %v1686_v45 }
 0x254   :  { %1922 = vmatpush.msrb.mxu1 %v3274_v29  ;;  %1566 = vmatmul.f32.vlgmr.msrb.gmra.mxu2 %v3397_v39 }
 0x255   :  { %1763 = vmatpush.msra.mxu2 %v3277_v2  ;;  %1820 = vmatpush.msra.mxu3 %v3304_v8 }
 0x256   :  { %1873 = vmatpush.msrb.mxu0 %v1692_v10  ;;  %1924 = vmatpush.msrb.mxu1 %v3284_v44 }
 0x257   :  { %1766 = vmatpush.msra.mxu2 %v3287_v21  ;;  %1822 = vmatpush.msra.mxu3 %v3313_v18 }
 0x258   :  { %1877 = vmatpush.msrb.mxu0 %v1698_v57  ;;  %1926 = vmatpush.msrb.mxu1 %v3294_v17 }
 0x259   :  { %1769 = vmatpush.msra.mxu2 %v3297_v38  ;;  %1824 = vmatpush.msra.mxu3 %v3321_v37 }
 0x25a   :  { %1881 = vmatpush.msrb.mxu0 %v1704_v58  ;;  %1928 = vmatpush.msrb.mxu1 %v3304_v8 }
 0x25b   :  { %1772 = vmatpush.msra.mxu2 %v3307_v33  ;;  %1826 = vmatpush.msra.mxu3 %v3334_v52 }
 0x25c   :  { %1885 = vmatpush.msrb.mxu0 %v1710_v5  ;;  %1930 = vmatpush.msrb.mxu1 %v3313_v18 }
 0x25d   :  { %1775 = vmatpush.msra.mxu2 %v3316_v24  ;;  %1828 = vmatpush.msra.mxu3 %v3344_v25 }
 0x25e   :  { %1889 = vmatpush.msrb.mxu0 %v1716_v27  ;;  %1932 = vmatpush.msrb.mxu1 %v3321_v37 }
 0x25f   :  { %1778 = vmatpush.msra.mxu2 %v3324_v3  ;;  %1830 = vmatpush.msra.mxu3 %v3353_v31 }
 0x260   :  { %1893 = vmatpush.msrb.mxu0 %v1722_v62  ;;  %1934 = vmatpush.msrb.mxu1 %v3334_v52 }
 0x261   :  { %1781 = vmatpush.msra.mxu2 %v3337_v50  ;;  %1832 = vmatpush.msra.mxu3 %v3361_v6 }
 0x262   :  { %1897 = vmatpush.msrb.mxu0 %v1728_v42  ;;  %1936 = vmatpush.msrb.mxu1 %v3344_v25 }
 0x263   :  { %1784 = vmatpush.msra.mxu2 %v3347_v19  ;;  %1834 = vmatpush.msra.mxu3 %v3374_v60 }
 0x264   :  { %1901 = vmatpush.msrb.mxu0 %v1734_v9  ;;  %1938 = vmatpush.msrb.mxu1 %v3353_v31 }
 0x265   :  { %1838 = vmatmul.f32.vlgmr.msra.gmra.mxu3 %v3406_v30  ;;  %1787 = vmatpush.msra.mxu2 %v3356_v16 }
 0x266   :  { %1905 = vmatpush.msrb.mxu0 %v3515_v59  ;;  %1940 = vmatpush.msrb.mxu1 %v3361_v6 }
 0x267   :  { %1907 = vmatmul.f32.vlgmr.msrb.gmra.mxu0 %v3397_v39  ;;  %1790 = vmatpush.msra.mxu2 %v3364_v40 }
 0x268   :  { %1942 = vmatpush.msrb.mxu1 %v3374_v60 }
 0x269   :  { %1944 = vmatmul.f32.vlgmr.msrb.gmra.mxu1 %v3397_v39  ;;  %1793 = vmatpush.msra.mxu2 %v3377_v0 }
 0x26b   :  { %1796 = vmatpush.msra.mxu2 %v3385_v15 }
 0x26c   :  { %1799 = vmatmul.f32.vlgmr.msra.gmra.mxu2 %v3400_v35 }
 0x2c1   :  { %v1459_v63 = vpop.f32.mrf.mxu0 }
 0x2c3   :  { %v1498_v1 = vpop.f32.mrf.mxu1 }
 0x2c5   :  { %v1405_v47 = vpop.f32.mrf.mxu3 }
 0x2ca   :  { %v1645_v44 = vpop.f32.mrf.mxu0 }
 0x2cb   :  { %v1646_v21 = vadd.f32 %v1645_v44, %v1263_v7 }
 0x2cd   :  { %v1304_v11 = vpop.f32.mrf.mxu2  ;;  %v1746_v43 = vpop.f32.mrf.mxu1 }
 0x2ce   :  { %v1305_v22 = vadd.f32 %v1304_v11, %v1262_v55  ;;  %v1604_v29 = vpop.f32.mrf.mxu3  ;;  %v1747_v17 = vadd.f32 %v1746_v43, %v1646_v21 }
 0x2d0   :  { %v1406_v49 = vadd.f32 %v1405_v47, %v1305_v22 }
 0x2d2   :  { %v1460_v28 = vadd.f32 %v1459_v63, %v1406_v49 }
 0x2d4   :  { %v1499_v34 = vadd.f32 %v1498_v1, %v1460_v28 }
 0x2d7   :  { %v1567_v23 = vpop.f32.mrf.mxu2 }
 0x2d8   :  { %v1568_v13 = vadd.f32 %v1567_v23, %v1499_v34 }
 0x2da   :  { %v1605_v2 = vadd.f32 %v1604_v29, %v1568_v13 }
 0x2dc   :  { %1948 = vst [vmem:[#allocation15] sm:$0xff] %v1605_v2 }
 0x2e4   :  { %v1908_v18 = vpop.f32.mrf.mxu0 }
 0x2e6   :  { %v1945_v10 = vpop.f32.mrf.mxu1 }
 0x2e8   :  { %v1839_v8 = vpop.f32.mrf.mxu3 }
 0x2ef   :  { %v1800_v38 = vpop.f32.mrf.mxu2 }
 0x2f0   :  { %v1801_v45 = vadd.f32 %v1800_v38, %v1747_v17 }
 0x2f2   :  { %v1840_v33 = vadd.f32 %v1839_v8, %v1801_v45 }
 0x2f4   :  { %v1909_v24 = vadd.f32 %v1908_v18, %v1840_v33 }
 0x2f6   :  { %v1946_v57 = vadd.f32 %v1945_v10, %v1909_v24 }
 0x2f8   :  { %1949 = vst [vmem:[#allocation15 + $0x8] sm:$0xff] %v1946_v57 }
 0x2f9   :  { %1960 = dma.vmem_to_hbm [thread:$0]  %s1956_s17, 256, %s1958_s18, [#allocation9]  }
 0x2fa   :  { %2191 = dma.done.wait [#allocation9], 256  }
 0x2fb   :  { %2192 = vsyncadd [#allocation9], 4294967040 }
 0x2fc   :  { %1965 = vsyncpa [#allocation8], 1 }
 0x2fd   :  { %1966 = vsyncpa [#allocation11], 1 }
 0x2fe   :  { %1967 = vsyncpa [#allocation14], 1 }
 0x2ff   :  { %1968 = vsyncpa [#allocation9], 1 }
 0x300   :  { %1969 = vsyncmov [#allocation4] }
 0x303   :  { %s1970_s19 = vpop.sfrf %1969 }
 0x304   :  { %p1987_p12 = scmp.ne.s32.totalorder %s1970_s19, 0 }
 0x306   :  { %1974 = shalt.err (%p1987_p12)  }

// kernel: tpu_custom_call.1
= control target key start
LH: loop header
LB: loop body
LE: loop exit
PB: predicated region body
PF: predicated region fallthrough
CT: control target
= control target key end

     0   :  { %s2201_s16 = smov [#allocation6]   ;;  %s3503_s0 = inlined_call_operand.hbm [shape: s32[8], index: 0, kind: input, shape index: {}]   ;;  %s3504_s1 = inlined_call_operand.hbm [shape: f32[256,128], index: 1, kind: input, shape index: {}]   ;;  %s3505_s2 = inlined_call_operand.hbm [shape: f32[128,128], index: 2, kind: input, shape index: {}]   ;;  %s3506_s3 = inlined_call_operand.vmem [shape: f32[1,128], index: 3, kind: input, shape index: {}]   ;;  %s3507_s4 = inlined_call_operand.hbm [shape: f32[128,128], index: 4, kind: input, shape index: {}]   ;;  %s3508_s5 = inlined_call_operand.vmem [shape: f32[1,128], index: 5, kind: input, shape index: {}]   ;;  %s3509_s6 = inlined_call_operand.hbm [shape: f32[128,128], index: 6, kind: input, shape index: {}]   ;;  %s3510_s7 = inlined_call_operand.vmem [shape: f32[1,128], index: 7, kind: input, shape index: {}]   ;;  %s3511_s8 = inlined_call_operand.hbm [shape: f32[128,256], index: 8, kind: input, shape index: {}]   ;;  %s3512_s9 = inlined_call_operand.vmem [shape: f32[1,256], index: 9, kind: input, shape index: {}]   ;;  %s3513_s10 = inlined_call_operand.hbm [shape: f32[8,256], index: 10, kind: output, shape index: {}]  }
   0x1   :  { %s16_s15 = sshll.u32 %s3503_s0, 4  ;;  %s17_s15 = int_to_ptr.hbm [resolvable:$true] %s16_s15 }
   0x2   :  { %19 = dma.hbm_to_smem %s17_s15, 16, %s2201_s16, [#allocation5] }
   0x3   :  { %2181 = dma.done.wait [#allocation5], 16 }
   0x4   :  { %2182 = vsyncadd [#allocation5], 4294967280 }
   0x5   :  { %22 = sfence }
   0x6   :  { %23 = vsyncpa [#allocation8], 0 }
   0x7   :  { %24 = vsyncpa [#allocation11], 0 }
   0x8   :  { %25 = vsyncpa [#allocation14], 0 }
   0x9   :  { %26 = vsyncpa [#allocation9], 0  ;;  %s46_s19 = sshll.u32 %s3507_s4, 4  ;;  %s2202_s20 = smov [#allocation10]   ;;  %s47_s19 = int_to_ptr.hbm [resolvable:$true] %s46_s19 }
   0xa   :  { %s48_s21 = sshll.u32 %s2202_s20, 4  ;;  %s31_s23 = sshll.u32 %s3505_s2, 4  ;;  %s49_s21 = int_to_ptr.vmem [resolvable:$true] %s48_s21  ;;  %s32_s23 = int_to_ptr.hbm [resolvable:$true] %s31_s23 }
   0xb   :  { %s2203_s24 = smov 128   ;;  %s2204_s25 = smov 8  }
   0xc   :  { %54 = dma.hbm_to_vmem [thread:$0]  %s47_s19, 2048, %s49_s21, [#allocation11], %s2203_s24, %s2203_s24, %s2204_s25  }
   0xd   :  { %s2205_s26 = smov [#allocation7]   ;;  %s61_s30 = sshll.u32 %s3509_s6, 4  ;;  %s62_s30 = int_to_ptr.hbm [resolvable:$true] %s61_s30 }
   0xe   :  { %s33_s27 = sshll.u32 %s2205_s26, 4  ;;  %s76_s12 = sshll.u32 %s3511_s8, 4  ;;  %s34_s27 = int_to_ptr.vmem [resolvable:$true] %s33_s27  ;;  %s77_s12 = int_to_ptr.hbm [resolvable:$true] %s76_s12 }
   0xf   :  { %39 = dma.hbm_to_vmem [thread:$0]  %s32_s23, 2048, %s34_s27, [#allocation8], %s2203_s24, %s2203_s24, %s2204_s25  }
  0x10   :  { %s2206_s13 = smov [#allocation12]   ;;  %s2207_s2 = smov [#allocation13]  }
  0x11   :  { %s63_s14 = sshll.u32 %s2206_s13, 4  ;;  %s78_s15 = sshll.u32 %s2207_s2, 4  ;;  %s64_s14 = int_to_ptr.vmem [resolvable:$true] %s63_s14  ;;  %s79_s15 = int_to_ptr.vmem [resolvable:$true] %s78_s15 }
  0x12   :  { %69 = dma.hbm_to_vmem [thread:$0]  %s62_s30, 2048, %s64_s14, [#allocation11], %s2203_s24, %s2203_s24, %s2204_s25  }
  0x13   :  { %s2208_s16 = smov 256   ;;  %s2209_s17 = smov 16  }
  0x14   :  { %84 = dma.hbm_to_vmem [thread:$0]  %s77_s12, 4096, %s79_s15, [#allocation14], %s2208_s16, %s2208_s16, %s2209_s17  }
  0x15   :  { %2183 = dma.done.wait [#allocation8], 2048  }
  0x16   :  { %2184 = vsyncadd [#allocation8], 4294965248 }
  0x17   :  { %2185 = dma.done.wait [#allocation11], 4096  }
  0x18   :  { %2186 = vsyncadd [#allocation11], 4294963200 }
  0x19   :  { %2187 = dma.done.wait [#allocation14], 4096  }
  0x1a   :  { %2188 = vsyncadd [#allocation14], 4294963200  ;;  %s2282_s6 = smov 0  }
  0x1b LB: > { %s115_s8 = sld [smem:[#allocation6 + %s2195_s6]]  ;;  %s117_s18 = scalar_lea.vmem [#allocation2], %s2195_s6  ;;  %s2195_s6 = sphi %s2282_s6, %s113_s6  }
  0x1c   : > { %s127_s19 = sshll.u32 %s117_s18, 4  ;;  %s2129_s27 = scalar_lea.hbm %s3504_s1, 256  ;;  %s128_s19 = int_to_ptr.vmem [resolvable:$true] %s127_s19 }
  0x21   : > { %s116_s22 = scalar_lea.hbm %s3504_s1, %s115_s8 }
  0x22   : > { %s125_s0 = sshll.u32 %s116_s22, 4  ;;  %s126_s0 = int_to_ptr.hbm [resolvable:$true] %s125_s0 }
  0x23   : > { %s2125_s23 = sshra.s32 %s126_s0, 4  ;;  %s2126_s23 = int_to_ptr.hbm [resolvable:$true] %s2125_s23 }
  0x24   : > { %s2127_s24 = scalar_lea.hbm %s2126_s23, 1  ;;  %p2130_p1 = scmp.lt.s32.totalorder %s2126_s23, %s3504_s1 }
  0x25   : > { %p2128_p0 = scmp.ne.s32.totalorder %s2126_s23, %s2127_s24  ;;  %p2131_p2 = scmp.lt.s32.totalorder %s2129_s27, %s2127_s24 }
  0x27   : > { %p2132_p3 = por %p2131_p2, %p2130_p1 }
  0x29   : > { %p2133_p4 = pnand %p2132_p3, %p2128_p0 }
  0x2b   : > { %2136 = shalt.err (!%p2133_p4)  }
  0x2c   : > { %s2137_s30 = sshra.s32 %s128_s19, 4  ;;  %s2210_s11 = smov [#allocation2]   ;;  %s2138_s30 = int_to_ptr.vmem [resolvable:$true] %s2137_s30 }
  0x2d   : > { %s2139_s4 = scalar_lea.vmem %s2138_s30, 1  ;;  %s2141_s12 = scalar_lea.vmem %s2210_s11, 8 }
  0x2e   : > { %p2140_p5 = scmp.ne.s32.totalorder %s2138_s30, %s2139_s4  ;;  %p2142_p6 = scmp.lt.s32.totalorder %s2138_s30, [#allocation2] }
  0x2f   : > { %p2143_p7 = scmp.lt.s32.totalorder %s2141_s12, %s2139_s4 }
  0x31   : > { %p2144_p8 = por %p2143_p7, %p2142_p6 }
  0x33   : > { %p2145_p9 = pnand %p2144_p8, %p2140_p5 }
  0x35   : > { %2148 = shalt.err (!%p2145_p9)  }
  0x36   : > { %130 = dma.hbm_to_vmem [thread:$0]  %s126_s0, 16, %s128_s19, [#allocation4] }
  0x37   : > { %s113_s6 = sadd.s32 1, %s2195_s6  }
  0x38   : > { %p110_p10 = scmp.ge.s32.totalorder %s113_s6, 8  }
  0x39   :  { %s2197_s13 = smov (%p110_p10), 0  }
  0x3a   :  { %112 = sbr.rel (!%p110_p10) target bundleno = 27 (0x1b), region = 92 }
  0x3f LB: > { %2189 = dma.done.wait [#allocation4], 16  ;;  %s2199_s13 = sphi %s2197_s13, %s136_s13  }
  0x40   : > { %2190 = vsyncadd [#allocation4], 4294967280  ;;  %s136_s13 = sadd.s32 1, %s2199_s13  }
  0x41   : > { %p133_p11 = scmp.ge.s32.totalorder %s136_s13, 8  }
  0x42   :  { %v155_v0 = vld [vmem:[#allocation7 + $0x78] sm:$0xff] (%p133_p11)  ;;  %v154_v1 = vld [vmem:[#allocation7 + $0x70] sm:$0xff] (%p133_p11)  ;;  %v153_v2 = vld [vmem:[#allocation7 + $0x68] sm:$0xff] (%p133_p11)  ;;  %s1957_s18 = sshll.u32 (%p133_p11), %s3513_s10, 4  ;;  %s1958_s18 = int_to_ptr.hbm [resolvable:$true] %s1957_s18 }
  0x43   :  { %135 = sbr.rel (!%p133_p11) target bundleno = 63 (0x3f), region = 103  ;;  %v2301_v3 = vand.u32 (%p133_p11), 4294901760, %v155_v0  ;;  %v2303_v4 = vand.u32 (%p133_p11), 4294901760, %v154_v1  ;;  %v2305_v5 = vand.u32 (%p133_p11), 4294901760, %v153_v2  ;;  %v152_v6 = vld [vmem:[#allocation7 + $0x60] sm:$0xff] (%p133_p11)  ;;  %v151_v7 = vld [vmem:[#allocation7 + $0x58] sm:$0xff] (%p133_p11) }
  0x44   :  { %v150_v8 = vld [vmem:[#allocation7 + $0x50] sm:$0xff] (%p133_p11)  ;;  %v2307_v9 = vand.u32 (%p133_p11), 4294901760, %v152_v6  ;;  %v2309_v10 = vand.u32 (%p133_p11), 4294901760, %v151_v7  ;;  %v149_v12 = vld [vmem:[#allocation7 + $0x48] sm:$0xff] (%p133_p11)  ;;  %v148_v13 = vld [vmem:[#allocation7 + $0x40] sm:$0xff] (%p133_p11) }
  0x45   :  { %v2311_v11 = vand.u32 (%p133_p11), 4294901760, %v150_v8  ;;  %161 = vmatpush.msra.mxu0 (%p133_p11), %v2301_v3  ;;  %v2315_v14 = vsub.f32 (%p133_p11), %v155_v0, %v2301_v3  ;;  %v2318_v15 = vsub.f32 (%p133_p11), %v154_v1, %v2303_v4  ;;  %v2321_v16 = vsub.f32 (%p133_p11), %v153_v2, %v2305_v5  ;;  %357 = vmatpush.msra.mxu3 (%p133_p11), %v2301_v3  ;;  %v147_v21 = vld [vmem:[#allocation7 + $0x38] sm:$0xff] (%p133_p11)  ;;  %v146_v34 = vld [vmem:[#allocation7 + $0x30] sm:$0xff] (%p133_p11)  ;;  %v145_v35 = vld [vmem:[#allocation7 + $0x28] sm:$0xff] (%p133_p11) }
  0x46   :  { %v2323_v17 = vand.u32 (%p133_p11), 4294901760, %v149_v12  ;;  %v2327_v18 = vsub.f32 (%p133_p11), %v152_v6, %v2307_v9  ;;  %v2330_v19 = vsub.f32 (%p133_p11), %v151_v7, %v2309_v10  ;;  %v2332_v20 = vand.u32 (%p133_p11), 4294901760, %v148_v13  ;;  %v144_v42 = vld [vmem:[#allocation7 + $0x20] sm:$0xff] (%p133_p11)  ;;  %v143_v47 = vld [vmem:[#allocation7 + $0x18] sm:$0xff] (%p133_p11)  ;;  %v142_v53 = vld [vmem:[#allocation7 + $0x10] sm:$0xff] (%p133_p11) }
  0x47   :  { %163 = vmatpush.msra.mxu0 (%p133_p11), %v2303_v4  ;;  %v203_v22 = vand.u32 (%p133_p11), 4294901760, %v2315_v14  ;;  %v209_v23 = vand.u32 (%p133_p11), 4294901760, %v2318_v15  ;;  %v215_v24 = vand.u32 (%p133_p11), 4294901760, %v2321_v16  ;;  %v2339_v25 = vsub.f32 (%p133_p11), %v150_v8, %v2311_v11  ;;  %304 = vmatpush.msra.mxu2 (%p133_p11), %v2315_v14  ;;  %v141_v61 = vld [vmem:[#allocation7 + $0x8] sm:$0xff] (%p133_p11)  ;;  %v140_v2 = vld [vmem:[#allocation7] sm:$0xff] (%p133_p11) }
  0x48   :  { %v221_v26 = vand.u32 4294901760, %v2327_v18  ;;  %v227_v27 = vand.u32 4294901760, %v2330_v19  ;;  %v2345_v28 = vsub.f32 %v149_v12, %v2323_v17  ;;  %359 = vmatpush.msra.mxu3 %v2303_v4  ;;  %v2358_v32 = vand.u32 4294901760, %v147_v21 }
  0x49   :  { %v204_v29 = vsub.f32 %v2315_v14, %v203_v22  ;;  %165 = vmatpush.msra.mxu0 %v2305_v5  ;;  %v210_v30 = vsub.f32 %v2318_v15, %v209_v23  ;;  %v216_v31 = vsub.f32 %v2321_v16, %v215_v24  ;;  %307 = vmatpush.msra.mxu2 %v2318_v15  ;;  %v233_v39 = vand.u32 4294901760, %v2339_v25  ;;  %v517_v14 = vld [vmem:[#allocation10 + $0x78] sm:$0xff] }
  0x4a   :  { %v2362_v33 = vsub.f32 %v148_v13, %v2332_v20  ;;  %361 = vmatpush.msra.mxu3 %v2305_v5  ;;  %v222_v38 = vsub.f32 %v2327_v18, %v221_v26  ;;  %v228_v40 = vsub.f32 %v2330_v19, %v227_v27  ;;  %v239_v41 = vand.u32 4294901760, %v2345_v28 }
  0x4b   :  { %v205_v36 = vand.u32 4294901760, %v204_v29  ;;  %v211_v37 = vand.u32 4294901760, %v210_v30  ;;  %167 = vmatpush.msra.mxu0 %v2307_v9  ;;  %310 = vmatpush.msra.mxu2 %v2321_v16  ;;  %v217_v43 = vand.u32 4294901760, %v216_v31  ;;  %v2377_v44 = vand.u32 4294901760, %v146_v34  ;;  %v139_v29 = vld [vmem:[#allocation2] sm:$0xff] }
  0x4c   :  { %363 = vmatpush.msra.mxu3 %v2307_v9  ;;  %v2380_v45 = vsub.f32 %v147_v21, %v2358_v32  ;;  %v2382_v46 = vand.u32 4294901760, %v145_v35  ;;  %v245_v48 = vand.u32 4294901760, %v2362_v33  ;;  %v223_v49 = vand.u32 4294901760, %v222_v38 }
  0x4d   :  { %206 = vmatpush.msra.mxu1 %v205_v36  ;;  %169 = vmatpush.msra.mxu0 %v2309_v10  ;;  %v234_v50 = vsub.f32 %v2339_v25, %v233_v39  ;;  %v2392_v51 = vsub.f32 %v146_v34, %v2377_v44  ;;  %v2394_v52 = vand.u32 4294901760, %v144_v42  ;;  %v2396_v54 = vand.u32 4294901760, %v143_v47 }
  0x4e   :  { %313 = vmatpush.msra.mxu2 %v2327_v18  ;;  %365 = vmatpush.msra.mxu3 %v2309_v10  ;;  %v229_v55 = vand.u32 4294901760, %v228_v40  ;;  %v240_v56 = vsub.f32 %v2345_v28, %v239_v41  ;;  %v251_v57 = vand.u32 4294901760, %v2380_v45  ;;  %v2406_v58 = vsub.f32 %v145_v35, %v2382_v46 }
  0x4f   :  { %212 = vmatpush.msra.mxu1 %v211_v37  ;;  %171 = vmatpush.msra.mxu0 %v2311_v11  ;;  %v246_v59 = vsub.f32 %v2362_v33, %v245_v48  ;;  %v2411_v60 = vand.u32 4294901760, %v142_v53  ;;  %v235_v62 = vand.u32 4294901760, %v234_v50  ;;  %v257_v63 = vand.u32 4294901760, %v2392_v51 }
  0x50   :  { %316 = vmatpush.msra.mxu2 %v2330_v19  ;;  %367 = vmatpush.msra.mxu3 %v2311_v11  ;;  %v2418_v0 = vsub.f32 %v144_v42, %v2394_v52  ;;  %v2421_v1 = vsub.f32 %v143_v47, %v2396_v54  ;;  %v241_v6 = vand.u32 4294901760, %v240_v56  ;;  %v252_v7 = vsub.f32 %v2380_v45, %v251_v57  ;;  %v510_v19 = vld [vmem:[#allocation10 + $0x40] sm:$0xff] }
  0x51   :  { %218 = vmatpush.msra.mxu1 %v217_v43  ;;  %173 = vmatpush.msra.mxu0 %v2323_v17  ;;  %v263_v8 = vand.u32 4294901760, %v2406_v58  ;;  %v2430_v12 = vand.u32 4294901760, %v141_v61  ;;  %v247_v13 = vand.u32 4294901760, %v246_v59  ;;  %v2433_v21 = vsub.f32 %v142_v53, %v2411_v60 }
  0x52   :  { %319 = vmatpush.msra.mxu2 %v2339_v25  ;;  %369 = vmatpush.msra.mxu3 %v2323_v17  ;;  %v258_v30 = vsub.f32 %v2392_v51, %v257_v63  ;;  %v269_v31 = vand.u32 4294901760, %v2418_v0  ;;  %v2442_v34 = vand.u32 4294901760, %v140_v2  ;;  %v2444_v35 = vand.u32 4294901760, %v139_v29 }
  0x53   :  { %224 = vmatpush.msra.mxu1 %v223_v49  ;;  %175 = vmatpush.msra.mxu0 %v2332_v20  ;;  %v275_v36 = vand.u32 4294901760, %v2421_v1  ;;  %v253_v37 = vand.u32 4294901760, %v252_v7  ;;  %v264_v38 = vsub.f32 %v2406_v58, %v263_v8  ;;  %v2454_v40 = vsub.f32 %v141_v61, %v2430_v12 }
  0x54   :  { %322 = vmatpush.msra.mxu2 %v2345_v28  ;;  %371 = vmatpush.msra.mxu3 %v2332_v20  ;;  %v193_v42 = vsub.f32 %v139_v29, %v2444_v35  ;;  %v259_v43 = vand.u32 4294901760, %v258_v30  ;;  %v270_v47 = vsub.f32 %v2418_v0, %v269_v31  ;;  %v281_v49 = vand.u32 4294901760, %v2433_v21 }
  0x55   :  { %230 = vmatpush.msra.mxu1 %v229_v55  ;;  %177 = vmatpush.msra.mxu0 %v2358_v32  ;;  %v2465_v50 = vsub.f32 %v140_v2, %v2442_v34  ;;  %v265_v53 = vand.u32 4294901760, %v264_v38  ;;  %v276_v55 = vsub.f32 %v2421_v1, %v275_v36  ;;  %v287_v56 = vand.u32 4294901760, %v2454_v40 }
  0x56   :  { %325 = vmatpush.msra.mxu2 %v2362_v33  ;;  %373 = vmatpush.msra.mxu3 %v2358_v32  ;;  %v194_v59 = vand.u32 4294901760, %v193_v42  ;;  %v271_v61 = vand.u32 4294901760, %v270_v47  ;;  %v515_v47 = vld [vmem:[#allocation10 + $0x68] sm:$0xff]  ;;  %v2507_v15 = vand.u32 4294901760, %v517_v14  ;;  %v509_v33 = vld [vmem:[#allocation10 + $0x38] sm:$0xff] }
  0x57   :  { %236 = vmatpush.msra.mxu1 %v235_v62  ;;  %179 = vmatpush.msra.mxu0 %v2377_v44  ;;  %v282_v62 = vsub.f32 %v2433_v21, %v281_v49  ;;  %v293_v2 = vand.u32 4294901760, %v2465_v50  ;;  %v288_v7 = vsub.f32 %v2454_v40, %v287_v56  ;;  %v2511_v16 = vand.u32 4294901760, %v515_v47 }
  0x58   :  { %328 = vmatpush.msra.mxu2 %v2380_v45  ;;  %375 = vmatpush.msra.mxu3 %v2377_v44  ;;  %v2586_v45 = vand.u32 4294901760, %v509_v33 }
  0x59   :  { %242 = vmatpush.msra.mxu1 %v241_v6  ;;  %181 = vmatpush.msra.mxu0 %v2382_v46  ;;  %v277_v6 = vand.u32 4294901760, %v276_v55  ;;  %v283_v29 = vand.u32 4294901760, %v282_v62  ;;  %v294_v30 = vsub.f32 %v2465_v50, %v293_v2 }
  0x5a   :  { %331 = vmatpush.msra.mxu2 %v2392_v51  ;;  %377 = vmatpush.msra.mxu3 %v2382_v46  ;;  %v2601_v51 = vsub.f32 %v509_v33, %v2586_v45 }
  0x5b   :  { %248 = vmatpush.msra.mxu1 %v247_v13  ;;  %183 = vmatpush.msra.mxu0 %v2394_v52  ;;  %v195_v13 = vsub.f32 %v193_v42, %v194_v59 }
  0x5c   :  { %334 = vmatpush.msra.mxu2 %v2406_v58  ;;  %379 = vmatpush.msra.mxu3 %v2394_v52 }
  0x5d   :  { %254 = vmatpush.msra.mxu1 %v253_v37  ;;  %185 = vmatpush.msra.mxu0 %v2396_v54  ;;  %v289_v37 = vand.u32 4294901760, %v288_v7  ;;  %v196_v38 = vand.u32 4294901760, %v195_v13  ;;  %v2547_v13 = vand.u32 4294901760, %v510_v19 }
  0x5e   :  { %337 = vmatpush.msra.mxu2 %v2418_v0  ;;  %381 = vmatpush.msra.mxu3 %v2396_v54  ;;  %v503_v0 = vld [vmem:[#allocation10 + $0x8] sm:$0xff] }
  0x5f   :  { %260 = vmatpush.msra.mxu1 %v259_v43  ;;  %187 = vmatpush.msra.mxu0 %v2411_v60  ;;  %v295_v43 = vand.u32 4294901760, %v294_v30 }
  0x60   :  { %340 = vmatpush.msra.mxu2 %v2421_v1  ;;  %383 = vmatpush.msra.mxu3 %v2411_v60  ;;  %v502_v1 = vld [vmem:[#allocation10] sm:$0xff] }
  0x61   :  { %266 = vmatpush.msra.mxu1 %v265_v53  ;;  %189 = vmatpush.msra.mxu0 %v2430_v12  ;;  %v512_v53 = vld [vmem:[#allocation10 + $0x50] sm:$0xff] }
  0x62   :  { %343 = vmatpush.msra.mxu2 %v2433_v21  ;;  %385 = vmatpush.msra.mxu3 %v2430_v12  ;;  %v2518_v55 = vand.u32 4294901760, %v512_v53 }
  0x63   :  { %272 = vmatpush.msra.mxu1 %v271_v61  ;;  %191 = vmatpush.msra.mxu0 %v2442_v34  ;;  %v2530_v61 = vsub.f32 %v515_v47, %v2511_v16 }
  0x64   :  { %346 = vmatpush.msra.mxu2 %v2454_v40  ;;  %387 = vmatpush.msra.mxu3 %v2442_v34  ;;  %v2552_v30 = vsub.f32 %v512_v53, %v2518_v55 }
  0x65   :  { %398 = vmatpush.msrb.mxu0 %v203_v22  ;;  %278 = vmatpush.msra.mxu1 %v277_v6  ;;  %v516_v22 = vld [vmem:[#allocation10 + $0x70] sm:$0xff]  ;;  %v577_v7 = vand.u32 4294901760, %v2530_v61 }
  0x66   :  { %349 = vmatpush.msra.mxu2 %v2465_v50  ;;  %391 = vmatmul.f32.vlgmr.msra.gmra.mxu3 %v194_v59 }
  0x67   :  { %402 = vmatpush.msrb.mxu0 %v209_v23  ;;  %284 = vmatpush.msra.mxu1 %v283_v29  ;;  %v2509_v23 = vand.u32 4294901760, %v516_v22 }
  0x68   :  { %352 = vmatmul.f32.vlgmr.msra.gmra.mxu2 %v193_v42  ;;  %197 = vmatmul.f32.vlgmr.msra.gmra.mxu0 %v196_v38  ;;  %v513_v42 = vld [vmem:[#allocation10 + $0x58] sm:$0xff] }
  0x69   :  { %406 = vmatpush.msrb.mxu0 %v215_v24  ;;  %290 = vmatpush.msra.mxu1 %v289_v37  ;;  %v514_v24 = vld [vmem:[#allocation10 + $0x60] sm:$0xff]  ;;  %v2527_v59 = vsub.f32 %v516_v22, %v2509_v23  ;;  %v578_v37 = vsub.f32 %v2530_v61, %v577_v7 }
  0x6a   :  { %v2514_v18 = vand.u32 4294901760, %v514_v24  ;;  %523 = vmatpush.msrb.mxu2 %v2507_v15 }
  0x6b   :  { %410 = vmatpush.msrb.mxu0 %v221_v26  ;;  %296 = vmatpush.msra.mxu1 %v295_v43  ;;  %v2516_v26 = vand.u32 4294901760, %v513_v42  ;;  %v2575_v43 = vsub.f32 %v510_v19, %v2547_v13  ;;  %v579_v53 = vand.u32 4294901760, %v578_v37 }
  0x6c   :  { %298 = vmatmul.f32.vlgmr.msra.gmra.mxu1 %v2444_v35  ;;  %v2535_v6 = vsub.f32 %v514_v24, %v2514_v18  ;;  %525 = vmatpush.msrb.mxu2 %v2509_v23  ;;  %v595_v24 = vand.u32 4294901760, %v2552_v30 }
  0x6d   :  { %465 = vmatpush.msrb.mxu1 %v2301_v3  ;;  %414 = vmatpush.msrb.mxu0 %v227_v27  ;;  %v511_v3 = vld [vmem:[#allocation10 + $0x48] sm:$0xff]  ;;  %v2524_v27 = vsub.f32 %v517_v14, %v2507_v15 }
  0x6e   :  { %v2532_v62 = vand.u32 4294901760, %v511_v3  ;;  %v583_v29 = vand.u32 4294901760, %v2535_v6  ;;  %527 = vmatpush.msrb.mxu2 %v2511_v16  ;;  %v507_v14 = vld [vmem:[#allocation10 + $0x28] sm:$0xff] }
  0x6f   :  { %467 = vmatpush.msrb.mxu1 %v2303_v4  ;;  %418 = vmatpush.msrb.mxu0 %v233_v39  ;;  %v2539_v4 = vsub.f32 %v513_v42, %v2516_v26  ;;  %v565_v25 = vand.u32 4294901760, %v2524_v27  ;;  %v571_v39 = vand.u32 4294901760, %v2527_v59  ;;  %v506_v42 = vld [vmem:[#allocation10 + $0x20] sm:$0xff]  ;;  %v2594_v19 = vand.u32 4294901760, %v507_v14 }
  0x70   :  { %v584_v47 = vsub.f32 %v2535_v6, %v583_v29  ;;  %529 = vmatpush.msrb.mxu2 %v2514_v18 }
  0x71   :  { %469 = vmatpush.msrb.mxu1 %v2305_v5  ;;  %422 = vmatpush.msrb.mxu0 %v239_v41  ;;  %v566_v5 = vsub.f32 %v2524_v27, %v565_v25  ;;  %v572_v28 = vsub.f32 %v2527_v59, %v571_v39  ;;  %v2564_v41 = vsub.f32 %v511_v3, %v2532_v62 }
  0x72   :  { %531 = vmatpush.msrb.mxu2 %v2516_v26 }
  0x73   :  { %471 = vmatpush.msrb.mxu1 %v2307_v9  ;;  %426 = vmatpush.msrb.mxu0 %v245_v48  ;;  %v589_v9 = vand.u32 4294901760, %v2539_v4  ;;  %v508_v48 = vld [vmem:[#allocation10 + $0x30] sm:$0xff]  ;;  %v567_v38 = vand.u32 4294901760, %v566_v5  ;;  %v573_v22 = vand.u32 4294901760, %v572_v28  ;;  %v585_v5 = vand.u32 4294901760, %v584_v47 }
  0x74   :  { %v596_v28 = vsub.f32 %v2552_v30, %v595_v24  ;;  %533 = vmatpush.msrb.mxu2 %v2518_v55 }
  0x75   :  { %473 = vmatpush.msrb.mxu1 %v2309_v10  ;;  %430 = vmatpush.msrb.mxu0 %v251_v57  ;;  %v601_v10 = vand.u32 4294901760, %v2564_v41  ;;  %v2588_v57 = vand.u32 4294901760, %v508_v48  ;;  %v590_v3 = vsub.f32 %v2539_v4, %v589_v9 }
  0x76   :  { %568 = vmatpush.msrb.mxu3 %v567_v38  ;;  %v613_v38 = vand.u32 4294901760, %v2601_v51  ;;  %535 = vmatpush.msrb.mxu2 %v2532_v62 }
  0x77   :  { %475 = vmatpush.msrb.mxu1 %v2311_v11  ;;  %434 = vmatpush.msrb.mxu0 %v257_v63  ;;  %v607_v11 = vand.u32 4294901760, %v2575_v43  ;;  %v505_v63 = vld [vmem:[#allocation10 + $0x18] sm:$0xff]  ;;  %v2608_v37 = vsub.f32 %v508_v48, %v2588_v57  ;;  %v602_v58 = vsub.f32 %v2564_v41, %v601_v10  ;;  %v591_v33 = vand.u32 4294901760, %v590_v3 }
  0x78   :  { %574 = vmatpush.msrb.mxu3 %v573_v22  ;;  %v2621_v48 = vsub.f32 %v507_v14, %v2594_v19  ;;  %v2623_v22 = vand.u32 4294901760, %v505_v63  ;;  %537 = vmatpush.msrb.mxu2 %v2547_v13 }
  0x79   :  { %477 = vmatpush.msrb.mxu1 %v2323_v17  ;;  %438 = vmatpush.msrb.mxu0 %v263_v8  ;;  %v2610_v17 = vand.u32 4294901760, %v506_v42  ;;  %v504_v8 = vld [vmem:[#allocation10 + $0x10] sm:$0xff]  ;;  %v619_v47 = vand.u32 4294901760, %v2608_v37 }
  0x7a   :  { %580 = vmatpush.msrb.mxu3 %v579_v53  ;;  %v2636_v53 = vand.u32 4294901760, %v504_v8  ;;  %v625_v3 = vand.u32 4294901760, %v2621_v48  ;;  %539 = vmatpush.msrb.mxu2 %v2586_v45 }
  0x7b   :  { %479 = vmatpush.msrb.mxu1 %v2332_v20  ;;  %442 = vmatpush.msrb.mxu0 %v269_v31  ;;  %v608_v20 = vsub.f32 %v2575_v43, %v607_v11  ;;  %v597_v31 = vand.u32 4294901760, %v596_v28  ;;  %v2634_v14 = vsub.f32 %v506_v42, %v2610_v17  ;;  %v2647_v42 = vsub.f32 %v505_v63, %v2623_v22 }
  0x7c   :  { %586 = vmatpush.msrb.mxu3 %v585_v5  ;;  %v2649_v5 = vand.u32 4294901760, %v503_v0  ;;  %v620_v21 = vsub.f32 %v2608_v37, %v619_v47  ;;  %541 = vmatpush.msrb.mxu2 %v2588_v57  ;;  %v2660_v63 = vsub.f32 %v504_v8, %v2636_v53  ;;  %v2662_v28 = vand.u32 4294901760, %v502_v1 }
  0x7d   :  { %481 = vmatpush.msrb.mxu1 %v2358_v32  ;;  %446 = vmatpush.msrb.mxu0 %v275_v36  ;;  %v603_v32 = vand.u32 4294901760, %v602_v58  ;;  %v614_v36 = vsub.f32 %v2601_v51, %v613_v38  ;;  %v626_v40 = vsub.f32 %v2621_v48, %v625_v3 }
  0x7e   :  { %592 = vmatpush.msrb.mxu3 %v591_v33  ;;  %v2673_v58 = vsub.f32 %v503_v0, %v2649_v5  ;;  %543 = vmatpush.msrb.mxu2 %v2594_v19  ;;  %v2683_v8 = vsub.f32 %v502_v1, %v2662_v28 }
  0x7f   :  { %483 = vmatpush.msrb.mxu1 %v2377_v44  ;;  %450 = vmatpush.msrb.mxu0 %v281_v49  ;;  %v609_v44 = vand.u32 4294901760, %v608_v20  ;;  %v631_v49 = vand.u32 4294901760, %v2634_v14 }
  0x80   :  { %598 = vmatpush.msrb.mxu3 %v597_v31  ;;  %v649_v20 = vand.u32 4294901760, %v2673_v58  ;;  %545 = vmatpush.msrb.mxu2 %v2610_v17  ;;  %v655_v31 = vand.u32 4294901760, %v2683_v8 }
  0x81   :  { %485 = vmatpush.msrb.mxu1 %v2382_v46  ;;  %454 = vmatpush.msrb.mxu0 %v287_v56  ;;  %v615_v46 = vand.u32 4294901760, %v614_v36  ;;  %v637_v56 = vand.u32 4294901760, %v2647_v42  ;;  %v632_v50 = vsub.f32 %v2634_v14, %v631_v49 }
  0x82   :  { %604 = vmatpush.msrb.mxu3 %v603_v32  ;;  %547 = vmatpush.msrb.mxu2 %v2623_v22  ;;  %v650_v32 = vsub.f32 %v2673_v58, %v649_v20 }
  0x83   :  { %487 = vmatpush.msrb.mxu1 %v2394_v52  ;;  %458 = vmatpush.msrb.mxu0 %v293_v2  ;;  %v621_v52 = vand.u32 4294901760, %v620_v21  ;;  %v643_v2 = vand.u32 4294901760, %v2660_v63  ;;  %v638_v33 = vsub.f32 %v2647_v42, %v637_v56  ;;  %v633_v0 = vand.u32 4294901760, %v632_v50 }
  0x84   :  { %460 = vmatmul.f32.vlgmr.msrb.gmra.mxu0 %v2444_v35  ;;  %610 = vmatpush.msrb.mxu3 %v609_v44 }
  0x85   :  { %489 = vmatpush.msrb.mxu1 %v2396_v54  ;;  %666 = vmatpush.msra.mxu0 %v2524_v27  ;;  %v627_v54 = vand.u32 4294901760, %v626_v40  ;;  %v870_v40 = vld [vmem:[#allocation12 + $0x30] sm:$0xff] }
  0x86   :  { %616 = vmatpush.msrb.mxu3 %v615_v46  ;;  %549 = vmatpush.msrb.mxu2 %v2636_v53  ;;  %v871_v46 = vld [vmem:[#allocation12 + $0x38] sm:$0xff] }
  0x87   :  { %491 = vmatpush.msrb.mxu1 %v2411_v60  ;;  %669 = vmatpush.msra.mxu0 %v2527_v59  ;;  %v644_v60 = vsub.f32 %v2660_v63, %v643_v2 }
  0x88   :  { %622 = vmatpush.msrb.mxu3 %v621_v52  ;;  %551 = vmatpush.msrb.mxu2 %v2649_v5 }
  0x89   :  { %493 = vmatpush.msrb.mxu1 %v2430_v12  ;;  %672 = vmatpush.msra.mxu0 %v2530_v61  ;;  %v639_v12 = vand.u32 4294901760, %v638_v33  ;;  %v645_v1 = vand.u32 4294901760, %v644_v60  ;;  %v879_v61 = vld [vmem:[#allocation12 + $0x78] sm:$0xff]  ;;  %v868_v33 = vld [vmem:[#allocation12 + $0x20] sm:$0xff]  ;;  %v2857_v60 = vand.u32 4294901760, %v871_v46 }
  0x8a   :  { %628 = vmatpush.msrb.mxu3 %v627_v54  ;;  %553 = vmatpush.msrb.mxu2 %v2662_v28 }
  0x8b   :  { %495 = vmatpush.msrb.mxu1 %v2442_v34  ;;  %675 = vmatpush.msra.mxu0 %v2535_v6  ;;  %v656_v34 = vsub.f32 %v2683_v8, %v655_v31  ;;  %v877_v6 = vld [vmem:[#allocation12 + $0x68] sm:$0xff] }
  0x8c   :  { %497 = vmatmul.f32.vlgmr.msrb.gmra.mxu1 %v2444_v35  ;;  %634 = vmatpush.msrb.mxu3 %v633_v0  ;;  %v651_v35 = vand.u32 4294901760, %v650_v32 }
  0x8d   :  { %719 = vmatpush.msra.mxu1 %v2507_v15  ;;  %678 = vmatpush.msra.mxu0 %v2539_v4  ;;  %v657_v36 = vand.u32 4294901760, %v656_v34  ;;  %v2790_v4 = vand.u32 4294901760, %v879_v61 }
  0x8e   :  { %640 = vmatpush.msrb.mxu3 %v639_v12  ;;  %760 = vmatpush.msra.mxu2 %v565_v25 }
  0x8f   :  { %721 = vmatpush.msra.mxu1 %v2509_v23  ;;  %681 = vmatpush.msra.mxu0 %v2552_v30 }
  0x90   :  { %646 = vmatpush.msrb.mxu3 %v645_v1  ;;  %764 = vmatpush.msra.mxu2 %v571_v39  ;;  %v2794_v39 = vand.u32 4294901760, %v877_v6 }
  0x91   :  { %723 = vmatpush.msra.mxu1 %v2511_v16  ;;  %684 = vmatpush.msra.mxu0 %v2564_v41 }
  0x92   :  { %652 = vmatpush.msrb.mxu3 %v651_v35  ;;  %768 = vmatpush.msra.mxu2 %v577_v7  ;;  %v876_v7 = vld [vmem:[#allocation12 + $0x60] sm:$0xff]  ;;  %v867_v35 = vld [vmem:[#allocation12 + $0x18] sm:$0xff] }
  0x93   :  { %725 = vmatpush.msra.mxu1 %v2514_v18  ;;  %687 = vmatpush.msra.mxu0 %v2575_v43  ;;  %v2796_v41 = vand.u32 4294901760, %v876_v7 }
  0x94   :  { %658 = vmatpush.msrb.mxu3 %v657_v36  ;;  %772 = vmatpush.msra.mxu2 %v583_v29  ;;  %v874_v29 = vld [vmem:[#allocation12 + $0x50] sm:$0xff] }
  0x95   :  { %727 = vmatpush.msra.mxu1 %v2516_v26  ;;  %690 = vmatpush.msra.mxu0 %v2601_v51  ;;  %v2800_v43 = vand.u32 4294901760, %v874_v29 }
  0x96   :  { %827 = vmatpush.msra.mxu3 %v2507_v15  ;;  %776 = vmatpush.msra.mxu2 %v589_v9  ;;  %v2014_v15 = vld [vmem:[%s3506_s3] ss:$0 sm:$0xff] }
  0x97   :  { %729 = vmatpush.msra.mxu1 %v2518_v55  ;;  %693 = vmatpush.msra.mxu0 %v2608_v37  ;;  %v2815_v37 = vsub.f32 %v876_v7, %v2796_v41 }
  0x98   :  { %829 = vmatpush.msra.mxu3 %v2509_v23  ;;  %780 = vmatpush.msra.mxu2 %v595_v24  ;;  %v873_v24 = vld [vmem:[#allocation12 + $0x48] sm:$0xff] }
  0x99   :  { %731 = vmatpush.msra.mxu1 %v2532_v62  ;;  %696 = vmatpush.msra.mxu0 %v2621_v48  ;;  %v2812_v51 = vand.u32 4294901760, %v873_v24 }
  0x9a   :  { %831 = vmatpush.msra.mxu3 %v2511_v16  ;;  %784 = vmatpush.msra.mxu2 %v601_v10  ;;  %v872_v10 = vld [vmem:[#allocation12 + $0x40] sm:$0xff] }
  0x9b   :  { %733 = vmatpush.msra.mxu1 %v2547_v13  ;;  %699 = vmatpush.msra.mxu0 %v2634_v14  ;;  %v2823_v48 = vand.u32 4294901760, %v872_v10 }
  0x9c   :  { %833 = vmatpush.msra.mxu3 %v2514_v18  ;;  %788 = vmatpush.msra.mxu2 %v607_v11  ;;  %v2809_v11 = vsub.f32 %v877_v6, %v2794_v39 }
  0x9d   :  { %735 = vmatpush.msra.mxu1 %v2586_v45  ;;  %702 = vmatpush.msra.mxu0 %v2647_v42  ;;  %v2831_v42 = vsub.f32 %v873_v24, %v2812_v51 }
  0x9e   :  { %835 = vmatpush.msra.mxu3 %v2516_v26  ;;  %792 = vmatpush.msra.mxu2 %v613_v38  ;;  %v2821_v38 = vsub.f32 %v874_v29, %v2800_v43  ;;  %v939_v14 = vand.u32 4294901760, %v2809_v11 }
  0x9f   :  { %737 = vmatpush.msra.mxu1 %v2588_v57  ;;  %705 = vmatpush.msra.mxu0 %v2660_v63  ;;  %v963_v54 = vand.u32 4294901760, %v2831_v42 }
  0xa0   :  { %837 = vmatpush.msra.mxu3 %v2518_v55  ;;  %796 = vmatpush.msra.mxu2 %v619_v47  ;;  %v940_v21 = vsub.f32 %v2809_v11, %v939_v14  ;;  %v957_v63 = vand.u32 4294901760, %v2821_v38 }
  0xa1   :  { %739 = vmatpush.msra.mxu1 %v2594_v19  ;;  %708 = vmatpush.msra.mxu0 %v2673_v58 }
  0xa2   :  { %839 = vmatpush.msra.mxu3 %v2532_v62  ;;  %800 = vmatpush.msra.mxu2 %v625_v3  ;;  %v878_v62 = vld [vmem:[#allocation12 + $0x70] sm:$0xff]  ;;  %v945_v3 = vand.u32 4294901760, %v2815_v37  ;;  %v958_v32 = vsub.f32 %v2821_v38, %v957_v63 }
  0xa3   :  { %741 = vmatpush.msra.mxu1 %v2610_v17  ;;  %711 = vmatpush.msra.mxu0 %v2683_v8  ;;  %v2792_v25 = vand.u32 4294901760, %v878_v62 }
  0xa4   :  { %841 = vmatpush.msra.mxu3 %v2547_v13  ;;  %804 = vmatpush.msra.mxu2 %v631_v49  ;;  %v875_v13 = vld [vmem:[#allocation12 + $0x58] sm:$0xff]  ;;  %v946_v50 = vsub.f32 %v2815_v37, %v945_v3  ;;  %v959_v6 = vand.u32 4294901760, %v958_v32 }
  0xa5   :  { %743 = vmatpush.msra.mxu1 %v2623_v22  ;;  %v2798_v9 = vand.u32 4294901760, %v875_v13  ;;  %885 = vmatpush.msrb.mxu0 %v2790_v4 }
  0xa6   :  { %843 = vmatpush.msra.mxu3 %v2586_v45  ;;  %808 = vmatpush.msra.mxu2 %v637_v56  ;;  %v947_v36 = vand.u32 4294901760, %v946_v50 }
  0xa7   :  { %745 = vmatpush.msra.mxu1 %v2636_v53  ;;  %887 = vmatpush.msrb.mxu0 %v2792_v25 }
  0xa8   :  { %845 = vmatpush.msra.mxu3 %v2588_v57  ;;  %812 = vmatpush.msra.mxu2 %v643_v2  ;;  %v2803_v57 = vsub.f32 %v879_v61, %v2790_v4  ;;  %v869_v2 = vld [vmem:[#allocation12 + $0x28] sm:$0xff]  ;;  %v2884_v61 = vand.u32 4294901760, %v867_v35 }
  0xa9   :  { %747 = vmatpush.msra.mxu1 %v2649_v5  ;;  %889 = vmatpush.msrb.mxu0 %v2794_v39  ;;  %v2865_v34 = vand.u32 4294901760, %v869_v2 }
  0xaa   :  { %847 = vmatpush.msra.mxu3 %v2594_v19  ;;  %816 = vmatpush.msra.mxu2 %v649_v20  ;;  %v2806_v19 = vsub.f32 %v878_v62, %v2792_v25  ;;  %v941_v20 = vand.u32 4294901760, %v940_v21 }
  0xab   :  { %749 = vmatpush.msra.mxu1 %v2662_v28  ;;  %891 = vmatpush.msrb.mxu0 %v2796_v41 }
  0xac   :  { %849 = vmatpush.msra.mxu3 %v2610_v17  ;;  %820 = vmatpush.msra.mxu2 %v655_v31  ;;  %v2818_v17 = vsub.f32 %v875_v13, %v2798_v9  ;;  %v933_v47 = vand.u32 4294901760, %v2806_v19  ;;  %v2859_v31 = vand.u32 4294901760, %v870_v40 }
  0xad   :  { %893 = vmatpush.msrb.mxu0 %v2798_v9 }
  0xae   :  { %851 = vmatpush.msra.mxu3 %v2623_v22  ;;  %v927_v22 = vand.u32 4294901760, %v2803_v57  ;;  %v934_v44 = vsub.f32 %v2806_v19, %v933_v47  ;;  %v951_v49 = vand.u32 4294901760, %v2818_v17 }
  0xaf   :  { %895 = vmatpush.msrb.mxu0 %v2800_v43 }
  0xb0   :  { %853 = vmatpush.msra.mxu3 %v2636_v53  ;;  %v935_v52 = vand.u32 4294901760, %v934_v44  ;;  %v952_v0 = vsub.f32 %v2818_v17, %v951_v49 }
  0xb1   :  { %897 = vmatpush.msrb.mxu0 %v2812_v51 }
  0xb2   :  { %855 = vmatpush.msra.mxu3 %v2649_v5  ;;  %v928_v5 = vsub.f32 %v2803_v57, %v927_v22 }
  0xb3   :  { %899 = vmatpush.msrb.mxu0 %v2823_v48 }
  0xb4   :  { %857 = vmatpush.msra.mxu3 %v2662_v28  ;;  %v2846_v28 = vsub.f32 %v872_v10, %v2823_v48  ;;  %v929_v58 = vand.u32 4294901760, %v928_v5 }
  0xb5   :  { %901 = vmatpush.msrb.mxu0 %v2857_v60 }
  0xb6   :  { %930 = vmatpush.msrb.mxu1 %v929_v58  ;;  %v969_v1 = vand.u32 4294901760, %v2846_v28 }
  0xb7   :  { %903 = vmatpush.msrb.mxu0 %v2859_v31 }
  0xb8   :  { %936 = vmatpush.msrb.mxu1 %v935_v52  ;;  %v970_v7 = vsub.f32 %v2846_v28, %v969_v1 }
  0xb9   :  { %905 = vmatpush.msrb.mxu0 %v2865_v34 }
  0xba   :  { %942 = vmatpush.msrb.mxu1 %v941_v20  ;;  %v971_v44 = vand.u32 4294901760, %v970_v7 }
  0xbc   :  { %948 = vmatpush.msrb.mxu1 %v947_v36 }
  0xe5   :  { %v198_v23 = vpop.f32.mrf.mxu0 }
  0xe6   :  { %v199_v16 = vadd.f32 %v2014_v15, %v198_v23  ;;  %v2868_v15 = vsub.f32 %v871_v46, %v2857_v60  ;;  %v2872_v23 = vsub.f32 %v870_v40, %v2859_v31 }
  0xe8   :  { %v981_v13 = vand.u32 4294901760, %v2872_v23 }
  0xe9   :  { %v299_v18 = vpop.f32.mrf.mxu1  ;;  %v392_v59 = vpop.f32.mrf.mxu3 }
  0xea   :  { %v300_v26 = vadd.f32 %v299_v18, %v199_v16  ;;  %v2874_v16 = vand.u32 4294901760, %v868_v33  ;;  %v982_v21 = vsub.f32 %v2872_v23, %v981_v13 }
  0xeb   :  { %v353_v55 = vpop.f32.mrf.mxu2 }
  0xec   :  { %v354_v27 = vadd.f32 %v353_v55, %v300_v26  ;;  %v964_v26 = vsub.f32 %v2831_v42, %v963_v54  ;;  %v953_v55 = vand.u32 4294901760, %v952_v0  ;;  %v2892_v29 = vsub.f32 %v868_v33, %v2874_v16  ;;  %907 = vmatpush.msrb.mxu0 %v2874_v16 }
  0xed   :  { %v983_v50 = vand.u32 4294901760, %v982_v21 }
  0xee   :  { %v393_v30 = vadd.f32 %v392_v59, %v354_v27  ;;  %v975_v27 = vand.u32 4294901760, %v2868_v15  ;;  %v2882_v59 = vsub.f32 %v869_v2, %v2865_v34  ;;  %954 = vmatpush.msrb.mxu1 %v953_v55  ;;  %v965_v24 = vand.u32 4294901760, %v964_v26  ;;  %909 = vmatpush.msrb.mxu0 %v2884_v61  ;;  %v864_v26 = vld [vmem:[#allocation12] sm:$0xff] }
  0xef   :  { %v993_v46 = vand.u32 4294901760, %v2892_v29 }
  0xf0   :  { %v976_v10 = vsub.f32 %v2868_v15, %v975_v27  ;;  %960 = vmatpush.msrb.mxu1 %v959_v6  ;;  %v914_v6 = vand.u32 4294901760, %v864_v26 }
  0xf1   :  { %v994_v2 = vsub.f32 %v2892_v29, %v993_v46 }
  0xf2   :  { %966 = vmatpush.msrb.mxu1 %v965_v24  ;;  %v1016_v24 = vsub.f32 %v864_v26, %v914_v6 }
  0xf3   :  { %v995_v20 = vand.u32 4294901760, %v994_v2 }
  0xf4   :  { %972 = vmatpush.msrb.mxu1 %v971_v44  ;;  %v1017_v44 = vand.u32 4294901760, %v1016_v24 }
 0x101   :  { %v461_v45 = vpop.f32.mrf.mxu0 }
 0x102   :  { %v462_v53 = vadd.f32 %v461_v45, %v393_v30  ;;  %v987_v45 = vand.u32 4294901760, %v2882_v59 }
 0x104   :  { %v988_v58 = vsub.f32 %v2882_v59, %v987_v45 }
 0x109   :  { %v498_v56 = vpop.f32.mrf.mxu1 }
 0x10a   :  { %v499_v8 = vadd.f32 %v498_v56, %v462_v53  ;;  %v2901_v53 = vsub.f32 %v867_v35, %v2884_v61  ;;  %v977_v56 = vand.u32 4294901760, %v976_v10  ;;  %v865_v35 = vld [vmem:[#allocation12 + $0x8] sm:$0xff] }
 0x10c   :  { %v501_v12 = vmax.f32 %v499_v8, 0.0  ;;  %v999_v52 = vand.u32 4294901760, %v2901_v53  ;;  %978 = vmatpush.msrb.mxu1 %v977_v56  ;;  %v989_v8 = vand.u32 4294901760, %v988_v58 }
 0x10e   :  { %v554_v18 = vand.u32 4294901760, %v501_v12  ;;  %v1000_v33 = vsub.f32 %v2901_v53, %v999_v52  ;;  %984 = vmatpush.msrb.mxu1 %v983_v50 }
 0x110   :  { %v555_v62 = vsub.f32 %v501_v12, %v554_v18  ;;  %660 = vmatmul.f32.vlgmr.msrb.gmra.mxu3 %v554_v18  ;;  %990 = vmatpush.msrb.mxu1 %v989_v8  ;;  %v1001_v0 = vand.u32 4294901760, %v1000_v33  ;;  %v866_v12 = vld [vmem:[#allocation12 + $0x10] sm:$0xff]  ;;  %v1244_v8 = vld [vmem:[#allocation13 + $0x80] sm:$0xff] }
 0x111   :  { %1081 = vmatpush.msrb.mxu3 %v2790_v4  ;;  %v910_v32 = vand.u32 4294901760, %v866_v12  ;;  %v1242_v33 = vld [vmem:[#allocation13 + $0x70] sm:$0xff] }
 0x112   :  { %714 = vmatmul.f32.vlgmr.msra.gmra.mxu0 %v555_v62  ;;  %v556_v30 = vand.u32 4294901760, %v555_v62  ;;  %996 = vmatpush.msrb.mxu1 %v995_v20  ;;  %v1240_v20 = vld [vmem:[#allocation13 + $0x60] sm:$0xff] }
 0x113   :  { %1083 = vmatpush.msrb.mxu3 %v2792_v25  ;;  %v1004_v36 = vsub.f32 %v866_v12, %v910_v32  ;;  %911 = vmatpush.msrb.mxu0 %v910_v32 }
 0x114   :  { %753 = vmatmul.f32.vlgmr.msra.gmra.mxu1 %v556_v30  ;;  %v557_v5 = vsub.f32 %v555_v62, %v556_v30 }
 0x115   :  { %1085 = vmatpush.msrb.mxu3 %v2794_v39  ;;  %1002 = vmatpush.msrb.mxu1 %v1001_v0  ;;  %v1005_v55 = vand.u32 4294901760, %v1004_v36 }
 0x116   :  { %v558_v40 = vand.u32 4294901760, %v557_v5 }
 0x117   :  { %1087 = vmatpush.msrb.mxu3 %v2796_v41  ;;  %v1006_v7 = vsub.f32 %v1004_v36, %v1005_v55 }
 0x118   :  { %559 = vmatmul.f32.vlgmr.msrb.gmra.mxu2 %v558_v40  ;;  %859 = vmatmul.f32.vlgmr.msra.gmra.mxu3 %v554_v18  ;;  %v1018_v40 = vsub.f32 %v1016_v24, %v1017_v44 }
 0x119   :  { %1028 = vmatpush.msrb.mxu2 %v2803_v57  ;;  %1089 = vmatpush.msrb.mxu3 %v2798_v9  ;;  %v1007_v10 = vand.u32 4294901760, %v1006_v7  ;;  %v1254_v57 = vld [vmem:[#allocation13 + $0xd0] sm:$0xff]  ;;  %v3054_v7 = vand.u32 4294901760, %v1240_v20 }
 0x11a   :  { %v1019_v56 = vand.u32 4294901760, %v1018_v40 }
 0x11b   :  { %1031 = vmatpush.msrb.mxu2 %v2806_v19  ;;  %1091 = vmatpush.msrb.mxu3 %v2800_v43 }
 0x11c   :  { %1008 = vmatpush.msrb.mxu1 %v1007_v10 }
 0x11d   :  { %1034 = vmatpush.msrb.mxu2 %v2809_v11  ;;  %1093 = vmatpush.msrb.mxu3 %v2812_v51 }
 0x11f   :  { %1037 = vmatpush.msrb.mxu2 %v2815_v37  ;;  %1095 = vmatpush.msrb.mxu3 %v2823_v48  ;;  %v1252_v37 = vld [vmem:[#allocation13 + $0xc0] sm:$0xff] }
 0x120   :  { %822 = vmatmul.f32.vlgmr.msra.gmra.mxu2 %v554_v18  ;;  %v912_v18 = vand.u32 4294901760, %v865_v35 }
 0x121   :  { %1040 = vmatpush.msrb.mxu2 %v2818_v17  ;;  %1097 = vmatpush.msrb.mxu3 %v2857_v60  ;;  %v1250_v17 = vld [vmem:[#allocation13 + $0xb0] sm:$0xff] }
 0x122   :  { %v1010_v62 = vsub.f32 %v865_v35, %v912_v18  ;;  %913 = vmatpush.msrb.mxu0 %v912_v18  ;;  %v1238_v35 = vld [vmem:[#allocation13 + $0x50] sm:$0xff] }
 0x123   :  { %1043 = vmatpush.msrb.mxu2 %v2821_v38  ;;  %1099 = vmatpush.msrb.mxu3 %v2859_v31  ;;  %v1248_v38 = vld [vmem:[#allocation13 + $0xa0] sm:$0xff] }
 0x124   :  { %v1011_v30 = vand.u32 4294901760, %v1010_v62  ;;  %915 = vmatpush.msrb.mxu0 %v914_v6 }
 0x125   :  { %1046 = vmatpush.msrb.mxu2 %v2831_v42  ;;  %1101 = vmatpush.msrb.mxu3 %v2865_v34 }
 0x126   :  { %1122 = vmatpush.msra.mxu0 %v927_v22  ;;  %v1012_v5 = vsub.f32 %v1010_v62, %v1011_v30  ;;  %v2994_v22 = vand.u32 4294901760, %v1252_v37 }
 0x127   :  { %1049 = vmatpush.msrb.mxu2 %v2846_v28  ;;  %1103 = vmatpush.msrb.mxu3 %v2874_v16 }
 0x128   :  { %1126 = vmatpush.msra.mxu0 %v933_v47  ;;  %v1013_v21 = vand.u32 4294901760, %v1012_v5  ;;  %v2996_v47 = vand.u32 4294901760, %v1250_v17 }
 0x129   :  { %1052 = vmatpush.msrb.mxu2 %v2868_v15  ;;  %1105 = vmatpush.msrb.mxu3 %v2884_v61 }
 0x12a   :  { %1130 = vmatpush.msra.mxu0 %v939_v14  ;;  %1014 = vmatpush.msrb.mxu1 %v1013_v21  ;;  %v2998_v14 = vand.u32 4294901760, %v1248_v38 }
 0x12b   :  { %1055 = vmatpush.msrb.mxu2 %v2872_v23  ;;  %1107 = vmatpush.msrb.mxu3 %v910_v32 }
 0x12c   :  { %1134 = vmatpush.msra.mxu0 %v945_v3  ;;  %1020 = vmatpush.msrb.mxu1 %v1019_v56  ;;  %v1246_v3 = vld [vmem:[#allocation13 + $0x90] sm:$0xff]  ;;  %v3069_v56 = vsub.f32 %v1240_v20, %v3054_v7 }
 0x12d   :  { %1058 = vmatpush.msrb.mxu2 %v2882_v59  ;;  %1109 = vmatpush.msrb.mxu3 %v912_v18 }
 0x12e   :  { %1189 = vmatpush.msra.mxu1 %v2790_v4  ;;  %1138 = vmatpush.msra.mxu0 %v951_v49  ;;  %v2015_v4 = vld [vmem:[%s3508_s5] ss:$0 sm:$0xff] }
 0x12f   :  { %1061 = vmatpush.msrb.mxu2 %v2892_v29  ;;  %1111 = vmatpush.msrb.mxu3 %v914_v6 }
 0x130   :  { %1191 = vmatpush.msra.mxu1 %v2792_v25  ;;  %1142 = vmatpush.msra.mxu0 %v957_v63 }
 0x131   :  { %1064 = vmatpush.msrb.mxu2 %v2901_v53 }
 0x132   :  { %1193 = vmatpush.msra.mxu1 %v2794_v39  ;;  %1146 = vmatpush.msra.mxu0 %v963_v54  ;;  %v3010_v54 = vand.u32 4294901760, %v1246_v3 }
 0x133   :  { %1067 = vmatpush.msrb.mxu2 %v1004_v36 }
 0x134   :  { %1195 = vmatpush.msra.mxu1 %v2796_v41  ;;  %1150 = vmatpush.msra.mxu0 %v969_v1  ;;  %v3016_v1 = vsub.f32 %v1250_v17, %v2996_v47  ;;  %v3028_v29 = vsub.f32 %v1246_v3, %v3010_v54 }
 0x135   :  { %1070 = vmatpush.msrb.mxu2 %v1010_v62  ;;  %v3049_v62 = vand.u32 4294901760, %v1244_v8 }
 0x136   :  { %1197 = vmatpush.msra.mxu1 %v2798_v9  ;;  %1154 = vmatpush.msra.mxu0 %v975_v27  ;;  %v1258_v9 = vld [vmem:[#allocation13 + $0xf0] sm:$0xff]  ;;  %v1345_v26 = vand.u32 4294901760, %v3028_v29 }
 0x137   :  { %1073 = vmatpush.msrb.mxu2 %v1016_v24  ;;  %v2988_v19 = vand.u32 4294901760, %v1258_v9  ;;  %v3062_v21 = vsub.f32 %v1244_v8, %v3049_v62 }
 0x138   :  { %1199 = vmatpush.msra.mxu1 %v2800_v43  ;;  %1158 = vmatpush.msra.mxu0 %v981_v13  ;;  %v1256_v43 = vld [vmem:[#allocation13 + $0xe0] sm:$0xff]  ;;  %v1333_v13 = vand.u32 4294901760, %v3016_v1 }
 0x139   :  { %v2990_v11 = vand.u32 4294901760, %v1256_v43  ;;  %v3001_v49 = vsub.f32 %v1258_v9, %v2988_v19  ;;  %1267 = vmatpush.msra.mxu2 %v2988_v19  ;;  %v1346_v9 = vsub.f32 %v3028_v29, %v1345_v26 }
 0x13a   :  { %1201 = vmatpush.msra.mxu1 %v2812_v51  ;;  %1162 = vmatpush.msra.mxu0 %v987_v45  ;;  %v2992_v51 = vand.u32 4294901760, %v1254_v57 }
 0x13b   :  { %v3004_v63 = vsub.f32 %v1256_v43, %v2990_v11  ;;  %v1309_v23 = vand.u32 4294901760, %v3001_v49  ;;  %1269 = vmatpush.msra.mxu2 %v2990_v11  ;;  %v1351_v43 = vand.u32 4294901760, %v3062_v21 }
 0x13c   :  { %1203 = vmatpush.msra.mxu1 %v2823_v48  ;;  %1166 = vmatpush.msra.mxu0 %v993_v46  ;;  %v3007_v28 = vsub.f32 %v1254_v57, %v2992_v51  ;;  %v1232_v57 = vld [vmem:[#allocation13 + $0x20] sm:$0xff] }
 0x13d   :  { %v1310_v53 = vsub.f32 %v3001_v49, %v1309_v23  ;;  %1271 = vmatpush.msra.mxu2 %v2992_v51 }
 0x13e   :  { %1205 = vmatpush.msra.mxu1 %v2857_v60  ;;  %1170 = vmatpush.msra.mxu0 %v999_v52  ;;  %v1321_v27 = vand.u32 4294901760, %v3007_v28 }
 0x13f   :  { %v1311_v12 = vand.u32 4294901760, %v1310_v53  ;;  %1273 = vmatpush.msra.mxu2 %v2994_v22  ;;  %v1230_v53 = vld [vmem:[#allocation13 + $0x10] sm:$0xff] }
 0x140   :  { %1207 = vmatpush.msra.mxu1 %v2859_v31  ;;  %1174 = vmatpush.msra.mxu0 %v1005_v55  ;;  %v3013_v31 = vsub.f32 %v1252_v37, %v2994_v22  ;;  %v1322_v58 = vsub.f32 %v3007_v28, %v1321_v27 }
 0x141   :  { %1312 = vmatpush.msra.mxu3 %v1311_v12  ;;  %1275 = vmatpush.msra.mxu2 %v2996_v47  ;;  %v3112_v12 = vand.u32 4294901760, %v1230_v53 }
 0x142   :  { %1209 = vmatpush.msra.mxu1 %v2865_v34  ;;  %1178 = vmatpush.msra.mxu0 %v1011_v30  ;;  %v3019_v34 = vsub.f32 %v1248_v38, %v2998_v14  ;;  %v1323_v55 = vand.u32 4294901760, %v1322_v58  ;;  %v1236_v30 = vld [vmem:[#allocation13 + $0x40] sm:$0xff] }
 0x143   :  { %1277 = vmatpush.msra.mxu2 %v2998_v14  ;;  %v1228_v58 = vld [vmem:[#allocation13] sm:$0xff] }
 0x144   :  { %1211 = vmatpush.msra.mxu1 %v2874_v16  ;;  %1182 = vmatpush.msra.mxu0 %v1017_v44  ;;  %v1315_v16 = vand.u32 4294901760, %v3004_v63  ;;  %v1339_v2 = vand.u32 4294901760, %v3019_v34  ;;  %v3059_v44 = vand.u32 4294901760, %v1238_v35 }
 0x145   :  { %1279 = vmatpush.msra.mxu2 %v3010_v54 }
 0x146   :  { %1213 = vmatpush.msra.mxu1 %v2884_v61  ;;  %v1327_v61 = vand.u32 4294901760, %v3013_v31  ;;  %v1316_v46 = vsub.f32 %v3004_v63, %v1315_v16  ;;  %v1340_v5 = vsub.f32 %v3019_v34, %v1339_v2  ;;  %v3084_v38 = vsub.f32 %v1238_v35, %v3059_v44 }
 0x147   :  { %1281 = vmatpush.msra.mxu2 %v3049_v62 }
 0x148   :  { %1215 = vmatpush.msra.mxu1 %v910_v32  ;;  %v1328_v50 = vsub.f32 %v3013_v31, %v1327_v61  ;;  %v1317_v32 = vand.u32 4294901760, %v1316_v46  ;;  %v1341_v3 = vand.u32 4294901760, %v1340_v5  ;;  %v1347_v46 = vand.u32 4294901760, %v1346_v9  ;;  %v1259_v5 = vld [vmem:[#allocation13 + $0xf8] sm:$0xff] }
 0x149   :  { %v1369_v8 = vand.u32 4294901760, %v3084_v38 }
 0x14a   :  { %1217 = vmatpush.msra.mxu1 %v912_v18  ;;  %v1334_v18 = vsub.f32 %v3016_v1, %v1333_v13  ;;  %v1329_v10 = vand.u32 4294901760, %v1328_v50  ;;  %1318 = vmatpush.msra.mxu3 %v1317_v32 }
 0x14c   :  { %1219 = vmatpush.msra.mxu1 %v914_v6  ;;  %v3052_v6 = vand.u32 4294901760, %v1242_v33  ;;  %1324 = vmatpush.msra.mxu3 %v1323_v55 }
 0x14e   :  { %v3065_v40 = vsub.f32 %v1242_v33, %v3052_v6  ;;  %1330 = vmatpush.msra.mxu3 %v1329_v10  ;;  %1283 = vmatpush.msra.mxu2 %v3052_v6  ;;  %v3127_v10 = vsub.f32 %v1230_v53, %v3112_v12 }
 0x150   :  { %v1357_v17 = vand.u32 4294901760, %v3065_v40  ;;  %1285 = vmatpush.msra.mxu2 %v3054_v7 }
 0x152   :  { %v1358_v50 = vsub.f32 %v3065_v40, %v1357_v17  ;;  %1287 = vmatpush.msra.mxu2 %v3059_v44 }
 0x154   :  { %v1359_v55 = vand.u32 4294901760, %v1358_v50 }
 0x18f   :  { %v715_v42 = vpop.f32.mrf.mxu0 }
 0x191   :  { %v754_v15 = vpop.f32.mrf.mxu1 }
 0x193   :  { %v661_v25 = vpop.f32.mrf.mxu3 }
 0x19b   :  { %v560_v39 = vpop.f32.mrf.mxu2  ;;  %v860_v0 = vpop.f32.mrf.mxu3 }
 0x19c   :  { %v561_v41 = vadd.f32 %v2015_v4, %v560_v39  ;;  %v3071_v4 = vand.u32 4294901760, %v1236_v30 }
 0x19e   :  { %v662_v48 = vadd.f32 %v661_v25, %v561_v41  ;;  %v1234_v25 = vld [vmem:[#allocation13 + $0x30] sm:$0xff]  ;;  %v1335_v41 = vand.u32 4294901760, %v1334_v18  ;;  %v3118_v18 = vand.u32 4294901760, %v1228_v58  ;;  %1289 = vmatpush.msra.mxu2 %v3071_v4 }
 0x1a0   :  { %v716_v60 = vadd.f32 %v715_v42, %v662_v48  ;;  %v3086_v48 = vand.u32 4294901760, %v1234_v25  ;;  %v1363_v42 = vand.u32 4294901760, %v3069_v56  ;;  %1336 = vmatpush.msra.mxu3 %v1335_v41 }
 0x1a2   :  { %v755_v59 = vadd.f32 %v754_v15, %v716_v60  ;;  %v3091_v60 = vsub.f32 %v1236_v30, %v3071_v4  ;;  %v3105_v33 = vsub.f32 %v1234_v25, %v3086_v48  ;;  %1342 = vmatpush.msra.mxu3 %v1341_v3  ;;  %v1364_v20 = vsub.f32 %v3069_v56, %v1363_v42 }
 0x1a3   :  { %v823_v45 = vpop.f32.mrf.mxu2  ;;  %v1370_v30 = vsub.f32 %v3084_v38, %v1369_v8  ;;  %1291 = vmatpush.msra.mxu2 %v3086_v48 }
 0x1a4   :  { %v824_v52 = vadd.f32 %v823_v45, %v755_v59  ;;  %v1352_v59 = vsub.f32 %v3062_v21, %v1351_v43  ;;  %v3096_v45 = vand.u32 4294901760, %v1232_v57  ;;  %1348 = vmatpush.msra.mxu3 %v1347_v46  ;;  %v1365_v25 = vand.u32 4294901760, %v1364_v20 }
 0x1a6   :  { %v861_v36 = vadd.f32 %v860_v0, %v824_v52  ;;  %v1375_v0 = vand.u32 4294901760, %v3091_v60  ;;  %v1353_v35 = vand.u32 4294901760, %v1352_v59  ;;  %v3146_v59 = vand.u32 4294901760, %v1259_v5  ;;  %1293 = vmatpush.msra.mxu2 %v3096_v45 }
 0x1a8   :  { %v863_v24 = vmax.f32 %v861_v36, 0.0  ;;  %v3116_v36 = vsub.f32 %v1232_v57, %v3096_v45  ;;  %1354 = vmatpush.msra.mxu3 %v1353_v35  ;;  %v1376_v41 = vsub.f32 %v3091_v60, %v1375_v0  ;;  %v3137_v57 = vsub.f32 %v1228_v58, %v3118_v18  ;;  %1295 = vmatpush.msra.mxu2 %v3112_v12 }
 0x1a9   :  { %v3162_v20 = vsub.f32 %v1259_v5, %v3146_v59 }
 0x1aa   :  { %v3073_v39 = vand.u32 4294901760, %v863_v24  ;;  %v1387_v9 = vand.u32 4294901760, %v3116_v36  ;;  %1360 = vmatpush.msra.mxu3 %v1359_v55  ;;  %v1377_v53 = vand.u32 4294901760, %v1376_v41  ;;  %v1399_v58 = vand.u32 4294901760, %v3137_v57  ;;  %1297 = vmatpush.msra.mxu2 %v3118_v18  ;;  %v1239_v41 = vld [vmem:[#allocation13 + $0x58] sm:$0xff] }
 0x1ab   :  { %v1650_v55 = vand.u32 4294901760, %v3162_v20 }
 0x1ac   :  { %v917_v37 = vsub.f32 %v863_v24, %v3073_v39  ;;  %1022 = vmatmul.f32.vlgmr.msrb.gmra.mxu1 %v3073_v39  ;;  %v1381_v24 = vand.u32 4294901760, %v3105_v33  ;;  %1366 = vmatpush.msra.mxu3 %v1365_v25  ;;  %v1388_v46 = vsub.f32 %v3116_v36, %v1387_v9  ;;  %v1400_v35 = vsub.f32 %v3137_v57, %v1399_v58 }
 0x1ad   :  { %1463 = vmatpush.msrb.mxu1 %v2988_v19  ;;  %v1651_v5 = vsub.f32 %v3162_v20, %v1650_v55 }
 0x1ae   :  { %1076 = vmatmul.f32.vlgmr.msrb.gmra.mxu2 %v917_v37  ;;  %v918_v15 = vand.u32 4294901760, %v917_v37  ;;  %v1382_v3 = vsub.f32 %v3105_v33, %v1381_v24 }
 0x1af   :  { %1465 = vmatpush.msrb.mxu1 %v2990_v11  ;;  %1504 = vmatpush.msrb.mxu2 %v1309_v23  ;;  %v1652_v25 = vand.u32 4294901760, %v1651_v5 }
 0x1b0   :  { %1115 = vmatmul.f32.vlgmr.msrb.gmra.mxu3 %v918_v15  ;;  %v919_v52 = vsub.f32 %v917_v37, %v918_v15  ;;  %v1371_v37 = vand.u32 4294901760, %v1370_v30  ;;  %v1393_v15 = vand.u32 4294901760, %v3127_v10  ;;  %v1401_v30 = vand.u32 4294901760, %v1400_v35  ;;  %v1235_v35 = vld [vmem:[#allocation13 + $0x38] sm:$0xff] }
 0x1b1   :  { %1467 = vmatpush.msrb.mxu1 %v2992_v51  ;;  %1508 = vmatpush.msrb.mxu2 %v1315_v16  ;;  %v1249_v16 = vld [vmem:[#allocation13 + $0xa8] sm:$0xff] }
 0x1b2   :  { %v920_v32 = vand.u32 4294901760, %v919_v52  ;;  %1372 = vmatpush.msra.mxu3 %v1371_v37  ;;  %v1383_v52 = vand.u32 4294901760, %v1382_v3  ;;  %v1394_v50 = vsub.f32 %v3127_v10, %v1393_v15  ;;  %v3321_v37 = vand.u32 4294901760, %v1239_v41 }
 0x1b3   :  { %1469 = vmatpush.msrb.mxu1 %v2994_v22  ;;  %1512 = vmatpush.msrb.mxu2 %v1321_v27 }
 0x1b4   :  { %921 = vmatmul.f32.vlgmr.msrb.gmra.mxu0 %v920_v32  ;;  %1221 = vmatmul.f32.vlgmr.msra.gmra.mxu1 %v3073_v39  ;;  %v1389_v32 = vand.u32 4294901760, %v1388_v46 }
 0x1b5   :  { %1410 = vmatpush.msrb.mxu0 %v3001_v49  ;;  %1471 = vmatpush.msrb.mxu1 %v2996_v47 }
 0x1b6   :  { %1378 = vmatpush.msra.mxu3 %v1377_v53  ;;  %1516 = vmatpush.msrb.mxu2 %v1327_v61  ;;  %v1237_v53 = vld [vmem:[#allocation13 + $0x48] sm:$0xff] }
 0x1b7   :  { %1413 = vmatpush.msrb.mxu0 %v3004_v63  ;;  %1473 = vmatpush.msrb.mxu1 %v2998_v14 }
 0x1b8   :  { %1384 = vmatpush.msra.mxu3 %v1383_v52  ;;  %1520 = vmatpush.msrb.mxu2 %v1333_v13  ;;  %v3334_v52 = vand.u32 4294901760, %v1237_v53 }
 0x1b9   :  { %1416 = vmatpush.msrb.mxu0 %v3007_v28  ;;  %1475 = vmatpush.msrb.mxu1 %v3010_v54 }
 0x1ba   :  { %1390 = vmatpush.msra.mxu3 %v1389_v32  ;;  %1524 = vmatpush.msrb.mxu2 %v1339_v2 }
 0x1bb   :  { %1419 = vmatpush.msrb.mxu0 %v3013_v31  ;;  %1477 = vmatpush.msrb.mxu1 %v3049_v62 }
 0x1bc   :  { %1184 = vmatmul.f32.vlgmr.msra.gmra.mxu0 %v3073_v39  ;;  %v1395_v39 = vand.u32 4294901760, %v1394_v50  ;;  %1528 = vmatpush.msrb.mxu2 %v1345_v26  ;;  %v3337_v50 = vsub.f32 %v1239_v41, %v3321_v37 }
 0x1bd   :  { %1422 = vmatpush.msrb.mxu0 %v3016_v1  ;;  %1479 = vmatpush.msrb.mxu1 %v3052_v6 }
 0x1be   :  { %1396 = vmatpush.msra.mxu3 %v1395_v39  ;;  %1532 = vmatpush.msrb.mxu2 %v1351_v43  ;;  %v1710_v5 = vand.u32 4294901760, %v3337_v50 }
 0x1bf   :  { %1425 = vmatpush.msrb.mxu0 %v3019_v34  ;;  %1481 = vmatpush.msrb.mxu1 %v3054_v7 }
 0x1c0   :  { %1402 = vmatpush.msra.mxu3 %v1401_v30  ;;  %1536 = vmatpush.msrb.mxu2 %v1357_v17 }
 0x1c1   :  { %1428 = vmatpush.msrb.mxu0 %v3028_v29  ;;  %1483 = vmatpush.msrb.mxu1 %v3059_v44  ;;  %v3274_v29 = vand.u32 4294901760, %v1249_v16 }
 0x1c2   :  { %1571 = vmatpush.msrb.mxu3 %v2988_v19  ;;  %v1257_v19 = vld [vmem:[#allocation13 + $0xe8] sm:$0xff]  ;;  %1540 = vmatpush.msrb.mxu2 %v1363_v42 }
 0x1c3   :  { %1431 = vmatpush.msrb.mxu0 %v3062_v21  ;;  %1485 = vmatpush.msrb.mxu1 %v3071_v4  ;;  %v3287_v21 = vsub.f32 %v1249_v16, %v3274_v29 }
 0x1c4   :  { %1573 = vmatpush.msrb.mxu3 %v2990_v11  ;;  %v3216_v11 = vand.u32 4294901760, %v1257_v19  ;;  %1544 = vmatpush.msrb.mxu2 %v1369_v8 }
 0x1c5   :  { %1434 = vmatpush.msrb.mxu0 %v3065_v40  ;;  %1487 = vmatpush.msrb.mxu1 %v3086_v48  ;;  %v1680_v43 = vand.u32 4294901760, %v3287_v21 }
 0x1c6   :  { %1575 = vmatpush.msrb.mxu3 %v2992_v51  ;;  %1548 = vmatpush.msrb.mxu2 %v1375_v0  ;;  %v1255_v51 = vld [vmem:[#allocation13 + $0xd8] sm:$0xff]  ;;  %v1241_v0 = vld [vmem:[#allocation13 + $0x68] sm:$0xff] }
 0x1c7   :  { %1437 = vmatpush.msrb.mxu0 %v3069_v56  ;;  %1489 = vmatpush.msrb.mxu1 %v3096_v45  ;;  %v1245_v56 = vld [vmem:[#allocation13 + $0x88] sm:$0xff] }
 0x1c8   :  { %1577 = vmatpush.msrb.mxu3 %v2994_v22  ;;  %1552 = vmatpush.msrb.mxu2 %v1381_v24  ;;  %v3247_v22 = vand.u32 4294901760, %v1255_v51  ;;  %v3294_v17 = vand.u32 4294901760, %v1245_v56 }
 0x1c9   :  { %1440 = vmatpush.msrb.mxu0 %v3084_v38  ;;  %1491 = vmatpush.msrb.mxu1 %v3112_v12 }
 0x1ca   :  { %1579 = vmatpush.msrb.mxu3 %v2996_v47  ;;  %1556 = vmatpush.msrb.mxu2 %v1387_v9  ;;  %v3250_v47 = vsub.f32 %v1257_v19, %v3216_v11  ;;  %v3257_v28 = vsub.f32 %v1255_v51, %v3247_v22  ;;  %v3347_v19 = vsub.f32 %v1237_v53, %v3334_v52  ;;  %v1233_v51 = vld [vmem:[#allocation13 + $0x28] sm:$0xff] }
 0x1cb   :  { %1443 = vmatpush.msrb.mxu0 %v3091_v60  ;;  %1493 = vmatpush.msrb.mxu1 %v3118_v18  ;;  %v1681_v60 = vsub.f32 %v3287_v21, %v1680_v43 }
 0x1cc   :  { %1581 = vmatpush.msrb.mxu3 %v2998_v14  ;;  %1560 = vmatpush.msrb.mxu2 %v1393_v15  ;;  %v1253_v14 = vld [vmem:[#allocation13 + $0xc8] sm:$0xff]  ;;  %v1656_v49 = vand.u32 4294901760, %v3250_v47  ;;  %v1662_v1 = vand.u32 4294901760, %v3257_v28 }
 0x1cd   :  { %1653 = vmatpush.msra.mxu1 %v1652_v25  ;;  %1446 = vmatpush.msrb.mxu0 %v3105_v33  ;;  %v3254_v63 = vand.u32 4294901760, %v1253_v14  ;;  %v3307_v33 = vsub.f32 %v1245_v56, %v3294_v17  ;;  %v3344_v25 = vand.u32 4294901760, %v1235_v35 }
 0x1ce   :  { %1583 = vmatpush.msrb.mxu3 %v3010_v54  ;;  %1564 = vmatpush.msrb.mxu2 %v1399_v58  ;;  %v1251_v54 = vld [vmem:[#allocation13 + $0xb8] sm:$0xff]  ;;  %v1657_v31 = vsub.f32 %v3250_v47, %v1656_v49  ;;  %v1663_v61 = vsub.f32 %v3257_v28, %v1662_v1 }
 0x1cf   :  { %1449 = vmatpush.msrb.mxu0 %v3116_v36  ;;  %v3264_v34 = vand.u32 4294901760, %v1251_v54  ;;  %v3267_v23 = vsub.f32 %v1253_v14, %v3254_v63  ;;  %v3356_v16 = vsub.f32 %v1235_v35, %v3344_v25 }
 0x1d0   :  { %1585 = vmatpush.msrb.mxu3 %v3049_v62  ;;  %v1658_v27 = vand.u32 4294901760, %v1657_v31  ;;  %v1664_v26 = vand.u32 4294901760, %v1663_v61  ;;  %v3353_v31 = vand.u32 4294901760, %v1233_v51  ;;  %v1231_v61 = vld [vmem:[#allocation13 + $0x18] sm:$0xff] }
 0x1d1   :  { %1452 = vmatpush.msrb.mxu0 %v3127_v10  ;;  %v1668_v13 = vand.u32 4294901760, %v3267_v23  ;;  %v3277_v2 = vsub.f32 %v1251_v54, %v3264_v34  ;;  %v1692_v10 = vand.u32 4294901760, %v3307_v33  ;;  %v1711_v54 = vsub.f32 %v3337_v50, %v1710_v5 }
 0x1d2   :  { %1587 = vmatpush.msrb.mxu3 %v3052_v6  ;;  %1659 = vmatpush.msra.mxu1 %v1658_v27  ;;  %v1247_v6 = vld [vmem:[#allocation13 + $0x98] sm:$0xff]  ;;  %v1716_v27 = vand.u32 4294901760, %v3347_v19 }
 0x1d3   :  { %1455 = vmatpush.msrb.mxu0 %v3137_v57  ;;  %v1669_v62 = vsub.f32 %v3267_v23, %v1668_v13  ;;  %v1693_v15 = vsub.f32 %v3307_v33, %v1692_v10 }
 0x1d4   :  { %1589 = vmatpush.msrb.mxu3 %v3054_v7  ;;  %v1674_v7 = vand.u32 4294901760, %v3277_v2  ;;  %1665 = vmatpush.msra.mxu1 %v1664_v26  ;;  %v1712_v26 = vand.u32 4294901760, %v1711_v54  ;;  %v1717_v56 = vsub.f32 %v3347_v19, %v1716_v27 }
 0x1d5   :  { %1608 = vmatpush.msra.mxu0 %v3146_v59  ;;  %v1670_v40 = vand.u32 4294901760, %v1669_v62  ;;  %v1694_v32 = vand.u32 4294901760, %v1693_v15  ;;  %v1722_v62 = vand.u32 4294901760, %v3356_v16 }
 0x1d6   :  { %1591 = vmatpush.msrb.mxu3 %v3059_v44  ;;  %v3284_v44 = vand.u32 4294901760, %v1247_v6 }
 0x1d7   :  { %1610 = vmatpush.msra.mxu0 %v3216_v11  ;;  %1671 = vmatpush.msra.mxu1 %v1670_v40  ;;  %v3364_v40 = vsub.f32 %v1233_v51, %v3353_v31  ;;  %v2016_v51 = vld [vmem:[%s3510_s7] ss:$0 sm:$0xff] }
 0x1d8   :  { %1593 = vmatpush.msrb.mxu3 %v3071_v4  ;;  %v1675_v4 = vsub.f32 %v3277_v2, %v1674_v7  ;;  %v3297_v38 = vsub.f32 %v1247_v6, %v3284_v44  ;;  %v3361_v6 = vand.u32 4294901760, %v1231_v61 }
 0x1d9   :  { %1612 = vmatpush.msra.mxu0 %v3247_v22 }
 0x1da   :  { %1595 = vmatpush.msrb.mxu3 %v3086_v48  ;;  %v1243_v48 = vld [vmem:[#allocation13 + $0x78] sm:$0xff]  ;;  %v1676_v42 = vand.u32 4294901760, %v1675_v4  ;;  %v1229_v4 = vld [vmem:[#allocation13 + $0x8] sm:$0xff] }
 0x1db   :  { %1614 = vmatpush.msra.mxu0 %v3254_v63  ;;  %v3304_v8 = vand.u32 4294901760, %v1243_v48 }
 0x1dc   :  { %1597 = vmatpush.msrb.mxu3 %v3096_v45  ;;  %v1686_v45 = vand.u32 4294901760, %v3297_v38  ;;  %1677 = vmatpush.msra.mxu1 %v1676_v42  ;;  %v1728_v42 = vand.u32 4294901760, %v3364_v40 }
 0x1dd   :  { %1616 = vmatpush.msra.mxu0 %v3264_v34  ;;  %v3316_v24 = vsub.f32 %v1243_v48, %v3304_v8  ;;  %v1723_v48 = vsub.f32 %v3356_v16, %v1722_v62 }
 0x1de   :  { %1599 = vmatpush.msrb.mxu3 %v3112_v12  ;;  %v1682_v12 = vand.u32 4294901760, %v1681_v60  ;;  %v1687_v36 = vsub.f32 %v3297_v38, %v1686_v45  ;;  %v3374_v60 = vand.u32 4294901760, %v1229_v4  ;;  %v1729_v41 = vsub.f32 %v3364_v40, %v1728_v42 }
 0x1df   :  { %1618 = vmatpush.msra.mxu0 %v3274_v29  ;;  %v1698_v57 = vand.u32 4294901760, %v3316_v24 }
 0x1e0   :  { %1601 = vmatpush.msrb.mxu3 %v3118_v18  ;;  %v3313_v18 = vand.u32 4294901760, %v1241_v0  ;;  %1683 = vmatpush.msra.mxu1 %v1682_v12  ;;  %v1688_v9 = vand.u32 4294901760, %v1687_v36  ;;  %v1718_v12 = vand.u32 4294901760, %v1717_v56  ;;  %v1724_v36 = vand.u32 4294901760, %v1723_v48 }
 0x1e1   :  { %1620 = vmatpush.msra.mxu0 %v3284_v44  ;;  %v1699_v46 = vsub.f32 %v3316_v24, %v1698_v57  ;;  %v3385_v15 = vsub.f32 %v1229_v4, %v3374_v60  ;;  %v1730_v53 = vand.u32 4294901760, %v1729_v41 }
 0x1e2   :  { %v3324_v3 = vsub.f32 %v1241_v0, %v3313_v18  ;;  %1689 = vmatpush.msra.mxu1 %v1688_v9  ;;  %v3377_v0 = vsub.f32 %v1231_v61, %v3361_v6 }
 0x1e3   :  { %1622 = vmatpush.msra.mxu0 %v3294_v17  ;;  %v1700_v39 = vand.u32 4294901760, %v1699_v46 }
 0x1e4   :  { %v1704_v58 = vand.u32 4294901760, %v3324_v3  ;;  %1695 = vmatpush.msra.mxu1 %v1694_v32  ;;  %v1734_v9 = vand.u32 4294901760, %v3377_v0  ;;  %v3514_v32 = vand.u32 4294901760, %v3385_v15 }
 0x1e5   :  { %1624 = vmatpush.msra.mxu0 %v3304_v8 }
 0x1e6   :  { %v1705_v30 = vsub.f32 %v3324_v3, %v1704_v58  ;;  %1701 = vmatpush.msra.mxu1 %v1700_v39  ;;  %v1735_v46 = vsub.f32 %v3377_v0, %v1734_v9  ;;  %v1741_v39 = vsub.f32 %v3385_v15, %v3514_v32 }
 0x1e7   :  { %1626 = vmatpush.msra.mxu0 %v3313_v18 }
 0x1e8   :  { %v1706_v14 = vand.u32 4294901760, %v1705_v30  ;;  %v1736_v35 = vand.u32 4294901760, %v1735_v46  ;;  %v1742_v30 = vand.u32 4294901760, %v1741_v39 }
 0x1e9   :  { %1628 = vmatpush.msra.mxu0 %v3321_v37 }
 0x1ea   :  { %1707 = vmatpush.msra.mxu1 %v1706_v14 }
 0x1eb   :  { %1630 = vmatpush.msra.mxu0 %v3334_v52 }
 0x1ec   :  { %1713 = vmatpush.msra.mxu1 %v1712_v26 }
 0x1ed   :  { %1632 = vmatpush.msra.mxu0 %v3344_v25 }
 0x1ee   :  { %1719 = vmatpush.msra.mxu1 %v1718_v12 }
 0x1ef   :  { %1634 = vmatpush.msra.mxu0 %v3353_v31 }
 0x1f0   :  { %1725 = vmatpush.msra.mxu1 %v1724_v36 }
 0x1f1   :  { %1636 = vmatpush.msra.mxu0 %v3361_v6 }
 0x1f2   :  { %1731 = vmatpush.msra.mxu1 %v1730_v53 }
 0x1f3   :  { %1638 = vmatpush.msra.mxu0 %v3374_v60 }
 0x1f4   :  { %1737 = vmatpush.msra.mxu1 %v1736_v35 }
 0x1f6   :  { %1743 = vmatpush.msra.mxu1 %v1742_v30 }
 0x229   :  { %v1023_v14 = vpop.f32.mrf.mxu1 }
 0x231   :  { %v922_v54 = vpop.f32.mrf.mxu0  ;;  %v1077_v56 = vpop.f32.mrf.mxu2 }
 0x232   :  { %v923_v61 = vadd.f32 %v2016_v51, %v922_v54  ;;  %v1222_v46 = vpop.f32.mrf.mxu1 }
 0x233   :  { %v1116_v48 = vpop.f32.mrf.mxu3 }
 0x234   :  { %v1024_v26 = vadd.f32 %v1023_v14, %v923_v61 }
 0x236   :  { %v1078_v4 = vadd.f32 %v1077_v56, %v1024_v26 }
 0x238   :  { %v1117_v12 = vadd.f32 %v1116_v48, %v1078_v4 }
 0x239   :  { %v1185_v36 = vpop.f32.mrf.mxu0 }
 0x23a   :  { %v1186_v41 = vadd.f32 %v1185_v36, %v1117_v12 }
 0x23c   :  { %v1223_v32 = vadd.f32 %v1222_v46, %v1186_v41 }
 0x23e   :  { %v1225_v53 = vmax.f32 %v1223_v32, 0.0 }
 0x240   :  { %v3397_v39 = vand.u32 4294901760, %v1225_v53 }
 0x242   :  { %v3400_v35 = vsub.f32 %v1225_v53, %v3397_v39  ;;  %1404 = vmatmul.f32.vlgmr.msra.gmra.mxu3 %v3397_v39 }
 0x243   :  { %1804 = vmatpush.msra.mxu3 %v3146_v59 }
 0x244   :  { %1458 = vmatmul.f32.vlgmr.msrb.gmra.mxu0 %v3400_v35  ;;  %v3406_v30 = vand.u32 4294901760, %v3400_v35 }
 0x245   :  { %1806 = vmatpush.msra.mxu3 %v3216_v11  ;;  %1845 = vmatpush.msrb.mxu0 %v1650_v55 }
 0x246   :  { %1497 = vmatmul.f32.vlgmr.msrb.gmra.mxu1 %v3406_v30  ;;  %v1301_v32 = vsub.f32 %v3400_v35, %v3406_v30 }
 0x247   :  { %1808 = vmatpush.msra.mxu3 %v3247_v22  ;;  %1849 = vmatpush.msrb.mxu0 %v1656_v49 }
 0x248   :  { %1912 = vmatpush.msrb.mxu1 %v3146_v59  ;;  %v1302_v51 = vand.u32 4294901760, %v1301_v32  ;;  %v3515_v59 = vand.u32 4294901760, %v3385_v15 }
 0x249   :  { %1810 = vmatpush.msra.mxu3 %v3254_v63  ;;  %1853 = vmatpush.msrb.mxu0 %v1662_v1 }
 0x24a   :  { %1914 = vmatpush.msrb.mxu1 %v3216_v11  ;;  %1303 = vmatmul.f32.vlgmr.msra.gmra.mxu2 %v1302_v51 }
 0x24b   :  { %1603 = vmatmul.f32.vlgmr.msrb.gmra.mxu3 %v3397_v39  ;;  %1751 = vmatpush.msra.mxu2 %v3162_v20  ;;  %v1260_v20 = vld [vmem:[%s3512_s9] sm:$0x3]  ;;  %s2211_s9 = smov [#allocation15]  }
 0x24c   :  { %1812 = vmatpush.msra.mxu3 %v3264_v34  ;;  %1857 = vmatpush.msrb.mxu0 %v1668_v13  ;;  %v1262_v55 = vperm.slane %v1260_v20, 0  ;;  %s1955_s17 = sshll.u32 %s2211_s9, 4  ;;  %s1956_s17 = int_to_ptr.vmem [resolvable:$true] %s1955_s17 }
 0x24d   :  { %1916 = vmatpush.msrb.mxu1 %v3247_v22  ;;  %1644 = vmatmul.f32.vlgmr.msra.gmra.mxu0 %v1302_v51 }
 0x24e   :  { %1754 = vmatpush.msra.mxu2 %v3250_v47  ;;  %1814 = vmatpush.msra.mxu3 %v3274_v29 }
 0x24f   :  { %1861 = vmatpush.msrb.mxu0 %v1674_v7  ;;  %1918 = vmatpush.msrb.mxu1 %v3254_v63  ;;  %v1263_v7 = vperm.slane %v1260_v20, 1 }
 0x250   :  { %1745 = vmatmul.f32.vlgmr.msra.gmra.mxu1 %v3397_v39  ;;  %1757 = vmatpush.msra.mxu2 %v3257_v28 }
 0x251   :  { %1816 = vmatpush.msra.mxu3 %v3284_v44  ;;  %1865 = vmatpush.msrb.mxu0 %v1680_v43 }
 0x252   :  { %1920 = vmatpush.msrb.mxu1 %v3264_v34  ;;  %1760 = vmatpush.msra.mxu2 %v3267_v23 }
 0x253   :  { %1818 = vmatpush.msra.mxu3 %v3294_v17  ;;  %1869 = vmatpush.msrb.mxu0 %v1686_v45 }
 0x254   :  { %1922 = vmatpush.msrb.mxu1 %v3274_v29  ;;  %1566 = vmatmul.f32.vlgmr.msrb.gmra.mxu2 %v3397_v39 }
 0x255   :  { %1763 = vmatpush.msra.mxu2 %v3277_v2  ;;  %1820 = vmatpush.msra.mxu3 %v3304_v8 }
 0x256   :  { %1873 = vmatpush.msrb.mxu0 %v1692_v10  ;;  %1924 = vmatpush.msrb.mxu1 %v3284_v44 }
 0x257   :  { %1766 = vmatpush.msra.mxu2 %v3287_v21  ;;  %1822 = vmatpush.msra.mxu3 %v3313_v18 }
 0x258   :  { %1877 = vmatpush.msrb.mxu0 %v1698_v57  ;;  %1926 = vmatpush.msrb.mxu1 %v3294_v17 }
 0x259   :  { %1769 = vmatpush.msra.mxu2 %v3297_v38  ;;  %1824 = vmatpush.msra.mxu3 %v3321_v37 }
 0x25a   :  { %1881 = vmatpush.msrb.mxu0 %v1704_v58  ;;  %1928 = vmatpush.msrb.mxu1 %v3304_v8 }
 0x25b   :  { %1772 = vmatpush.msra.mxu2 %v3307_v33  ;;  %1826 = vmatpush.msra.mxu3 %v3334_v52 }
 0x25c   :  { %1885 = vmatpush.msrb.mxu0 %v1710_v5  ;;  %1930 = vmatpush.msrb.mxu1 %v3313_v18 }
 0x25d   :  { %1775 = vmatpush.msra.mxu2 %v3316_v24  ;;  %1828 = vmatpush.msra.mxu3 %v3344_v25 }
 0x25e   :  { %1889 = vmatpush.msrb.mxu0 %v1716_v27  ;;  %1932 = vmatpush.msrb.mxu1 %v3321_v37 }
 0x25f   :  { %1778 = vmatpush.msra.mxu2 %v3324_v3  ;;  %1830 = vmatpush.msra.mxu3 %v3353_v31 }
 0x260   :  { %1893 = vmatpush.msrb.mxu0 %v1722_v62  ;;  %1934 = vmatpush.msrb.mxu1 %v3334_v52 }
 0x261   :  { %1781 = vmatpush.msra.mxu2 %v3337_v50  ;;  %1832 = vmatpush.msra.mxu3 %v3361_v6 }
 0x262   :  { %1897 = vmatpush.msrb.mxu0 %v1728_v42  ;;  %1936 = vmatpush.msrb.mxu1 %v3344_v25 }
 0x263   :  { %1784 = vmatpush.msra.mxu2 %v3347_v19  ;;  %1834 = vmatpush.msra.mxu3 %v3374_v60 }
 0x264   :  { %1901 = vmatpush.msrb.mxu0 %v1734_v9  ;;  %1938 = vmatpush.msrb.mxu1 %v3353_v31 }
 0x265   :  { %1838 = vmatmul.f32.vlgmr.msra.gmra.mxu3 %v3406_v30  ;;  %1787 = vmatpush.msra.mxu2 %v3356_v16 }
 0x266   :  { %1905 = vmatpush.msrb.mxu0 %v3515_v59  ;;  %1940 = vmatpush.msrb.mxu1 %v3361_v6 }
 0x267   :  { %1907 = vmatmul.f32.vlgmr.msrb.gmra.mxu0 %v3397_v39  ;;  %1790 = vmatpush.msra.mxu2 %v3364_v40 }
 0x268   :  { %1942 = vmatpush.msrb.mxu1 %v3374_v60 }
 0x269   :  { %1944 = vmatmul.f32.vlgmr.msrb.gmra.mxu1 %v3397_v39  ;;  %1793 = vmatpush.msra.mxu2 %v3377_v0 }
 0x26b   :  { %1796 = vmatpush.msra.mxu2 %v3385_v15 }
 0x26c   :  { %1799 = vmatmul.f32.vlgmr.msra.gmra.mxu2 %v3400_v35 }
 0x2c1   :  { %v1459_v63 = vpop.f32.mrf.mxu0 }
 0x2c3   :  { %v1498_v1 = vpop.f32.mrf.mxu1 }
 0x2c5   :  { %v1405_v47 = vpop.f32.mrf.mxu3 }
 0x2ca   :  { %v1645_v44 = vpop.f32.mrf.mxu0 }
 0x2cb   :  { %v1646_v21 = vadd.f32 %v1645_v44, %v1263_v7 }
 0x2cd   :  { %v1304_v11 = vpop.f32.mrf.mxu2  ;;  %v1746_v43 = vpop.f32.mrf.mxu1 }
 0x2ce   :  { %v1305_v22 = vadd.f32 %v1304_v11, %v1262_v55  ;;  %v1604_v29 = vpop.f32.mrf.mxu3  ;;  %v1747_v17 = vadd.f32 %v1746_v43, %v1646_v21 }
 0x2d0   :  { %v1406_v49 = vadd.f32 %v1405_v47, %v1305_v22 }
 0x2d2   :  { %v1460_v28 = vadd.f32 %v1459_v63, %v1406_v49 }
 0x2d4   :  { %v1499_v34 = vadd.f32 %v1498_v1, %v1460_v28 }
 0x2d7   :  { %v1567_v23 = vpop.f32.mrf.mxu2 }
 0x2d8   :  { %v1568_v13 = vadd.f32 %v1567_v23, %v1499_v34 }
 0x2da   :  { %v1605_v2 = vadd.f32 %v1604_v29, %v1568_v13 }
 0x2dc   :  { %1948 = vst [vmem:[#allocation15] sm:$0xff] %v1605_v2 }
 0x2e4   :  { %v1908_v18 = vpop.f32.mrf.mxu0 }
 0x2e6   :  { %v1945_v10 = vpop.f32.mrf.mxu1 }
 0x2e8   :  { %v1839_v8 = vpop.f32.mrf.mxu3 }
 0x2ef   :  { %v1800_v38 = vpop.f32.mrf.mxu2 }
 0x2f0   :  { %v1801_v45 = vadd.f32 %v1800_v38, %v1747_v17 }
 0x2f2   :  { %v1840_v33 = vadd.f32 %v1839_v8, %v1801_v45 }
 0x2f4   :  { %v1909_v24 = vadd.f32 %v1908_v18, %v1840_v33 }
 0x2f6   :  { %v1946_v57 = vadd.f32 %v1945_v10, %v1909_v24 }
 0x2f8   :  { %1949 = vst [vmem:[#allocation15 + $0x8] sm:$0xff] %v1946_v57 }
 0x2f9   :  { %1960 = dma.vmem_to_hbm [thread:$0]  %s1956_s17, 256, %s1958_s18, [#allocation9]  }
 0x2fa   :  { %2191 = dma.done.wait [#allocation9], 256  }
 0x2fb   :  { %2192 = vsyncadd [#allocation9], 4294967040 }
 0x2fc   :  { %1965 = vsyncpa [#allocation8], 1 }
 0x2fd   :  { %1966 = vsyncpa [#allocation11], 1 }
 0x2fe   :  { %1967 = vsyncpa [#allocation14], 1 }
 0x2ff   :  { %1968 = vsyncpa [#allocation9], 1 }
 0x300   :  { %1969 = vsyncmov [#allocation4] }
 0x303   :  { %s1970_s19 = vpop.sfrf %1969 }
 0x304   :  { %p1987_p12 = scmp.ne.s32.totalorder %s1970_s19, 0 }
 0x306   :  { %1974 = shalt.err (%p1987_p12)  }

// kernel: tpu_custom_call.1
= control target key start
LH: loop header
LB: loop body
LE: loop exit
PB: predicated region body
PF: predicated region fallthrough
CT: control target
= control target key end

     0   :  { %s596_s16 = smov [#allocation6]   ;;  %s711_s0 = inlined_call_operand.hbm [shape: s32[8], index: 0, kind: input, shape index: {}]   ;;  %s712_s1 = inlined_call_operand.hbm [shape: f32[256,128], index: 1, kind: input, shape index: {}]   ;;  %s713_s2 = inlined_call_operand.hbm [shape: f32[128,128], index: 2, kind: input, shape index: {}]   ;;  %s714_s3 = inlined_call_operand.vmem [shape: f32[1,128], index: 3, kind: input, shape index: {}]   ;;  %s715_s4 = inlined_call_operand.hbm [shape: f32[128,128], index: 4, kind: input, shape index: {}]   ;;  %s716_s5 = inlined_call_operand.vmem [shape: f32[1,128], index: 5, kind: input, shape index: {}]   ;;  %s717_s6 = inlined_call_operand.hbm [shape: f32[128,128], index: 6, kind: input, shape index: {}]   ;;  %s718_s7 = inlined_call_operand.vmem [shape: f32[1,128], index: 7, kind: input, shape index: {}]   ;;  %s719_s8 = inlined_call_operand.hbm [shape: f32[128,256], index: 8, kind: input, shape index: {}]   ;;  %s720_s9 = inlined_call_operand.vmem [shape: f32[1,256], index: 9, kind: input, shape index: {}]   ;;  %s721_s10 = inlined_call_operand.hbm [shape: f32[8,256], index: 10, kind: output, shape index: {}]  }
   0x1   :  { %s16_s15 = sshll.u32 %s711_s0, 4  ;;  %s17_s15 = int_to_ptr.hbm [resolvable:$true] %s16_s15 }
   0x2   :  { %19 = dma.hbm_to_smem %s17_s15, 16, %s596_s16, [#allocation5] }
   0x3   :  { %576 = dma.done.wait [#allocation5], 16 }
   0x4   :  { %577 = vsyncadd [#allocation5], 4294967280 }
   0x5   :  { %22 = sfence }
   0x6   :  { %23 = vsyncpa [#allocation8], 0 }
   0x7   :  { %24 = vsyncpa [#allocation11], 0 }
   0x8   :  { %25 = vsyncpa [#allocation14], 0 }
   0x9   :  { %26 = vsyncpa [#allocation9], 0  ;;  %s46_s19 = sshll.u32 %s715_s4, 4  ;;  %s597_s20 = smov [#allocation10]   ;;  %s47_s19 = int_to_ptr.hbm [resolvable:$true] %s46_s19 }
   0xa   :  { %s48_s21 = sshll.u32 %s597_s20, 4  ;;  %s31_s23 = sshll.u32 %s713_s2, 4  ;;  %s49_s21 = int_to_ptr.vmem [resolvable:$true] %s48_s21  ;;  %s32_s23 = int_to_ptr.hbm [resolvable:$true] %s31_s23 }
   0xb   :  { %s598_s24 = smov 128   ;;  %s599_s25 = smov 8  }
   0xc   :  { %54 = dma.hbm_to_vmem [thread:$0]  %s47_s19, 2048, %s49_s21, [#allocation11], %s598_s24, %s598_s24, %s599_s25  }
   0xd   :  { %s600_s26 = smov [#allocation7]   ;;  %s61_s30 = sshll.u32 %s717_s6, 4  ;;  %s62_s30 = int_to_ptr.hbm [resolvable:$true] %s61_s30 }
   0xe   :  { %s33_s27 = sshll.u32 %s600_s26, 4  ;;  %s76_s12 = sshll.u32 %s719_s8, 4  ;;  %s34_s27 = int_to_ptr.vmem [resolvable:$true] %s33_s27  ;;  %s77_s12 = int_to_ptr.hbm [resolvable:$true] %s76_s12 }
   0xf   :  { %39 = dma.hbm_to_vmem [thread:$0]  %s32_s23, 2048, %s34_s27, [#allocation8], %s598_s24, %s598_s24, %s599_s25  }
  0x10   :  { %s601_s13 = smov [#allocation12]   ;;  %s602_s2 = smov [#allocation13]  }
  0x11   :  { %s63_s14 = sshll.u32 %s601_s13, 4  ;;  %s78_s15 = sshll.u32 %s602_s2, 4  ;;  %s64_s14 = int_to_ptr.vmem [resolvable:$true] %s63_s14  ;;  %s79_s15 = int_to_ptr.vmem [resolvable:$true] %s78_s15 }
  0x12   :  { %69 = dma.hbm_to_vmem [thread:$0]  %s62_s30, 2048, %s64_s14, [#allocation11], %s598_s24, %s598_s24, %s599_s25  }
  0x13   :  { %s603_s16 = smov 256   ;;  %s604_s17 = smov 16  }
  0x14   :  { %84 = dma.hbm_to_vmem [thread:$0]  %s77_s12, 4096, %s79_s15, [#allocation14], %s603_s16, %s603_s16, %s604_s17  }
  0x15   :  { %578 = dma.done.wait [#allocation8], 2048  }
  0x16   :  { %579 = vsyncadd [#allocation8], 4294965248 }
  0x17   :  { %580 = dma.done.wait [#allocation11], 4096  }
  0x18   :  { %581 = vsyncadd [#allocation11], 4294963200 }
  0x19   :  { %582 = dma.done.wait [#allocation14], 4096  }
  0x1a   :  { %583 = vsyncadd [#allocation14], 4294963200  ;;  %s677_s6 = smov 0  }
  0x1b LB: > { %s115_s8 = sld [smem:[#allocation6 + %s590_s6]]  ;;  %s117_s18 = scalar_lea.vmem [#allocation2], %s590_s6  ;;  %s590_s6 = sphi %s677_s6, %s113_s6  }
  0x1c   : > { %s127_s19 = sshll.u32 %s117_s18, 4  ;;  %s524_s27 = scalar_lea.hbm %s712_s1, 256  ;;  %s128_s19 = int_to_ptr.vmem [resolvable:$true] %s127_s19 }
  0x21   : > { %s116_s22 = scalar_lea.hbm %s712_s1, %s115_s8 }
  0x22   : > { %s125_s0 = sshll.u32 %s116_s22, 4  ;;  %s126_s0 = int_to_ptr.hbm [resolvable:$true] %s125_s0 }
  0x23   : > { %s520_s23 = sshra.s32 %s126_s0, 4  ;;  %s521_s23 = int_to_ptr.hbm [resolvable:$true] %s520_s23 }
  0x24   : > { %s522_s24 = scalar_lea.hbm %s521_s23, 1  ;;  %p525_p1 = scmp.lt.s32.totalorder %s521_s23, %s712_s1 }
  0x25   : > { %p523_p0 = scmp.ne.s32.totalorder %s521_s23, %s522_s24  ;;  %p526_p2 = scmp.lt.s32.totalorder %s524_s27, %s522_s24 }
  0x27   : > { %p527_p3 = por %p526_p2, %p525_p1 }
  0x29   : > { %p528_p4 = pnand %p527_p3, %p523_p0 }
  0x2b   : > { %531 = shalt.err (!%p528_p4)  }
  0x2c   : > { %s532_s30 = sshra.s32 %s128_s19, 4  ;;  %s605_s11 = smov [#allocation2]   ;;  %s533_s30 = int_to_ptr.vmem [resolvable:$true] %s532_s30 }
  0x2d   : > { %s534_s4 = scalar_lea.vmem %s533_s30, 1  ;;  %s536_s12 = scalar_lea.vmem %s605_s11, 8 }
  0x2e   : > { %p535_p5 = scmp.ne.s32.totalorder %s533_s30, %s534_s4  ;;  %p537_p6 = scmp.lt.s32.totalorder %s533_s30, [#allocation2] }
  0x2f   : > { %p538_p7 = scmp.lt.s32.totalorder %s536_s12, %s534_s4 }
  0x31   : > { %p539_p8 = por %p538_p7, %p537_p6 }
  0x33   : > { %p540_p9 = pnand %p539_p8, %p535_p5 }
  0x35   : > { %543 = shalt.err (!%p540_p9)  }
  0x36   : > { %130 = dma.hbm_to_vmem [thread:$0]  %s126_s0, 16, %s128_s19, [#allocation4] }
  0x37   : > { %s113_s6 = sadd.s32 1, %s590_s6  }
  0x38   : > { %p110_p10 = scmp.ge.s32.totalorder %s113_s6, 8  }
  0x39   :  { %s592_s13 = smov (%p110_p10), 0  }
  0x3a   :  { %112 = sbr.rel (!%p110_p10) target bundleno = 27 (0x1b), region = 92 }
  0x3f LB: > { %584 = dma.done.wait [#allocation4], 16  ;;  %s594_s13 = sphi %s592_s13, %s136_s13  }
  0x40   : > { %585 = vsyncadd [#allocation4], 4294967280  ;;  %s136_s13 = sadd.s32 1, %s594_s13  }
  0x41   : > { %p133_p11 = scmp.ge.s32.totalorder %s136_s13, 8  }
  0x42   :  { %v155_v0 = vld [vmem:[#allocation7 + $0x78] sm:$0xff] (%p133_p11)  ;;  %v154_v1 = vld [vmem:[#allocation7 + $0x70] sm:$0xff] (%p133_p11)  ;;  %v153_v2 = vld [vmem:[#allocation7 + $0x68] sm:$0xff] (%p133_p11)  ;;  %s606_s6 = smov (%p133_p11), [#allocation15]  }
  0x43   :  { %135 = sbr.rel (!%p133_p11) target bundleno = 63 (0x3f), region = 103  ;;  %160 = vmatpush.msra.mxu0 (%p133_p11), %v155_v0  ;;  %v152_v3 = vld [vmem:[#allocation7 + $0x60] sm:$0xff] (%p133_p11)  ;;  %v196_v4 = vld [vmem:[#allocation10 + $0x78] sm:$0xff] (%p133_p11)  ;;  %v195_v6 = vld [vmem:[#allocation10 + $0x70] sm:$0xff] (%p133_p11)  ;;  %s350_s8 = sshll.u32 (%p133_p11), %s606_s6, 4  ;;  %s351_s8 = int_to_ptr.vmem [resolvable:$true] %s350_s8 }
  0x44   :  { %v151_v5 = vld [vmem:[#allocation7 + $0x58] sm:$0xff] (%p133_p11)  ;;  %201 = vmatpush.msra.mxu1 (%p133_p11), %v196_v4  ;;  %v194_v7 = vld [vmem:[#allocation10 + $0x68] sm:$0xff] (%p133_p11)  ;;  %v150_v8 = vld [vmem:[#allocation7 + $0x50] sm:$0xff] (%p133_p11) }
  0x45   :  { %161 = vmatpush.msra.mxu0 (%p133_p11), %v154_v1  ;;  %v193_v9 = vld [vmem:[#allocation10 + $0x60] sm:$0xff] (%p133_p11)  ;;  %v149_v10 = vld [vmem:[#allocation7 + $0x48] sm:$0xff] (%p133_p11)  ;;  %v192_v11 = vld [vmem:[#allocation10 + $0x58] sm:$0xff] (%p133_p11) }
  0x46   :  { %202 = vmatpush.msra.mxu1 (%p133_p11), %v195_v6  ;;  %v148_v12 = vld [vmem:[#allocation7 + $0x40] sm:$0xff] (%p133_p11)  ;;  %v191_v13 = vld [vmem:[#allocation10 + $0x50] sm:$0xff] (%p133_p11)  ;;  %v147_v14 = vld [vmem:[#allocation7 + $0x38] sm:$0xff] (%p133_p11) }
  0x47   :  { %162 = vmatpush.msra.mxu0 (%p133_p11), %v153_v2  ;;  %v190_v15 = vld [vmem:[#allocation10 + $0x48] sm:$0xff] (%p133_p11)  ;;  %v146_v16 = vld [vmem:[#allocation7 + $0x30] sm:$0xff] (%p133_p11)  ;;  %v189_v17 = vld [vmem:[#allocation10 + $0x40] sm:$0xff] (%p133_p11) }
  0x48   :  { %203 = vmatpush.msra.mxu1 %v194_v7  ;;  %v145_v18 = vld [vmem:[#allocation7 + $0x28] sm:$0xff]  ;;  %v188_v19 = vld [vmem:[#allocation10 + $0x38] sm:$0xff]  ;;  %v144_v20 = vld [vmem:[#allocation7 + $0x20] sm:$0xff] }
  0x49   :  { %163 = vmatpush.msra.mxu0 %v152_v3  ;;  %v187_v21 = vld [vmem:[#allocation10 + $0x30] sm:$0xff]  ;;  %v143_v22 = vld [vmem:[#allocation7 + $0x18] sm:$0xff]  ;;  %v186_v23 = vld [vmem:[#allocation10 + $0x28] sm:$0xff] }
  0x4a   :  { %204 = vmatpush.msra.mxu1 %v193_v9  ;;  %v142_v24 = vld [vmem:[#allocation7 + $0x10] sm:$0xff]  ;;  %v185_v25 = vld [vmem:[#allocation10 + $0x20] sm:$0xff]  ;;  %v141_v26 = vld [vmem:[#allocation7 + $0x8] sm:$0xff] }
  0x4b   :  { %164 = vmatpush.msra.mxu0 %v151_v5  ;;  %v184_v27 = vld [vmem:[#allocation10 + $0x18] sm:$0xff]  ;;  %v140_v28 = vld [vmem:[#allocation7] sm:$0xff]  ;;  %v183_v30 = vld [vmem:[#allocation10 + $0x10] sm:$0xff] }
  0x4c   :  { %205 = vmatpush.msra.mxu1 %v192_v11  ;;  %v139_v29 = vld [vmem:[#allocation2] sm:$0xff]  ;;  %v182_v31 = vld [vmem:[#allocation10 + $0x8] sm:$0xff]  ;;  %v181_v32 = vld [vmem:[#allocation10] sm:$0xff] }
  0x4d   :  { %165 = vmatpush.msra.mxu0 %v150_v8  ;;  %v237_v33 = vld [vmem:[#allocation12 + $0x78] sm:$0xff]  ;;  %v236_v34 = vld [vmem:[#allocation12 + $0x70] sm:$0xff]  ;;  %v235_v35 = vld [vmem:[#allocation12 + $0x68] sm:$0xff] }
  0x4e   :  { %206 = vmatpush.msra.mxu1 %v191_v13  ;;  %242 = vmatpush.msra.mxu2 %v237_v33  ;;  %v234_v36 = vld [vmem:[#allocation12 + $0x60] sm:$0xff]  ;;  %v233_v37 = vld [vmem:[#allocation12 + $0x58] sm:$0xff]  ;;  %v232_v38 = vld [vmem:[#allocation12 + $0x50] sm:$0xff] }
  0x4f   :  { %166 = vmatpush.msra.mxu0 %v149_v10  ;;  %v231_v39 = vld [vmem:[#allocation12 + $0x48] sm:$0xff]  ;;  %v230_v40 = vld [vmem:[#allocation12 + $0x40] sm:$0xff]  ;;  %v229_v41 = vld [vmem:[#allocation12 + $0x38] sm:$0xff] }
  0x50   :  { %207 = vmatpush.msra.mxu1 %v190_v15  ;;  %243 = vmatpush.msra.mxu2 %v236_v34  ;;  %v228_v42 = vld [vmem:[#allocation12 + $0x30] sm:$0xff]  ;;  %v227_v43 = vld [vmem:[#allocation12 + $0x28] sm:$0xff]  ;;  %v226_v44 = vld [vmem:[#allocation12 + $0x20] sm:$0xff] }
  0x51   :  { %167 = vmatpush.msra.mxu0 %v148_v12  ;;  %v225_v45 = vld [vmem:[#allocation12 + $0x18] sm:$0xff]  ;;  %v224_v50 = vld [vmem:[#allocation12 + $0x10] sm:$0xff]  ;;  %v223_v51 = vld [vmem:[#allocation12 + $0x8] sm:$0xff] }
  0x52   :  { %208 = vmatpush.msra.mxu1 %v189_v17  ;;  %244 = vmatpush.msra.mxu2 %v235_v35  ;;  %v409_v46 = vld [vmem:[%s714_s3] ss:$0 sm:$0xff]  ;;  %v222_v52 = vld [vmem:[#allocation12] sm:$0xff]  ;;  %v295_v53 = vld [vmem:[#allocation13 + $0xf0] sm:$0xff] }
  0x53   :  { %168 = vmatpush.msra.mxu0 %v147_v14  ;;  %v296_v54 = vld [vmem:[#allocation13 + $0xf8] sm:$0xff]  ;;  %v293_v55 = vld [vmem:[#allocation13 + $0xe0] sm:$0xff]  ;;  %303 = vmatpush.msra.mxu3 %v295_v53  ;;  %v294_v56 = vld [vmem:[#allocation13 + $0xe8] sm:$0xff] }
  0x54   :  { %209 = vmatpush.msra.mxu1 %v188_v19  ;;  %245 = vmatpush.msra.mxu2 %v234_v36  ;;  %v291_v57 = vld [vmem:[#allocation13 + $0xd0] sm:$0xff]  ;;  %v292_v58 = vld [vmem:[#allocation13 + $0xd8] sm:$0xff]  ;;  %v289_v59 = vld [vmem:[#allocation13 + $0xc0] sm:$0xff] }
  0x55   :  { %169 = vmatpush.msra.mxu0 %v146_v16  ;;  %304 = vmatpush.msra.mxu3 %v293_v55  ;;  %v290_v60 = vld [vmem:[#allocation13 + $0xc8] sm:$0xff]  ;;  %v287_v61 = vld [vmem:[#allocation13 + $0xb0] sm:$0xff]  ;;  %v288_v62 = vld [vmem:[#allocation13 + $0xb8] sm:$0xff] }
  0x56   :  { %210 = vmatpush.msra.mxu1 %v187_v21  ;;  %246 = vmatpush.msra.mxu2 %v233_v37  ;;  %v285_v63 = vld [vmem:[#allocation13 + $0xa0] sm:$0xff]  ;;  %v286_v0 = vld [vmem:[#allocation13 + $0xa8] sm:$0xff]  ;;  %v283_v1 = vld [vmem:[#allocation13 + $0x90] sm:$0xff] }
  0x57   :  { %170 = vmatpush.msra.mxu0 %v145_v18  ;;  %305 = vmatpush.msra.mxu3 %v291_v57  ;;  %v284_v2 = vld [vmem:[#allocation13 + $0x98] sm:$0xff]  ;;  %v281_v3 = vld [vmem:[#allocation13 + $0x80] sm:$0xff]  ;;  %v282_v4 = vld [vmem:[#allocation13 + $0x88] sm:$0xff] }
  0x58   :  { %211 = vmatpush.msra.mxu1 %v186_v23  ;;  %247 = vmatpush.msra.mxu2 %v232_v38  ;;  %v279_v5 = vld [vmem:[#allocation13 + $0x70] sm:$0xff]  ;;  %v280_v6 = vld [vmem:[#allocation13 + $0x78] sm:$0xff]  ;;  %v277_v7 = vld [vmem:[#allocation13 + $0x60] sm:$0xff] }
  0x59   :  { %171 = vmatpush.msra.mxu0 %v144_v20  ;;  %306 = vmatpush.msra.mxu3 %v289_v59  ;;  %v278_v8 = vld [vmem:[#allocation13 + $0x68] sm:$0xff]  ;;  %v275_v9 = vld [vmem:[#allocation13 + $0x50] sm:$0xff]  ;;  %v276_v10 = vld [vmem:[#allocation13 + $0x58] sm:$0xff] }
  0x5a   :  { %212 = vmatpush.msra.mxu1 %v185_v25  ;;  %248 = vmatpush.msra.mxu2 %v231_v39  ;;  %v273_v11 = vld [vmem:[#allocation13 + $0x40] sm:$0xff]  ;;  %v274_v12 = vld [vmem:[#allocation13 + $0x48] sm:$0xff]  ;;  %v271_v13 = vld [vmem:[#allocation13 + $0x30] sm:$0xff] }
  0x5b   :  { %172 = vmatpush.msra.mxu0 %v143_v22  ;;  %307 = vmatpush.msra.mxu3 %v287_v61  ;;  %v272_v14 = vld [vmem:[#allocation13 + $0x38] sm:$0xff]  ;;  %v269_v19 = vld [vmem:[#allocation13 + $0x20] sm:$0xff]  ;;  %v270_v20 = vld [vmem:[#allocation13 + $0x28] sm:$0xff] }
  0x5c   :  { %213 = vmatpush.msra.mxu1 %v184_v27  ;;  %249 = vmatpush.msra.mxu2 %v230_v40  ;;  %v410_v15 = vld [vmem:[%s716_s5] ss:$0 sm:$0xff]  ;;  %v267_v21 = vld [vmem:[#allocation13 + $0x10] sm:$0xff]  ;;  %v265_v23 = vld [vmem:[#allocation13] sm:$0xff] }
  0x5d   :  { %173 = vmatpush.msra.mxu0 %v142_v24  ;;  %308 = vmatpush.msra.mxu3 %v285_v63  ;;  %v268_v22 = vld [vmem:[#allocation13 + $0x18] sm:$0xff]  ;;  %v266_v24 = vld [vmem:[#allocation13 + $0x8] sm:$0xff] }
  0x5e   :  { %214 = vmatpush.msra.mxu1 %v183_v30  ;;  %250 = vmatpush.msra.mxu2 %v229_v41  ;;  %v411_v25 = vld [vmem:[%s718_s7] ss:$0 sm:$0xff]  ;;  %s352_s7 = sshll.u32 %s721_s10, 4  ;;  %s353_s7 = int_to_ptr.hbm [resolvable:$true] %s352_s7 }
  0x5f   :  { %174 = vmatpush.msra.mxu0 %v141_v26  ;;  %309 = vmatpush.msra.mxu3 %v283_v1 }
  0x60   :  { %215 = vmatpush.msra.mxu1 %v182_v31  ;;  %251 = vmatpush.msra.mxu2 %v228_v42 }
  0x61   :  { %175 = vmatpush.msra.mxu0 %v140_v28  ;;  %310 = vmatpush.msra.mxu3 %v281_v3 }
  0x62   :  { %176 = vmatmul.f32.vlgmr.msra.gmra.mxu0 %v139_v29  ;;  %216 = vmatpush.msra.mxu1 %v181_v32  ;;  %v297_v29 = vld [vmem:[%s720_s9] sm:$0x3] }
  0x63   :  { %252 = vmatpush.msra.mxu2 %v227_v43  ;;  %323 = vmatpush.msrb.mxu0 %v296_v54  ;;  %v300_v30 = vperm.slane %v297_v29, 1  ;;  %v299_v33 = vperm.slane %v297_v29, 0 }
  0x64   :  { %311 = vmatpush.msra.mxu3 %v279_v5 }
  0x65   :  { %253 = vmatpush.msra.mxu2 %v226_v44  ;;  %324 = vmatpush.msrb.mxu0 %v294_v56 }
  0x66   :  { %312 = vmatpush.msra.mxu3 %v277_v7 }
  0x67   :  { %254 = vmatpush.msra.mxu2 %v225_v45  ;;  %325 = vmatpush.msrb.mxu0 %v292_v58 }
  0x68   :  { %313 = vmatpush.msra.mxu3 %v275_v9 }
  0x69   :  { %255 = vmatpush.msra.mxu2 %v224_v50  ;;  %326 = vmatpush.msrb.mxu0 %v290_v60 }
  0x6a   :  { %314 = vmatpush.msra.mxu3 %v273_v11 }
  0x6b   :  { %256 = vmatpush.msra.mxu2 %v223_v51  ;;  %327 = vmatpush.msrb.mxu0 %v288_v62 }
  0x6c   :  { %315 = vmatpush.msra.mxu3 %v271_v13 }
  0x6d   :  { %257 = vmatpush.msra.mxu2 %v222_v52  ;;  %328 = vmatpush.msrb.mxu0 %v286_v0 }
  0x6e   :  { %316 = vmatpush.msra.mxu3 %v269_v19 }
  0x6f   :  { %329 = vmatpush.msrb.mxu0 %v284_v2 }
  0x70   :  { %317 = vmatpush.msra.mxu3 %v267_v21 }
  0x71   :  { %330 = vmatpush.msrb.mxu0 %v282_v4 }
  0x72   :  { %318 = vmatpush.msra.mxu3 %v265_v23 }
  0x73   :  { %331 = vmatpush.msrb.mxu0 %v280_v6 }
  0x75   :  { %332 = vmatpush.msrb.mxu0 %v278_v8 }
  0x77   :  { %333 = vmatpush.msrb.mxu0 %v276_v10 }
  0x79   :  { %334 = vmatpush.msrb.mxu0 %v274_v12 }
  0x7b   :  { %335 = vmatpush.msrb.mxu0 %v272_v14 }
  0x7d   :  { %336 = vmatpush.msrb.mxu0 %v270_v20 }
  0x7f   :  { %337 = vmatpush.msrb.mxu0 %v268_v22 }
  0x81   :  { %338 = vmatpush.msrb.mxu0 %v266_v24 }
  0xdf   :  { %v177_v47 = vpop.f32.mrf.mxu0 }
  0xe0   :  { %v178_v48 = vadd.f32 %v409_v46, %v177_v47 }
  0xe2   :  { %v180_v49 = vmax.f32 %v178_v48, 0.0 }
  0xe4   :  { %217 = vmatmul.f32.vlgmr.msra.gmra.mxu1 %v180_v49 }
 0x161   :  { %v218_v16 = vpop.f32.mrf.mxu1 }
 0x162   :  { %v219_v17 = vadd.f32 %v410_v15, %v218_v16 }
 0x164   :  { %v221_v18 = vmax.f32 %v219_v17, 0.0 }
 0x166   :  { %258 = vmatmul.f32.vlgmr.msra.gmra.mxu2 %v221_v18 }
 0x1e9   :  { %v259_v26 = vpop.f32.mrf.mxu2 }
 0x1ea   :  { %v260_v27 = vadd.f32 %v411_v25, %v259_v26 }
 0x1ec   :  { %v262_v28 = vmax.f32 %v260_v27, 0.0 }
 0x1ee   :  { %319 = vmatmul.f32.vlgmr.msra.gmra.mxu3 %v262_v28  ;;  %339 = vmatmul.f32.vlgmr.msrb.gmra.mxu0 %v262_v28 }
 0x26b   :  { %v340_v31 = vpop.f32.mrf.mxu0 }
 0x26c   :  { %v341_v32 = vadd.f32 %v340_v31, %v300_v30 }
 0x26e   :  { %344 = vst [vmem:[#allocation15 + $0x8] sm:$0xff] %v341_v32 }
 0x271   :  { %v320_v34 = vpop.f32.mrf.mxu3 }
 0x272   :  { %v321_v35 = vadd.f32 %v320_v34, %v299_v33 }
 0x274   :  { %343 = vst [vmem:[#allocation15] sm:$0xff] %v321_v35 }
 0x275   :  { %355 = dma.vmem_to_hbm [thread:$0]  %s351_s8, 256, %s353_s7, [#allocation9]  }
 0x276   :  { %586 = dma.done.wait [#allocation9], 256  }
 0x277   :  { %587 = vsyncadd [#allocation9], 4294967040 }
 0x278   :  { %360 = vsyncpa [#allocation8], 1 }
 0x279   :  { %361 = vsyncpa [#allocation11], 1 }
 0x27a   :  { %362 = vsyncpa [#allocation14], 1 }
 0x27b   :  { %363 = vsyncpa [#allocation9], 1 }
 0x27c   :  { %364 = vsyncmov [#allocation4] }
 0x27f   :  { %s365_s9 = vpop.sfrf %364 }
 0x280   :  { %p382_p12 = scmp.ne.s32.totalorder %s365_s9, 0 }
 0x282   :  { %369 = shalt.err (%p382_p12)  }

</bundles_post_ra>
